<compile_context>
chip_gen: v7x
topology: tpu7x:2x2x1
jax: 0.10.0
libtpu: 0.0.40
codegen_flags: <defaults>
</compile_context>

<pallas_src>
import functools
import math

import jax
import jax.numpy as jnp
from jax.experimental import pallas as pl
from jax.experimental.pallas import tpu as pltpu

LN_EPS = 1e-5
COMPUTE_DTYPE = jnp.bfloat16     # MXU operand dtype (accumulation stays f32)
ACT_DTYPE = jnp.bfloat16         # inter-kernel activation dtype (HBM traffic)
BIG_NEG = -1e30                  # structural block: exp() underflows to exactly 0


# ----------------------------------------------------------------------------
# In-kernel helpers (operate on VMEM-resident f32 values)
# ----------------------------------------------------------------------------
def _ln(z, g, b, eps=LN_EPS):
    mu = jnp.mean(z, axis=-1, keepdims=True)
    var = jnp.mean(jnp.square(z - mu), axis=-1, keepdims=True)
    return (z - mu) * jax.lax.rsqrt(var + eps) * g + b


def _mha(q, k, v, mask, scale, n_heads, dh, cdt):
    """Joint-softmax MHA: returns concat_h(softmax(q_h k_h^T * scale + mask) v_h).

    The output projection is applied ONCE by the caller on the concatenated
    result (single K=D matmul instead of n_heads K=dh matmuls).
    """
    outs = []
    for h in range(n_heads):
        sl = slice(h * dh, (h + 1) * dh)
        s = jax.lax.dot_general(q[:, sl].astype(cdt), k[:, sl].astype(cdt),
                                (((1,), (1,)), ((), ())),
                                preferred_element_type=jnp.float32) * scale + mask
        m = jnp.max(s, axis=-1, keepdims=True)
        p = jnp.exp(s - m)
        p = p / jnp.sum(p, axis=-1, keepdims=True)       # exact divide (parity)
        outs.append(jnp.dot(p.astype(cdt), v[:, sl].astype(cdt),
                            preferred_element_type=jnp.float32))
    return jnp.concatenate(outs, axis=-1)                # (Lm, D) f32


# ----------------------------------------------------------------------------
# Pallas kernels
# ----------------------------------------------------------------------------
def _stem_kernel(patch_ref, wconv_ref, poscls_ref, g_ref, b_ref, x_out_ref, *, cdt):
    """Per batch: [zero CLS row | patches] @ Wconv + (pos emb with cls folded), ln_pre."""
    emb = jnp.dot(patch_ref[...].astype(cdt), wconv_ref[...],
                  preferred_element_type=jnp.float32)            # (Lx, D) f32
    tok = emb + poscls_ref[...]
    x_out_ref[...] = _ln(tok, g_ref[...], b_ref[...]).astype(x_out_ref.dtype)


def _layers_kernel(x0_ref, mask_ref,
                   ln1_g_ref, ln1_b_ref, w_qkv_ref, b_qkv_ref,
                   w_out_ref, b_out_ref, ln2_g_ref, ln2_b_ref,
                   w_fc_ref, b_fc_ref, w_pr_ref, b_pr_ref,
                   lnp_g_ref, lnp_b_ref, proj_ref,
                   out_ref, s_ref,
                   *, n_heads, n_layers, start_block, n_x, n_g, cdt):
    """One grid step = one transformer block for one batch element.

    The merged residual stream [x (n_x rows) ; gv (n_g rows)] stays resident in
    the f32 VMEM scratch `s_ref` across the whole layer axis.  The head
    (ln_post + proj) is folded into the last layer iteration.
    """
    l = pl.program_id(1)
    D = s_ref.shape[-1]
    dh = D // n_heads
    scale = 1.0 / math.sqrt(dh)

    # --- init: load the stem output and seed the gv rows with the CLS token. ---
    @pl.when(l == 0)
    def _():
        x0 = x0_ref[...].astype(jnp.float32)                     # (n_x, D)
        gv0 = jnp.broadcast_to(x0[0:1, :], (n_g, D))
        s_ref[...] = jnp.concatenate([x0, gv0], axis=0)

    # --- re-seed gv rows from the current CLS token at start_block (>0 only). ---
    if start_block > 0:
        @pl.when(l == start_block)
        def _():
            cls = s_ref[pl.ds(0, 1), :]
            s_ref[pl.ds(n_x, n_g), :] = jnp.broadcast_to(cls, (n_g, D))

    s = s_ref[...]                                               # (Lm, D) f32

    # --- shared LN1 + fused QKV on the merged stream. ---
    sn = _ln(s, ln1_g_ref[...], ln1_b_ref[...])
    qkv = jnp.dot(sn.astype(cdt), w_qkv_ref[...],
                  preferred_element_type=jnp.float32) + b_qkv_ref[...]
    q, k, v = qkv[:, :D], qkv[:, D:2 * D], qkv[:, 2 * D:]

    # --- single masked attention (x self-attn rows + gv cross-attn rows). ---
    attn = _mha(q, k, v, mask_ref[...], scale, n_heads, dh, cdt)
    s1 = s + jnp.dot(attn.astype(cdt), w_out_ref[...],
                     preferred_element_type=jnp.float32) + b_out_ref[...]

    # --- LN2 + QuickGELU MLP (row-wise, so the stream merge is exact). ---
    h = _ln(s1, ln2_g_ref[...], ln2_b_ref[...])
    h = jnp.dot(h.astype(cdt), w_fc_ref[...],
                preferred_element_type=jnp.float32) + b_fc_ref[...]
    h = h * jax.nn.sigmoid(1.702 * h)                            # CLIP QuickGELU (f32)
    s2 = s1 + jnp.dot(h.astype(cdt), w_pr_ref[...],
                      preferred_element_type=jnp.float32) + b_pr_ref[...]
    s_ref[...] = s2

    # --- head folded into the last layer: ln_post + projection on gv rows. ---
    @pl.when(l == n_layers - 1)
    def _():
        gv = s2[n_x:, :]
        z = _ln(gv, lnp_g_ref[...], lnp_b_ref[...])
        out_ref[...] = jnp.dot(z.astype(cdt), proj_ref[...],
                               preferred_element_type=jnp.float32
                               ).astype(out_ref.dtype)


# ----------------------------------------------------------------------------
# pallas_call wrappers
# ----------------------------------------------------------------------------
def stem(patches, wconv, poscls, ln_g, ln_b, *, cdt=COMPUTE_DTYPE):
    B, Lx, K = patches.shape
    D = wconv.shape[1]
    return pl.pallas_call(
        functools.partial(_stem_kernel, cdt=cdt),
        out_shape=jax.ShapeDtypeStruct((B, Lx, D), ACT_DTYPE),
        grid=(B,),
        in_specs=[pl.BlockSpec((None, Lx, K), lambda b: (b, 0, 0)),
                  pl.BlockSpec((K, D), lambda b: (0, 0)),
                  pl.BlockSpec((Lx, D), lambda b: (0, 0)),
                  pl.BlockSpec((1, D), lambda b: (0, 0)),
                  pl.BlockSpec((1, D), lambda b: (0, 0))],
        out_specs=pl.BlockSpec((None, Lx, D), lambda b: (b, 0, 0)),
        compiler_params=pltpu.CompilerParams(dimension_semantics=("parallel",)),
    )(patches, wconv, poscls, ln_g, ln_b)


def transformer_and_head(x0, attn_mask, layer_w, ln_post_g, ln_post_b, proj,
                         *, n_heads, start_block, n_masks, cdt=COMPUTE_DTYPE):
    """All transformer blocks + head in ONE pallas_call, grid=(B, n_layers)."""
    B, Lx, D = x0.shape
    n_layers = layer_w[0].shape[0]
    out_dim = proj.shape[1]
    Lm = Lx + n_masks

    def lspec(shape):   # layer-stacked weight: fetch block `l` along the layer axis
        return pl.BlockSpec((None,) + shape, lambda b, l: (l,) + (0,) * len(shape))

    def rspec(shape):   # replicated whole-array block (fetched once, stays resident)
        return pl.BlockSpec(shape, lambda b, l: (0,) * len(shape))

    w_shapes = [(1, D), (1, D),            # ln1 gamma / beta
                (D, 3 * D), (1, 3 * D),    # fused QKV
                (D, D), (1, D),            # attention out-proj
                (1, D), (1, D),            # ln2 gamma / beta
                (D, 4 * D), (1, 4 * D),    # mlp c_fc
                (4 * D, D), (1, D)]        # mlp c_proj

    kernel = functools.partial(_layers_kernel, n_heads=n_heads, n_layers=n_layers,
                               start_block=start_block, n_x=Lx, n_g=n_masks, cdt=cdt)
    return pl.pallas_call(
        kernel,
        out_shape=jax.ShapeDtypeStruct((B, n_masks, out_dim), jnp.float32),
        grid=(B, n_layers),
        in_specs=[pl.BlockSpec((None, Lx, D), lambda b, l: (b, 0, 0)),   # stem output
                  rspec((Lm, Lm))]                                        # combined mask
                 + [lspec(s) for s in w_shapes]
                 + [rspec((1, D)), rspec((1, D)), rspec((D, out_dim))],   # head params
        out_specs=pl.BlockSpec((None, n_masks, out_dim), lambda b, l: (b, 0, 0)),
        scratch_shapes=[pltpu.VMEM((Lm, D), jnp.float32)],                # resident stream
        compiler_params=pltpu.CompilerParams(
            dimension_semantics=("parallel", "arbitrary")),
    )(x0, attn_mask, *layer_w, ln_post_g, ln_post_b, proj)


# ----------------------------------------------------------------------------
# Model glue (cheap prep in XLA, all heavy compute in the two kernels)
# ----------------------------------------------------------------------------
def build_attn_mask(masks, target_size, n_x):
    """Combined additive mask over the merged [x ; gv] token block, shape (Lm, Lm).

    x-query rows: free self-attention over x keys; gv keys blocked exactly (BIG_NEG).
    gv-query rows: CLS key blocked exactly (the reference excludes it from the
    source), patch keys masked with the module's -100 convention, gv keys -100
    off-diagonal (each group only attends to itself).
    """
    N, Hm, Wm = masks.shape
    L = n_x - 1
    blocked = 1.0 - (masks != 0).astype(jnp.float32)              # 1 where blocked
    # PyTorch nearest rule: src = floor(dst * in/out)
    ih = jnp.floor(jnp.arange(target_size) * (Hm / target_size)).astype(jnp.int32)
    iw = jnp.floor(jnp.arange(target_size) * (Wm / target_size)).astype(jnp.int32)
    blocked = blocked[:, ih][:, :, iw].reshape(N, L)
    blocked = (blocked != 0).astype(jnp.float32)

    gv_cls = jnp.full((N, 1), BIG_NEG, jnp.float32)
    gv_patch = blocked * (-100.0)
    gv_gv = (1.0 - jnp.eye(N, dtype=jnp.float32)) * (-100.0)
    gv_rows = jnp.concatenate([gv_cls, gv_patch, gv_gv], axis=1)          # (N, Lm)
    x_rows = jnp.concatenate([jnp.zeros((n_x, n_x), jnp.float32),
                              jnp.full((n_x, N), BIG_NEG, jnp.float32)], axis=1)
    return jnp.concatenate([x_rows, gv_rows], axis=0)                     # (Lm, Lm)


def _stack_block_weights(blocks, cdt=COMPUTE_DTYPE):
    """Stack per-layer params on a leading layer axis; (in, out) layout for matmuls;
    matmul weights in bf16, biases / LN params in f32."""
    D = blocks[0]["ln1_g"].shape[0]

    def st(fn):
        return jnp.stack([fn(p) for p in blocks], axis=0)

    return (
        st(lambda p: p["ln1_g"].reshape(1, D).astype(jnp.float32)),
        st(lambda p: p["ln1_b"].reshape(1, D).astype(jnp.float32)),
        st(lambda p: p["in_proj_w"].T.astype(cdt)),                 # (D, 3D)
        st(lambda p: p["in_proj_b"].reshape(1, 3 * D).astype(jnp.float32)),
        st(lambda p: p["out_proj_w"].T.astype(cdt)),                # (D, D)
        st(lambda p: p["out_proj_b"].reshape(1, D).astype(jnp.float32)),
        st(lambda p: p["ln2_g"].reshape(1, D).astype(jnp.float32)),
        st(lambda p: p["ln2_b"].reshape(1, D).astype(jnp.float32)),
        st(lambda p: p["fc_w"].T.astype(cdt)),                      # (D, 4D)
        st(lambda p: p["fc_b"].reshape(1, 4 * D).astype(jnp.float32)),
        st(lambda p: p["proj_w"].T.astype(cdt)),                    # (4D, D)
        st(lambda p: p["proj_b"].reshape(1, D).astype(jnp.float32)),
    )


def forward(params, im, masks, *, patch_size, target_size, n_heads, start_block):
    B, C, H, W = im.shape
    D = params["class_embedding"].shape[0]
    L = target_size * target_size
    Lx = L + 1
    stride = patch_size                                   # upsample == 1
    pad = (patch_size - 1) // 2                           # module sets conv1.padding

    # ---- conv1 stem: patch extraction (XLA glue) + fused Pallas stem kernel. ----
    xp = jnp.pad(im.astype(jnp.float32), ((0, 0), (0, 0), (pad, pad), (pad, pad)))
    Hout = (H + 2 * pad - patch_size) // stride + 1
    Wout = (W + 2 * pad - patch_size) // stride + 1
    assert Hout * Wout == L
    xp = xp[:, :, :Hout * stride, :Wout * stride]
    xp = xp.reshape(B, C, Hout, stride, Wout, stride)
    patches = xp.transpose(0, 2, 4, 1, 3, 5).reshape(B, L, C * patch_size * patch_size)
    patches = jnp.pad(patches, ((0, 0), (1, 0), (0, 0)))  # zero row 0 = CLS slot
    patches = patches.astype(ACT_DTYPE)                   # bf16 at the kernel boundary

    wconv = params["conv1_w"].reshape(D, -1).T.astype(COMPUTE_DTYPE)   # (C*P*P, D)
    # TODO(synk): positional-embedding bilinear upsample omitted (identity for upsample==1).
    poscls = params["positional_embedding"].at[0].add(
        params["class_embedding"]).astype(jnp.float32)
    x0 = stem(patches, wconv, poscls,
              params["ln_pre_g"].reshape(1, D).astype(jnp.float32),
              params["ln_pre_b"].reshape(1, D).astype(jnp.float32))

    attn_mask = build_attn_mask(masks, target_size, Lx)
    n_masks = masks.shape[0]

    layer_w = _stack_block_weights(params["blocks"])
    n_layers = len(params["blocks"])
    assert 0 <= start_block < n_layers

    out = transformer_and_head(
        x0, attn_mask, layer_w,
        params["ln_post_g"].reshape(1, D).astype(jnp.float32),
        params["ln_post_b"].reshape(1, D).astype(jnp.float32),
        params["proj"].astype(COMPUTE_DTYPE),
        n_heads=n_heads, start_block=start_block, n_masks=n_masks)
    return out                                            # (B, N, out_dim)


# ----------------------------------------------------------------------------
# Deterministic synthetic parameters
# ----------------------------------------------------------------------------
def init_params(key, *, C, D, P, L, n_layers, out_dim):
    keys = jax.random.split(key, 4 + n_layers)

    def nrm(k, shape, std=0.02):
        return (std * jax.random.normal(k, shape)).astype(jnp.float32)

    params = {
        "conv1_w": nrm(keys[0], (D, C, P, P)),
        "class_embedding": nrm(keys[1], (D,)),
        "positional_embedding": nrm(keys[2], (L + 1, D), std=0.01),
        "ln_pre_g": jnp.ones((D,), jnp.float32),
        "ln_pre_b": jnp.zeros((D,), jnp.float32),
        "ln_post_g": jnp.ones((D,), jnp.float32),
        "ln_post_b": jnp.zeros((D,), jnp.float32),
        "proj": nrm(keys[3], (D, out_dim)),
        "blocks": [],
    }
    for l in range(n_layers):
        ks = jax.random.split(keys[4 + l], 4)
        params["blocks"].append({
            "ln1_g": jnp.ones((D,), jnp.float32),
            "ln1_b": jnp.zeros((D,), jnp.float32),
            "in_proj_w": nrm(ks[0], (3 * D, D)),
            "in_proj_b": jnp.zeros((3 * D,), jnp.float32),
            "out_proj_w": nrm(ks[1], (D, D)),
            "out_proj_b": jnp.zeros((D,), jnp.float32),
            "ln2_g": jnp.ones((D,), jnp.float32),
            "ln2_b": jnp.zeros((D,), jnp.float32),
            "fc_w": nrm(ks[2], (4 * D, D)),
            "fc_b": jnp.zeros((4 * D,), jnp.float32),
            "proj_w": nrm(ks[3], (D, 4 * D)),
            "proj_b": jnp.zeros((D,), jnp.float32),
        })
    return params


if __name__ == "__main__":
    PATCH = 32                 # module asserts patch_size in {14, 16, 32}
    UPSAMPLE = 1
    START_BLOCK = 0
    TARGET = 7 * UPSAMPLE      # patch 32 -> target_size 7
    B, C, H, W = 2, 3, 224, 224
    # Scaled-down geometry, TPU-friendly: D / 3D / 4D / OUT are multiples of 128.
    D, HEADS, LAYERS, OUT = 128, 4, 3, 128
    N_MASKS = 4
    L = TARGET * TARGET

    key = jax.random.PRNGKey(0)
    k_im, k_mask, k_param = jax.random.split(key, 3)
    im = jax.random.normal(k_im, (B, C, H, W), jnp.float32)
    masks = (jax.random.uniform(k_mask, (N_MASKS, H, W)) > 0.5).astype(jnp.float32)
    params = init_params(k_param, C=C, D=D, P=PATCH, L=L,
                         n_layers=LAYERS, out_dim=OUT)

    fwd = jax.jit(functools.partial(
        forward, patch_size=PATCH, target_size=TARGET,
        n_heads=HEADS, start_block=START_BLOCK))

    out = jax.block_until_ready(fwd(params, im, masks))
    assert out.shape == (B, N_MASKS, OUT), out.shape
    assert bool(jnp.all(jnp.isfinite(out)))
    print("KERNEL_OK")
</pallas_src>

<mosaic_0001>
module attributes {stable_mosaic.version = 11 : i64} {
  func.func @_stem_kernel(%arg0: i32, %arg1: memref<1x50x3072xbf16, #tpu.memory_space<vmem>>, %arg2: memref<3072x128xbf16, #tpu.memory_space<vmem>>, %arg3: memref<50x128xf32, #tpu.memory_space<vmem>>, %arg4: memref<1x128xf32, #tpu.memory_space<vmem>>, %arg5: memref<1x128xf32, #tpu.memory_space<vmem>>, %arg6: memref<1x50x128xbf16, #tpu.memory_space<vmem>>) attributes {dimension_semantics = [#tpu.dimension_semantics<parallel>], iteration_bounds = array<i64: 2>, scalar_prefetch = 0 : i64, scratch_operands = 0 : i64, tpu.core_type = #tpu.core_type<tc>, window_params = [{transform_indices = @transform_0, window_bounds = array<i64: 1, 50, 3072>}, {pipeline_mode = #tpu.pipeline_mode<synchronous>, transform_indices = @transform_1, window_bounds = array<i64: 3072, 128>}, {pipeline_mode = #tpu.pipeline_mode<synchronous>, transform_indices = @transform_2, window_bounds = array<i64: 50, 128>}, {pipeline_mode = #tpu.pipeline_mode<synchronous>, transform_indices = @transform_3, window_bounds = array<i64: 1, 128>}, {pipeline_mode = #tpu.pipeline_mode<synchronous>, transform_indices = @transform_4, window_bounds = array<i64: 1, 128>}, {transform_indices = @transform_5, window_bounds = array<i64: 1, 50, 128>}]} {
    %c0 = arith.constant 0 : index
    %c0_0 = arith.constant 0 : index
    %c0_1 = arith.constant 0 : index
    %0 = vector.load %arg1[%c0, %c0_0, %c0_1] : memref<1x50x3072xbf16, #tpu.memory_space<vmem>>, vector<1x50x3072xbf16>
    %1 = vector.shape_cast %0 : vector<1x50x3072xbf16> to vector<50x3072xbf16>
    %c0_2 = arith.constant 0 : index
    %c0_3 = arith.constant 0 : index
    %2 = vector.load %arg2[%c0_2, %c0_3] : memref<3072x128xbf16, #tpu.memory_space<vmem>>, vector<3072x128xbf16>
    %cst = arith.constant dense<0.000000e+00> : vector<50x128xf32>
    %3 = tpu.matmul %1, %2, %cst {dimension_numbers = #tpu.dot_dimension_numbers<[1], [0], [0], [1], [0, 0, 1, 1], [], []>} : vector<50x3072xbf16>, vector<3072x128xbf16>, vector<50x128xf32> -> vector<50x128xf32>
    %c0_4 = arith.constant 0 : index
    %c0_5 = arith.constant 0 : index
    %4 = vector.load %arg3[%c0_4, %c0_5] : memref<50x128xf32, #tpu.memory_space<vmem>>, vector<50x128xf32>
    %5 = arith.addf %3, %4 : vector<50x128xf32>
    %c0_6 = arith.constant 0 : index
    %c0_7 = arith.constant 0 : index
    %6 = vector.load %arg4[%c0_6, %c0_7] : memref<1x128xf32, #tpu.memory_space<vmem>>, vector<1x128xf32>
    %c0_8 = arith.constant 0 : index
    %c0_9 = arith.constant 0 : index
    %7 = vector.load %arg5[%c0_8, %c0_9] : memref<1x128xf32, #tpu.memory_space<vmem>>, vector<1x128xf32>
    %cst_10 = arith.constant dense<0.000000e+00> : vector<50xf32>
    %8 = vector.multi_reduction <add>, %5, %cst_10 [1] : vector<50x128xf32> to vector<50xf32>
    %9 = vector.shape_cast %8 : vector<50xf32> to vector<50x1xf32>
    %cst_11 = arith.constant 1.280000e+02 : f32
    %10 = vector.broadcast %cst_11 : f32 to vector<50x1xf32>
    %11 = arith.divf %9, %10 : vector<50x1xf32>
    %12 = vector.broadcast %11 : vector<50x1xf32> to vector<50x128xf32>
    %13 = arith.subf %5, %12 : vector<50x128xf32>
    %14 = arith.mulf %13, %13 : vector<50x128xf32>
    %cst_12 = arith.constant dense<0.000000e+00> : vector<50xf32>
    %15 = vector.multi_reduction <add>, %14, %cst_12 [1] : vector<50x128xf32> to vector<50xf32>
    %16 = vector.shape_cast %15 : vector<50xf32> to vector<50x1xf32>
    %cst_13 = arith.constant 1.280000e+02 : f32
    %17 = vector.broadcast %cst_13 : f32 to vector<50x1xf32>
    %18 = arith.divf %16, %17 : vector<50x1xf32>
    %19 = vector.broadcast %11 : vector<50x1xf32> to vector<50x128xf32>
    %20 = arith.subf %5, %19 : vector<50x128xf32>
    %cst_14 = arith.constant 9.99999974E-6 : f32
    %21 = vector.broadcast %cst_14 : f32 to vector<50x1xf32>
    %22 = arith.addf %18, %21 : vector<50x1xf32>
    %23 = math.rsqrt %22 : vector<50x1xf32>
    %24 = vector.broadcast %23 : vector<50x1xf32> to vector<50x128xf32>
    %25 = arith.mulf %20, %24 : vector<50x128xf32>
    %26 = vector.broadcast %6 : vector<1x128xf32> to vector<50x128xf32>
    %27 = arith.mulf %25, %26 : vector<50x128xf32>
    %28 = vector.broadcast %7 : vector<1x128xf32> to vector<50x128xf32>
    %29 = arith.addf %27, %28 : vector<50x128xf32>
    %30 = arith.truncf %29 : vector<50x128xf32> to vector<50x128xbf16>
    %c0_15 = arith.constant 0 : index
    %c0_16 = arith.constant 0 : index
    %c0_17 = arith.constant 0 : index
    %31 = vector.load %arg6[%c0_15, %c0_16, %c0_17] : memref<1x50x128xbf16, #tpu.memory_space<vmem>>, vector<1x50x128xbf16>
    %32 = vector.shape_cast %31 : vector<1x50x128xbf16> to vector<50x128xbf16>
    %33 = vector.shape_cast %30 : vector<50x128xbf16> to vector<1x50x128xbf16>
    tpu.vector_store %arg6[%c0_15, %c0_16, %c0_17], %33 {strides = array<i32>} : memref<1x50x128xbf16, #tpu.memory_space<vmem>>, vector<1x50x128xbf16>,
    return
  }
  func.func @transform_0(%arg0: i32) -> (i32, i32, i32) {
    %c0_i32 = arith.constant 0 : i32
    %c0_i32_0 = arith.constant 0 : i32
    %c0_i32_1 = arith.constant 0 : i32
    return %arg0, %c0_i32, %c0_i32_0 : i32, i32, i32
  }
  func.func @transform_1(%arg0: i32) -> (i32, i32) {
    %c0_i32 = arith.constant 0 : i32
    %c0_i32_0 = arith.constant 0 : i32
    %c0_i32_1 = arith.constant 0 : i32
    return %c0_i32, %c0_i32_0 : i32, i32
  }
  func.func @transform_2(%arg0: i32) -> (i32, i32) {
    %c0_i32 = arith.constant 0 : i32
    %c0_i32_0 = arith.constant 0 : i32
    %c0_i32_1 = arith.constant 0 : i32
    return %c0_i32, %c0_i32_0 : i32, i32
  }
  func.func @transform_3(%arg0: i32) -> (i32, i32) {
    %c0_i32 = arith.constant 0 : i32
    %c0_i32_0 = arith.constant 0 : i32
    %c0_i32_1 = arith.constant 0 : i32
    return %c0_i32, %c0_i32_0 : i32, i32
  }
  func.func @transform_4(%arg0: i32) -> (i32, i32) {
    %c0_i32 = arith.constant 0 : i32
    %c0_i32_0 = arith.constant 0 : i32
    %c0_i32_1 = arith.constant 0 : i32
    return %c0_i32, %c0_i32_0 : i32, i32
  }
  func.func @transform_5(%arg0: i32) -> (i32, i32, i32) {
    %c0_i32 = arith.constant 0 : i32
    %c0_i32_0 = arith.constant 0 : i32
    %c0_i32_1 = arith.constant 0 : i32
    return %arg0, %c0_i32, %c0_i32_0 : i32, i32, i32
  }
}

module attributes {stable_mosaic.version = 11 : i64} {
  func.func @_layers_kernel(%arg0: i32, %arg1: i32, %arg2: memref<1x50x128xbf16, #tpu.memory_space<vmem>>, %arg3: memref<54x54xf32, #tpu.memory_space<vmem>>, %arg4: memref<1x1x128xf32, #tpu.memory_space<vmem>>, %arg5: memref<1x1x128xf32, #tpu.memory_space<vmem>>, %arg6: memref<1x128x384xbf16, #tpu.memory_space<vmem>>, %arg7: memref<1x1x384xf32, #tpu.memory_space<vmem>>, %arg8: memref<1x128x128xbf16, #tpu.memory_space<vmem>>, %arg9: memref<1x1x128xf32, #tpu.memory_space<vmem>>, %arg10: memref<1x1x128xf32, #tpu.memory_space<vmem>>, %arg11: memref<1x1x128xf32, #tpu.memory_space<vmem>>, %arg12: memref<1x128x512xbf16, #tpu.memory_space<vmem>>, %arg13: memref<1x1x512xf32, #tpu.memory_space<vmem>>, %arg14: memref<1x512x128xbf16, #tpu.memory_space<vmem>>, %arg15: memref<1x1x128xf32, #tpu.memory_space<vmem>>, %arg16: memref<1x128xf32, #tpu.memory_space<vmem>>, %arg17: memref<1x128xf32, #tpu.memory_space<vmem>>, %arg18: memref<128x128xbf16, #tpu.memory_space<vmem>>, %arg19: memref<1x4x128xf32, #tpu.memory_space<vmem>>, %arg20: memref<54x128xf32, #tpu.memory_space<vmem>>) attributes {dimension_semantics = [#tpu.dimension_semantics<parallel>, #tpu.dimension_semantics<arbitrary>], iteration_bounds = array<i64: 2, 3>, scalar_prefetch = 0 : i64, scratch_operands = 1 : i64, tpu.core_type = #tpu.core_type<tc>, window_params = [{transform_indices = @transform_0, window_bounds = array<i64: 1, 50, 128>}, {pipeline_mode = #tpu.pipeline_mode<synchronous>, transform_indices = @transform_1, window_bounds = array<i64: 54, 54>}, {transform_indices = @transform_2, window_bounds = array<i64: 1, 1, 128>}, {transform_indices = @transform_3, window_bounds = array<i64: 1, 1, 128>}, {transform_indices = @transform_4, window_bounds = array<i64: 1, 128, 384>}, {transform_indices = @transform_5, window_bounds = array<i64: 1, 1, 384>}, {transform_indices = @transform_6, window_bounds = array<i64: 1, 128, 128>}, {transform_indices = @transform_7, window_bounds = array<i64: 1, 1, 128>}, {transform_indices = @transform_8, window_bounds = array<i64: 1, 1, 128>}, {transform_indices = @transform_9, window_bounds = array<i64: 1, 1, 128>}, {transform_indices = @transform_10, window_bounds = array<i64: 1, 128, 512>}, {transform_indices = @transform_11, window_bounds = array<i64: 1, 1, 512>}, {transform_indices = @transform_12, window_bounds = array<i64: 1, 512, 128>}, {transform_indices = @transform_13, window_bounds = array<i64: 1, 1, 128>}, {pipeline_mode = #tpu.pipeline_mode<synchronous>, transform_indices = @transform_14, window_bounds = array<i64: 1, 128>}, {pipeline_mode = #tpu.pipeline_mode<synchronous>, transform_indices = @transform_15, window_bounds = array<i64: 1, 128>}, {pipeline_mode = #tpu.pipeline_mode<synchronous>, transform_indices = @transform_16, window_bounds = array<i64: 128, 128>}, {transform_indices = @transform_17, window_bounds = array<i64: 1, 4, 128>}]} {
    %c0_i32 = arith.constant 0 : i32
    %0 = arith.cmpi eq, %arg1, %c0_i32 : i32
    %1 = arith.extui %0 : i1 to i32
    %c0_i32_0 = arith.constant 0 : i32
    %2 = arith.cmpi ne, %1, %c0_i32_0 : i32
    scf.if %2 {
      %c0_78 = arith.constant 0 : index
      %c0_79 = arith.constant 0 : index
      %c0_80 = arith.constant 0 : index
      %191 = vector.load %arg2[%c0_78, %c0_79, %c0_80] : memref<1x50x128xbf16, #tpu.memory_space<vmem>>, vector<1x50x128xbf16>
      %192 = vector.shape_cast %191 : vector<1x50x128xbf16> to vector<50x128xbf16>
      %193 = arith.extf %192 : vector<50x128xbf16> to vector<50x128xf32>
      %194 = vector.extract_strided_slice %193 {offsets = [0, 0], sizes = [1, 128], strides = [1, 1]} : vector<50x128xf32> to vector<1x128xf32>
      %195 = vector.shape_cast %194 : vector<1x128xf32> to vector<1x128xf32>
      %196 = vector.broadcast %195 : vector<1x128xf32> to vector<4x128xf32>
      %197 = tpu.concatenate %193, %196 in 0 : vector<50x128xf32>, vector<4x128xf32> -> vector<54x128xf32>
      %c0_81 = arith.constant 0 : index
      %c0_82 = arith.constant 0 : index
      %198 = vector.load %arg20[%c0_81, %c0_82] : memref<54x128xf32, #tpu.memory_space<vmem>>, vector<54x128xf32>
      tpu.vector_store %arg20[%c0_81, %c0_82], %197 {strides = array<i32>} : memref<54x128xf32, #tpu.memory_space<vmem>>, vector<54x128xf32>,
    } else {
    }
    %c0 = arith.constant 0 : index
    %c0_1 = arith.constant 0 : index
    %3 = vector.load %arg20[%c0, %c0_1] : memref<54x128xf32, #tpu.memory_space<vmem>>, vector<54x128xf32>
    %c0_2 = arith.constant 0 : index
    %c0_3 = arith.constant 0 : index
    %c0_4 = arith.constant 0 : index
    %4 = vector.load %arg4[%c0_2, %c0_3, %c0_4] : memref<1x1x128xf32, #tpu.memory_space<vmem>>, vector<1x1x128xf32>
    %5 = vector.shape_cast %4 : vector<1x1x128xf32> to vector<1x128xf32>
    %c0_5 = arith.constant 0 : index
    %c0_6 = arith.constant 0 : index
    %c0_7 = arith.constant 0 : index
    %6 = vector.load %arg5[%c0_5, %c0_6, %c0_7] : memref<1x1x128xf32, #tpu.memory_space<vmem>>, vector<1x1x128xf32>
    %7 = vector.shape_cast %6 : vector<1x1x128xf32> to vector<1x128xf32>
    %cst = arith.constant dense<0.000000e+00> : vector<54xf32>
    %8 = vector.multi_reduction <add>, %3, %cst [1] : vector<54x128xf32> to vector<54xf32>
    %9 = vector.shape_cast %8 : vector<54xf32> to vector<54x1xf32>
    %cst_8 = arith.constant 1.280000e+02 : f32
    %10 = vector.broadcast %cst_8 : f32 to vector<54x1xf32>
    %11 = arith.divf %9, %10 : vector<54x1xf32>
    %12 = vector.broadcast %11 : vector<54x1xf32> to vector<54x128xf32>
    %13 = arith.subf %3, %12 : vector<54x128xf32>
    %14 = arith.mulf %13, %13 : vector<54x128xf32>
    %cst_9 = arith.constant dense<0.000000e+00> : vector<54xf32>
    %15 = vector.multi_reduction <add>, %14, %cst_9 [1] : vector<54x128xf32> to vector<54xf32>
    %16 = vector.shape_cast %15 : vector<54xf32> to vector<54x1xf32>
    %cst_10 = arith.constant 1.280000e+02 : f32
    %17 = vector.broadcast %cst_10 : f32 to vector<54x1xf32>
    %18 = arith.divf %16, %17 : vector<54x1xf32>
    %19 = vector.broadcast %11 : vector<54x1xf32> to vector<54x128xf32>
    %20 = arith.subf %3, %19 : vector<54x128xf32>
    %cst_11 = arith.constant 9.99999974E-6 : f32
    %21 = vector.broadcast %cst_11 : f32 to vector<54x1xf32>
    %22 = arith.addf %18, %21 : vector<54x1xf32>
    %23 = math.rsqrt %22 : vector<54x1xf32>
    %24 = vector.broadcast %23 : vector<54x1xf32> to vector<54x128xf32>
    %25 = arith.mulf %20, %24 : vector<54x128xf32>
    %26 = vector.broadcast %5 : vector<1x128xf32> to vector<54x128xf32>
    %27 = arith.mulf %25, %26 : vector<54x128xf32>
    %28 = vector.broadcast %7 : vector<1x128xf32> to vector<54x128xf32>
    %29 = arith.addf %27, %28 : vector<54x128xf32>
    %30 = arith.truncf %29 : vector<54x128xf32> to vector<54x128xbf16>
    %c0_12 = arith.constant 0 : index
    %c0_13 = arith.constant 0 : index
    %c0_14 = arith.constant 0 : index
    %31 = vector.load %arg6[%c0_12, %c0_13, %c0_14] : memref<1x128x384xbf16, #tpu.memory_space<vmem>>, vector<1x128x384xbf16>
    %32 = vector.shape_cast %31 : vector<1x128x384xbf16> to vector<128x384xbf16>
    %cst_15 = arith.constant dense<0.000000e+00> : vector<54x384xf32>
    %33 = tpu.matmul %30, %32, %cst_15 {dimension_numbers = #tpu.dot_dimension_numbers<[1], [0], [0], [1], [0, 0, 1, 1], [], []>} : vector<54x128xbf16>, vector<128x384xbf16>, vector<54x384xf32> -> vector<54x384xf32>
    %c0_16 = arith.constant 0 : index
    %c0_17 = arith.constant 0 : index
    %c0_18 = arith.constant 0 : index
    %34 = vector.load %arg7[%c0_16, %c0_17, %c0_18] : memref<1x1x384xf32, #tpu.memory_space<vmem>>, vector<1x1x384xf32>
    %35 = vector.shape_cast %34 : vector<1x1x384xf32> to vector<1x384xf32>
    %36 = vector.broadcast %35 : vector<1x384xf32> to vector<54x384xf32>
    %37 = arith.addf %33, %36 : vector<54x384xf32>
    %38 = vector.extract_strided_slice %37 {offsets = [0, 0], sizes = [54, 128], strides = [1, 1]} : vector<54x384xf32> to vector<54x128xf32>
    %39 = vector.extract_strided_slice %37 {offsets = [0, 128], sizes = [54, 128], strides = [1, 1]} : vector<54x384xf32> to vector<54x128xf32>
    %40 = vector.extract_strided_slice %37 {offsets = [0, 256], sizes = [54, 128], strides = [1, 1]} : vector<54x384xf32> to vector<54x128xf32>
    %c0_19 = arith.constant 0 : index
    %c0_20 = arith.constant 0 : index
    %41 = vector.load %arg3[%c0_19, %c0_20] : memref<54x54xf32, #tpu.memory_space<vmem>>, vector<54x54xf32>
    %42 = vector.extract_strided_slice %38 {offsets = [0, 0], sizes = [54, 32], strides = [1, 1]} : vector<54x128xf32> to vector<54x32xf32>
    %43 = arith.truncf %42 : vector<54x32xf32> to vector<54x32xbf16>
    %44 = vector.extract_strided_slice %39 {offsets = [0, 0], sizes = [54, 32], strides = [1, 1]} : vector<54x128xf32> to vector<54x32xf32>
    %45 = arith.truncf %44 : vector<54x32xf32> to vector<54x32xbf16>
    %cst_21 = arith.constant dense<0.000000e+00> : vector<54x54xf32>
    %46 = tpu.matmul %43, %45, %cst_21 {dimension_numbers = #tpu.dot_dimension_numbers<[1], [1], [0], [0], [0, 0, 1, 0], [], []>} : vector<54x32xbf16>, vector<54x32xbf16>, vector<54x54xf32> -> vector<54x54xf32>
    %cst_22 = arith.constant 0.176776692 : f32
    %47 = vector.broadcast %cst_22 : f32 to vector<54x54xf32>
    %48 = arith.mulf %46, %47 : vector<54x54xf32>
    %49 = arith.addf %48, %41 : vector<54x54xf32>
    %cst_23 = arith.constant dense<0xFF800000> : vector<54xf32>
    %50 = vector.multi_reduction <maximumf>, %49, %cst_23 [1] : vector<54x54xf32> to vector<54xf32>
    %51 = vector.shape_cast %50 : vector<54xf32> to vector<54x1xf32>
    %52 = vector.broadcast %51 : vector<54x1xf32> to vector<54x54xf32>
    %53 = arith.subf %49, %52 : vector<54x54xf32>
    %54 = math.exp %53 : vector<54x54xf32>
    %cst_24 = arith.constant dense<0.000000e+00> : vector<54xf32>
    %55 = vector.multi_reduction <add>, %54, %cst_24 [1] : vector<54x54xf32> to vector<54xf32>
    %56 = vector.shape_cast %55 : vector<54xf32> to vector<54x1xf32>
    %57 = vector.broadcast %56 : vector<54x1xf32> to vector<54x54xf32>
    %58 = arith.divf %54, %57 : vector<54x54xf32>
    %59 = arith.truncf %58 : vector<54x54xf32> to vector<54x54xbf16>
    %60 = vector.extract_strided_slice %40 {offsets = [0, 0], sizes = [54, 32], strides = [1, 1]} : vector<54x128xf32> to vector<54x32xf32>
    %61 = arith.truncf %60 : vector<54x32xf32> to vector<54x32xbf16>
    %cst_25 = arith.constant dense<0.000000e+00> : vector<54x32xf32>
    %62 = tpu.matmul %59, %61, %cst_25 {dimension_numbers = #tpu.dot_dimension_numbers<[1], [0], [0], [1], [0, 0, 1, 1], [], []>} : vector<54x54xbf16>, vector<54x32xbf16>, vector<54x32xf32> -> vector<54x32xf32>
    %63 = vector.extract_strided_slice %38 {offsets = [0, 32], sizes = [54, 32], strides = [1, 1]} : vector<54x128xf32> to vector<54x32xf32>
    %64 = arith.truncf %63 : vector<54x32xf32> to vector<54x32xbf16>
    %65 = vector.extract_strided_slice %39 {offsets = [0, 32], sizes = [54, 32], strides = [1, 1]} : vector<54x128xf32> to vector<54x32xf32>
    %66 = arith.truncf %65 : vector<54x32xf32> to vector<54x32xbf16>
    %cst_26 = arith.constant dense<0.000000e+00> : vector<54x54xf32>
    %67 = tpu.matmul %64, %66, %cst_26 {dimension_numbers = #tpu.dot_dimension_numbers<[1], [1], [0], [0], [0, 0, 1, 0], [], []>} : vector<54x32xbf16>, vector<54x32xbf16>, vector<54x54xf32> -> vector<54x54xf32>
    %cst_27 = arith.constant 0.176776692 : f32
    %68 = vector.broadcast %cst_27 : f32 to vector<54x54xf32>
    %69 = arith.mulf %67, %68 : vector<54x54xf32>
    %70 = arith.addf %69, %41 : vector<54x54xf32>
    %cst_28 = arith.constant dense<0xFF800000> : vector<54xf32>
    %71 = vector.multi_reduction <maximumf>, %70, %cst_28 [1] : vector<54x54xf32> to vector<54xf32>
    %72 = vector.shape_cast %71 : vector<54xf32> to vector<54x1xf32>
    %73 = vector.broadcast %72 : vector<54x1xf32> to vector<54x54xf32>
    %74 = arith.subf %70, %73 : vector<54x54xf32>
    %75 = math.exp %74 : vector<54x54xf32>
    %cst_29 = arith.constant dense<0.000000e+00> : vector<54xf32>
    %76 = vector.multi_reduction <add>, %75, %cst_29 [1] : vector<54x54xf32> to vector<54xf32>
    %77 = vector.shape_cast %76 : vector<54xf32> to vector<54x1xf32>
    %78 = vector.broadcast %77 : vector<54x1xf32> to vector<54x54xf32>
    %79 = arith.divf %75, %78 : vector<54x54xf32>
    %80 = arith.truncf %79 : vector<54x54xf32> to vector<54x54xbf16>
    %81 = vector.extract_strided_slice %40 {offsets = [0, 32], sizes = [54, 32], strides = [1, 1]} : vector<54x128xf32> to vector<54x32xf32>
    %82 = arith.truncf %81 : vector<54x32xf32> to vector<54x32xbf16>
    %cst_30 = arith.constant dense<0.000000e+00> : vector<54x32xf32>
    %83 = tpu.matmul %80, %82, %cst_30 {dimension_numbers = #tpu.dot_dimension_numbers<[1], [0], [0], [1], [0, 0, 1, 1], [], []>} : vector<54x54xbf16>, vector<54x32xbf16>, vector<54x32xf32> -> vector<54x32xf32>
    %84 = vector.extract_strided_slice %38 {offsets = [0, 64], sizes = [54, 32], strides = [1, 1]} : vector<54x128xf32> to vector<54x32xf32>
    %85 = arith.truncf %84 : vector<54x32xf32> to vector<54x32xbf16>
    %86 = vector.extract_strided_slice %39 {offsets = [0, 64], sizes = [54, 32], strides = [1, 1]} : vector<54x128xf32> to vector<54x32xf32>
    %87 = arith.truncf %86 : vector<54x32xf32> to vector<54x32xbf16>
    %cst_31 = arith.constant dense<0.000000e+00> : vector<54x54xf32>
    %88 = tpu.matmul %85, %87, %cst_31 {dimension_numbers = #tpu.dot_dimension_numbers<[1], [1], [0], [0], [0, 0, 1, 0], [], []>} : vector<54x32xbf16>, vector<54x32xbf16>, vector<54x54xf32> -> vector<54x54xf32>
    %cst_32 = arith.constant 0.176776692 : f32
    %89 = vector.broadcast %cst_32 : f32 to vector<54x54xf32>
    %90 = arith.mulf %88, %89 : vector<54x54xf32>
    %91 = arith.addf %90, %41 : vector<54x54xf32>
    %cst_33 = arith.constant dense<0xFF800000> : vector<54xf32>
    %92 = vector.multi_reduction <maximumf>, %91, %cst_33 [1] : vector<54x54xf32> to vector<54xf32>
    %93 = vector.shape_cast %92 : vector<54xf32> to vector<54x1xf32>
    %94 = vector.broadcast %93 : vector<54x1xf32> to vector<54x54xf32>
    %95 = arith.subf %91, %94 : vector<54x54xf32>
    %96 = math.exp %95 : vector<54x54xf32>
    %cst_34 = arith.constant dense<0.000000e+00> : vector<54xf32>
    %97 = vector.multi_reduction <add>, %96, %cst_34 [1] : vector<54x54xf32> to vector<54xf32>
    %98 = vector.shape_cast %97 : vector<54xf32> to vector<54x1xf32>
    %99 = vector.broadcast %98 : vector<54x1xf32> to vector<54x54xf32>
    %100 = arith.divf %96, %99 : vector<54x54xf32>
    %101 = arith.truncf %100 : vector<54x54xf32> to vector<54x54xbf16>
    %102 = vector.extract_strided_slice %40 {offsets = [0, 64], sizes = [54, 32], strides = [1, 1]} : vector<54x128xf32> to vector<54x32xf32>
    %103 = arith.truncf %102 : vector<54x32xf32> to vector<54x32xbf16>
    %cst_35 = arith.constant dense<0.000000e+00> : vector<54x32xf32>
    %104 = tpu.matmul %101, %103, %cst_35 {dimension_numbers = #tpu.dot_dimension_numbers<[1], [0], [0], [1], [0, 0, 1, 1], [], []>} : vector<54x54xbf16>, vector<54x32xbf16>, vector<54x32xf32> -> vector<54x32xf32>
    %105 = vector.extract_strided_slice %38 {offsets = [0, 96], sizes = [54, 32], strides = [1, 1]} : vector<54x128xf32> to vector<54x32xf32>
    %106 = arith.truncf %105 : vector<54x32xf32> to vector<54x32xbf16>
    %107 = vector.extract_strided_slice %39 {offsets = [0, 96], sizes = [54, 32], strides = [1, 1]} : vector<54x128xf32> to vector<54x32xf32>
    %108 = arith.truncf %107 : vector<54x32xf32> to vector<54x32xbf16>
    %cst_36 = arith.constant dense<0.000000e+00> : vector<54x54xf32>
    %109 = tpu.matmul %106, %108, %cst_36 {dimension_numbers = #tpu.dot_dimension_numbers<[1], [1], [0], [0], [0, 0, 1, 0], [], []>} : vector<54x32xbf16>, vector<54x32xbf16>, vector<54x54xf32> -> vector<54x54xf32>
    %cst_37 = arith.constant 0.176776692 : f32
    %110 = vector.broadcast %cst_37 : f32 to vector<54x54xf32>
    %111 = arith.mulf %109, %110 : vector<54x54xf32>
    %112 = arith.addf %111, %41 : vector<54x54xf32>
    %cst_38 = arith.constant dense<0xFF800000> : vector<54xf32>
    %113 = vector.multi_reduction <maximumf>, %112, %cst_38 [1] : vector<54x54xf32> to vector<54xf32>
    %114 = vector.shape_cast %113 : vector<54xf32> to vector<54x1xf32>
    %115 = vector.broadcast %114 : vector<54x1xf32> to vector<54x54xf32>
    %116 = arith.subf %112, %115 : vector<54x54xf32>
    %117 = math.exp %116 : vector<54x54xf32>
    %cst_39 = arith.constant dense<0.000000e+00> : vector<54xf32>
    %118 = vector.multi_reduction <add>, %117, %cst_39 [1] : vector<54x54xf32> to vector<54xf32>
    %119 = vector.shape_cast %118 : vector<54xf32> to vector<54x1xf32>
    %120 = vector.broadcast %119 : vector<54x1xf32> to vector<54x54xf32>
    %121 = arith.divf %117, %120 : vector<54x54xf32>
    %122 = arith.truncf %121 : vector<54x54xf32> to vector<54x54xbf16>
    %123 = vector.extract_strided_slice %40 {offsets = [0, 96], sizes = [54, 32], strides = [1, 1]} : vector<54x128xf32> to vector<54x32xf32>
    %124 = arith.truncf %123 : vector<54x32xf32> to vector<54x32xbf16>
    %cst_40 = arith.constant dense<0.000000e+00> : vector<54x32xf32>
    %125 = tpu.matmul %122, %124, %cst_40 {dimension_numbers = #tpu.dot_dimension_numbers<[1], [0], [0], [1], [0, 0, 1, 1], [], []>} : vector<54x54xbf16>, vector<54x32xbf16>, vector<54x32xf32> -> vector<54x32xf32>
    %126 = tpu.concatenate %62, %83, %104, %125 in 1 : vector<54x32xf32>, vector<54x32xf32>, vector<54x32xf32>, vector<54x32xf32> -> vector<54x128xf32>
    %127 = arith.truncf %126 : vector<54x128xf32> to vector<54x128xbf16>
    %c0_41 = arith.constant 0 : index
    %c0_42 = arith.constant 0 : index
    %c0_43 = arith.constant 0 : index
    %128 = vector.load %arg8[%c0_41, %c0_42, %c0_43] : memref<1x128x128xbf16, #tpu.memory_space<vmem>>, vector<1x128x128xbf16>
    %129 = vector.shape_cast %128 : vector<1x128x128xbf16> to vector<128x128xbf16>
    %cst_44 = arith.constant dense<0.000000e+00> : vector<54x128xf32>
    %130 = tpu.matmul %127, %129, %cst_44 {dimension_numbers = #tpu.dot_dimension_numbers<[1], [0], [0], [1], [0, 0, 1, 1], [], []>} : vector<54x128xbf16>, vector<128x128xbf16>, vector<54x128xf32> -> vector<54x128xf32>
    %131 = arith.addf %3, %130 : vector<54x128xf32>
    %c0_45 = arith.constant 0 : index
    %c0_46 = arith.constant 0 : index
    %c0_47 = arith.constant 0 : index
    %132 = vector.load %arg9[%c0_45, %c0_46, %c0_47] : memref<1x1x128xf32, #tpu.memory_space<vmem>>, vector<1x1x128xf32>
    %133 = vector.shape_cast %132 : vector<1x1x128xf32> to vector<1x128xf32>
    %134 = vector.broadcast %133 : vector<1x128xf32> to vector<54x128xf32>
    %135 = arith.addf %131, %134 : vector<54x128xf32>
    %c0_48 = arith.constant 0 : index
    %c0_49 = arith.constant 0 : index
    %c0_50 = arith.constant 0 : index
    %136 = vector.load %arg10[%c0_48, %c0_49, %c0_50] : memref<1x1x128xf32, #tpu.memory_space<vmem>>, vector<1x1x128xf32>
    %137 = vector.shape_cast %136 : vector<1x1x128xf32> to vector<1x128xf32>
    %c0_51 = arith.constant 0 : index
    %c0_52 = arith.constant 0 : index
    %c0_53 = arith.constant 0 : index
    %138 = vector.load %arg11[%c0_51, %c0_52, %c0_53] : memref<1x1x128xf32, #tpu.memory_space<vmem>>, vector<1x1x128xf32>
    %139 = vector.shape_cast %138 : vector<1x1x128xf32> to vector<1x128xf32>
    %cst_54 = arith.constant dense<0.000000e+00> : vector<54xf32>
    %140 = vector.multi_reduction <add>, %135, %cst_54 [1] : vector<54x128xf32> to vector<54xf32>
    %141 = vector.shape_cast %140 : vector<54xf32> to vector<54x1xf32>
    %cst_55 = arith.constant 1.280000e+02 : f32
    %142 = vector.broadcast %cst_55 : f32 to vector<54x1xf32>
    %143 = arith.divf %141, %142 : vector<54x1xf32>
    %144 = vector.broadcast %143 : vector<54x1xf32> to vector<54x128xf32>
    %145 = arith.subf %135, %144 : vector<54x128xf32>
    %146 = arith.mulf %145, %145 : vector<54x128xf32>
    %cst_56 = arith.constant dense<0.000000e+00> : vector<54xf32>
    %147 = vector.multi_reduction <add>, %146, %cst_56 [1] : vector<54x128xf32> to vector<54xf32>
    %148 = vector.shape_cast %147 : vector<54xf32> to vector<54x1xf32>
    %cst_57 = arith.constant 1.280000e+02 : f32
    %149 = vector.broadcast %cst_57 : f32 to vector<54x1xf32>
    %150 = arith.divf %148, %149 : vector<54x1xf32>
    %151 = vector.broadcast %143 : vector<54x1xf32> to vector<54x128xf32>
    %152 = arith.subf %135, %151 : vector<54x128xf32>
    %cst_58 = arith.constant 9.99999974E-6 : f32
    %153 = vector.broadcast %cst_58 : f32 to vector<54x1xf32>
    %154 = arith.addf %150, %153 : vector<54x1xf32>
    %155 = math.rsqrt %154 : vector<54x1xf32>
    %156 = vector.broadcast %155 : vector<54x1xf32> to vector<54x128xf32>
    %157 = arith.mulf %152, %156 : vector<54x128xf32>
    %158 = vector.broadcast %137 : vector<1x128xf32> to vector<54x128xf32>
    %159 = arith.mulf %157, %158 : vector<54x128xf32>
    %160 = vector.broadcast %139 : vector<1x128xf32> to vector<54x128xf32>
    %161 = arith.addf %159, %160 : vector<54x128xf32>
    %162 = arith.truncf %161 : vector<54x128xf32> to vector<54x128xbf16>
    %c0_59 = arith.constant 0 : index
    %c0_60 = arith.constant 0 : index
    %c0_61 = arith.constant 0 : index
    %163 = vector.load %arg12[%c0_59, %c0_60, %c0_61] : memref<1x128x512xbf16, #tpu.memory_space<vmem>>, vector<1x128x512xbf16>
    %164 = vector.shape_cast %163 : vector<1x128x512xbf16> to vector<128x512xbf16>
    %cst_62 = arith.constant dense<0.000000e+00> : vector<54x512xf32>
    %165 = tpu.matmul %162, %164, %cst_62 {dimension_numbers = #tpu.dot_dimension_numbers<[1], [0], [0], [1], [0, 0, 1, 1], [], []>} : vector<54x128xbf16>, vector<128x512xbf16>, vector<54x512xf32> -> vector<54x512xf32>
    %c0_63 = arith.constant 0 : index
    %c0_64 = arith.constant 0 : index
    %c0_65 = arith.constant 0 : index
    %166 = vector.load %arg13[%c0_63, %c0_64, %c0_65] : memref<1x1x512xf32, #tpu.memory_space<vmem>>, vector<1x1x512xf32>
    %167 = vector.shape_cast %166 : vector<1x1x512xf32> to vector<1x512xf32>
    %168 = vector.broadcast %167 : vector<1x512xf32> to vector<54x512xf32>
    %169 = arith.addf %165, %168 : vector<54x512xf32>
    %cst_66 = arith.constant 1.702000e+00 : f32
    %170 = vector.broadcast %cst_66 : f32 to vector<54x512xf32>
    %171 = arith.mulf %170, %169 : vector<54x512xf32>
    %172 = arith.negf %171 : vector<54x512xf32>
    %173 = math.exp %172 : vector<54x512xf32>
    %cst_67 = arith.constant 1.000000e+00 : f32
    %174 = vector.broadcast %cst_67 : f32 to vector<54x512xf32>
    %175 = arith.addf %174, %173 : vector<54x512xf32>
    %176 = arith.divf %174, %175 : vector<54x512xf32>
    %177 = arith.mulf %169, %176 : vector<54x512xf32>
    %178 = arith.truncf %177 : vector<54x512xf32> to vector<54x512xbf16>
    %c0_68 = arith.constant 0 : index
    %c0_69 = arith.constant 0 : index
    %c0_70 = arith.constant 0 : index
    %179 = vector.load %arg14[%c0_68, %c0_69, %c0_70] : memref<1x512x128xbf16, #tpu.memory_space<vmem>>, vector<1x512x128xbf16>
    %180 = vector.shape_cast %179 : vector<1x512x128xbf16> to vector<512x128xbf16>
    %cst_71 = arith.constant dense<0.000000e+00> : vector<54x128xf32>
    %181 = tpu.matmul %178, %180, %cst_71 {dimension_numbers = #tpu.dot_dimension_numbers<[1], [0], [0], [1], [0, 0, 1, 1], [], []>} : vector<54x512xbf16>, vector<512x128xbf16>, vector<54x128xf32> -> vector<54x128xf32>
    %182 = arith.addf %135, %181 : vector<54x128xf32>
    %c0_72 = arith.constant 0 : index
    %c0_73 = arith.constant 0 : index
    %c0_74 = arith.constant 0 : index
    %183 = vector.load %arg15[%c0_72, %c0_73, %c0_74] : memref<1x1x128xf32, #tpu.memory_space<vmem>>, vector<1x1x128xf32>
    %184 = vector.shape_cast %183 : vector<1x1x128xf32> to vector<1x128xf32>
    %185 = vector.broadcast %184 : vector<1x128xf32> to vector<54x128xf32>
    %186 = arith.addf %182, %185 : vector<54x128xf32>
    %c0_75 = arith.constant 0 : index
    %c0_76 = arith.constant 0 : index
    %187 = vector.load %arg20[%c0_75, %c0_76] : memref<54x128xf32, #tpu.memory_space<vmem>>, vector<54x128xf32>
    tpu.vector_store %arg20[%c0_75, %c0_76], %186 {strides = array<i32>} : memref<54x128xf32, #tpu.memory_space<vmem>>, vector<54x128xf32>,
    %c2_i32 = arith.constant 2 : i32
    %188 = arith.cmpi eq, %arg1, %c2_i32 : i32
    %189 = arith.extui %188 : i1 to i32
    %c0_i32_77 = arith.constant 0 : i32
    %190 = arith.cmpi ne, %189, %c0_i32_77 : i32
    scf.if %190 {
      %191 = vector.extract_strided_slice %186 {offsets = [50, 0], sizes = [4, 128], strides = [1, 1]} : vector<54x128xf32> to vector<4x128xf32>
      %c0_78 = arith.constant 0 : index
      %c0_79 = arith.constant 0 : index
      %192 = vector.load %arg16[%c0_78, %c0_79] : memref<1x128xf32, #tpu.memory_space<vmem>>, vector<1x128xf32>
      %c0_80 = arith.constant 0 : index
      %c0_81 = arith.constant 0 : index
      %193 = vector.load %arg17[%c0_80, %c0_81] : memref<1x128xf32, #tpu.memory_space<vmem>>, vector<1x128xf32>
      %cst_82 = arith.constant dense<0.000000e+00> : vector<4xf32>
      %194 = vector.multi_reduction <add>, %191, %cst_82 [1] : vector<4x128xf32> to vector<4xf32>
      %195 = vector.shape_cast %194 : vector<4xf32> to vector<4x1xf32>
      %cst_83 = arith.constant 1.280000e+02 : f32
      %196 = vector.broadcast %cst_83 : f32 to vector<4x1xf32>
      %197 = arith.divf %195, %196 : vector<4x1xf32>
      %198 = vector.broadcast %197 : vector<4x1xf32> to vector<4x128xf32>
      %199 = arith.subf %191, %198 : vector<4x128xf32>
      %200 = arith.mulf %199, %199 : vector<4x128xf32>
      %cst_84 = arith.constant dense<0.000000e+00> : vector<4xf32>
      %201 = vector.multi_reduction <add>, %200, %cst_84 [1] : vector<4x128xf32> to vector<4xf32>
      %202 = vector.shape_cast %201 : vector<4xf32> to vector<4x1xf32>
      %cst_85 = arith.constant 1.280000e+02 : f32
      %203 = vector.broadcast %cst_85 : f32 to vector<4x1xf32>
      %204 = arith.divf %202, %203 : vector<4x1xf32>
      %205 = vector.broadcast %197 : vector<4x1xf32> to vector<4x128xf32>
      %206 = arith.subf %191, %205 : vector<4x128xf32>
      %cst_86 = arith.constant 9.99999974E-6 : f32
      %207 = vector.broadcast %cst_86 : f32 to vector<4x1xf32>
      %208 = arith.addf %204, %207 : vector<4x1xf32>
      %209 = math.rsqrt %208 : vector<4x1xf32>
      %210 = vector.broadcast %209 : vector<4x1xf32> to vector<4x128xf32>
      %211 = arith.mulf %206, %210 : vector<4x128xf32>
      %212 = vector.broadcast %192 : vector<1x128xf32> to vector<4x128xf32>
      %213 = arith.mulf %211, %212 : vector<4x128xf32>
      %214 = vector.broadcast %193 : vector<1x128xf32> to vector<4x128xf32>
      %215 = arith.addf %213, %214 : vector<4x128xf32>
      %216 = arith.truncf %215 : vector<4x128xf32> to vector<4x128xbf16>
      %c0_87 = arith.constant 0 : index
      %c0_88 = arith.constant 0 : index
      %217 = vector.load %arg18[%c0_87, %c0_88] : memref<128x128xbf16, #tpu.memory_space<vmem>>, vector<128x128xbf16>
      %cst_89 = arith.constant dense<0.000000e+00> : vector<4x128xf32>
      %218 = tpu.matmul %216, %217, %cst_89 {dimension_numbers = #tpu.dot_dimension_numbers<[1], [0], [0], [1], [0, 0, 1, 1], [], []>} : vector<4x128xbf16>, vector<128x128xbf16>, vector<4x128xf32> -> vector<4x128xf32>
      %c0_90 = arith.constant 0 : index
      %c0_91 = arith.constant 0 : index
      %c0_92 = arith.constant 0 : index
      %219 = vector.load %arg19[%c0_90, %c0_91, %c0_92] : memref<1x4x128xf32, #tpu.memory_space<vmem>>, vector<1x4x128xf32>
      %220 = vector.shape_cast %219 : vector<1x4x128xf32> to vector<4x128xf32>
      %221 = vector.shape_cast %218 : vector<4x128xf32> to vector<1x4x128xf32>
      tpu.vector_store %arg19[%c0_90, %c0_91, %c0_92], %221 {strides = array<i32>} : memref<1x4x128xf32, #tpu.memory_space<vmem>>, vector<1x4x128xf32>,
    } else {
    }
    return
  }
  func.func @transform_0(%arg0: i32, %arg1: i32) -> (i32, i32, i32) {
    %c0_i32 = arith.constant 0 : i32
    %c0_i32_0 = arith.constant 0 : i32
    %c0_i32_1 = arith.constant 0 : i32
    return %arg0, %c0_i32, %c0_i32_0 : i32, i32, i32
  }
  func.func @transform_1(%arg0: i32, %arg1: i32) -> (i32, i32) {
    %c0_i32 = arith.constant 0 : i32
    %c0_i32_0 = arith.constant 0 : i32
    %c0_i32_1 = arith.constant 0 : i32
    return %c0_i32, %c0_i32_0 : i32, i32
  }
  func.func @transform_2(%arg0: i32, %arg1: i32) -> (i32, i32, i32) {
    %c0_i32 = arith.constant 0 : i32
    %c0_i32_0 = arith.constant 0 : i32
    %c0_i32_1 = arith.constant 0 : i32
    return %arg1, %c0_i32, %c0_i32_0 : i32, i32, i32
  }
  func.func @transform_3(%arg0: i32, %arg1: i32) -> (i32, i32, i32) {
    %c0_i32 = arith.constant 0 : i32
    %c0_i32_0 = arith.constant 0 : i32
    %c0_i32_1 = arith.constant 0 : i32
    return %arg1, %c0_i32, %c0_i32_0 : i32, i32, i32
  }
  func.func @transform_4(%arg0: i32, %arg1: i32) -> (i32, i32, i32) {
    %c0_i32 = arith.constant 0 : i32
    %c0_i32_0 = arith.constant 0 : i32
    %c0_i32_1 = arith.constant 0 : i32
    return %arg1, %c0_i32, %c0_i32_0 : i32, i32, i32
  }
  func.func @transform_5(%arg0: i32, %arg1: i32) -> (i32, i32, i32) {
    %c0_i32 = arith.constant 0 : i32
    %c0_i32_0 = arith.constant 0 : i32
    %c0_i32_1 = arith.constant 0 : i32
    return %arg1, %c0_i32, %c0_i32_0 : i32, i32, i32
  }
  func.func @transform_6(%arg0: i32, %arg1: i32) -> (i32, i32, i32) {
    %c0_i32 = arith.constant 0 : i32
    %c0_i32_0 = arith.constant 0 : i32
    %c0_i32_1 = arith.constant 0 : i32
    return %arg1, %c0_i32, %c0_i32_0 : i32, i32, i32
  }
  func.func @transform_7(%arg0: i32, %arg1: i32) -> (i32, i32, i32) {
    %c0_i32 = arith.constant 0 : i32
    %c0_i32_0 = arith.constant 0 : i32
    %c0_i32_1 = arith.constant 0 : i32
    return %arg1, %c0_i32, %c0_i32_0 : i32, i32, i32
  }
  func.func @transform_8(%arg0: i32, %arg1: i32) -> (i32, i32, i32) {
    %c0_i32 = arith.constant 0 : i32
    %c0_i32_0 = arith.constant 0 : i32
    %c0_i32_1 = arith.constant 0 : i32
    return %arg1, %c0_i32, %c0_i32_0 : i32, i32, i32
  }
  func.func @transform_9(%arg0: i32, %arg1: i32) -> (i32, i32, i32) {
    %c0_i32 = arith.constant 0 : i32
    %c0_i32_0 = arith.constant 0 : i32
    %c0_i32_1 = arith.constant 0 : i32
    return %arg1, %c0_i32, %c0_i32_0 : i32, i32, i32
  }
  func.func @transform_10(%arg0: i32, %arg1: i32) -> (i32, i32, i32) {
    %c0_i32 = arith.constant 0 : i32
    %c0_i32_0 = arith.constant 0 : i32
    %c0_i32_1 = arith.constant 0 : i32
    return %arg1, %c0_i32, %c0_i32_0 : i32, i32, i32
  }
  func.func @transform_11(%arg0: i32, %arg1: i32) -> (i32, i32, i32) {
    %c0_i32 = arith.constant 0 : i32
    %c0_i32_0 = arith.constant 0 : i32
    %c0_i32_1 = arith.constant 0 : i32
    return %arg1, %c0_i32, %c0_i32_0 : i32, i32, i32
  }
  func.func @transform_12(%arg0: i32, %arg1: i32) -> (i32, i32, i32) {
    %c0_i32 = arith.constant 0 : i32
    %c0_i32_0 = arith.constant 0 : i32
    %c0_i32_1 = arith.constant 0 : i32
    return %arg1, %c0_i32, %c0_i32_0 : i32, i32, i32
  }
  func.func @transform_13(%arg0: i32, %arg1: i32) -> (i32, i32, i32) {
    %c0_i32 = arith.constant 0 : i32
    %c0_i32_0 = arith.constant 0 : i32
    %c0_i32_1 = arith.constant 0 : i32
    return %arg1, %c0_i32, %c0_i32_0 : i32, i32, i32
  }
  func.func @transform_14(%arg0: i32, %arg1: i32) -> (i32, i32) {
    %c0_i32 = arith.constant 0 : i32
    %c0_i32_0 = arith.constant 0 : i32
    %c0_i32_1 = arith.constant 0 : i32
    return %c0_i32, %c0_i32_0 : i32, i32
  }
  func.func @transform_15(%arg0: i32, %arg1: i32) -> (i32, i32) {
    %c0_i32 = arith.constant 0 : i32
    %c0_i32_0 = arith.constant 0 : i32
    %c0_i32_1 = arith.constant 0 : i32
    return %c0_i32, %c0_i32_0 : i32, i32
  }
  func.func @transform_16(%arg0: i32, %arg1: i32) -> (i32, i32) {
    %c0_i32 = arith.constant 0 : i32
    %c0_i32_0 = arith.constant 0 : i32
    %c0_i32_1 = arith.constant 0 : i32
    return %c0_i32, %c0_i32_0 : i32, i32
  }
  func.func @transform_17(%arg0: i32, %arg1: i32) -> (i32, i32, i32) {
    %c0_i32 = arith.constant 0 : i32
    %c0_i32_0 = arith.constant 0 : i32
    %c0_i32_1 = arith.constant 0 : i32
    return %arg0, %c0_i32, %c0_i32_0 : i32, i32, i32
  }
}

</mosaic_0001>

<bundles_post_ra>
// kernel: forward.2
= control target key start
LH: loop header
LB: loop body
LE: loop exit
PB: predicated region body
PF: predicated region fallthrough
CT: control target
= control target key end

     0   :  { %s4353_s18 = smov 0   ;;  %s5096_s0 = inlined_call_operand.vmem [shape: bf16[2,50,3072], index: 0, kind: input, shape index: {}]   ;;  %s5097_s1 = inlined_call_operand.vmem [shape: bf16[3072,128], index: 1, kind: input, shape index: {}]   ;;  %s5098_s2 = inlined_call_operand.vmem [shape: f32[50,128], index: 2, kind: input, shape index: {}]   ;;  %s5099_s3 = inlined_call_operand.vmem [shape: f32[1,128], index: 3, kind: input, shape index: {}]   ;;  %s5100_s4 = inlined_call_operand.vmem [shape: f32[1,128], index: 4, kind: input, shape index: {}]   ;;  %s5101_s5 = inlined_call_operand.vmem [shape: bf16[2,50,128], index: 5, kind: output, shape index: {}]  }
   0x1 LB: > { %s3265_s19 = sadd.s32 4294967295, %s4321_s18   ;;  %p3269_p0 = scmp.ge.s32.totalorder %s4321_s18, 1  ;;  %s4321_s18 = sphi %s4353_s18, %s15_s18  }
   0x2   : > { %p187_p1 = scmp.lt.s32.totalorder %s4321_s18, 3 }
   0x4   : > { %p188_p2 = pnand %p3269_p0, %p187_p1 }
   0x5   : > { %v4085_v0 = vld [vmem:[%s5097_s1 + $0x40] sm:$0xff] (!%p188_p2)   ;;  %v4089_v4 = vld [vmem:[%s5097_s1 + $0x48] sm:$0xff] (!%p188_p2)   ;;  %v4093_v8 = vld [vmem:[%s5097_s1 + $0x50] sm:$0xff] (!%p188_p2)   ;;  %p215_p3 = scmp.lt.s32.totalorder (!%p188_p2), %s3265_s19, 1  ;;  %vm3079_vm0 = vcmask (!%p188_p2), 1041408  }
   0x6   : > { %191 = sbr.rel (%p188_p2) target bundleno = 761 (0x2f9), region = 40  ;;  %v4086_v1 = vld [vmem:[%s5097_s1 + $0xc0] sm:$0xff] (!%p188_p2)   ;;  %3595 = vmatprep.subr.bf16.mxu0 (!%p188_p2), %v4085_v0  ;;  %v4090_v5 = vld [vmem:[%s5097_s1 + $0xc8] sm:$0xff] (!%p188_p2)   ;;  %v4094_v9 = vld [vmem:[%s5097_s1 + $0xd0] sm:$0xff] (!%p188_p2)  }
   0x7   : > { %v4087_v2 = vld [vmem:[%s5097_s1] sm:$0xff] (!%p188_p2)   ;;  %3635 = vmatprep.subr.bf16.mxu1 (!%p188_p2), %v4086_v1  ;;  %v4091_v6 = vld [vmem:[%s5097_s1 + $0x8] sm:$0xff] (!%p188_p2)   ;;  %v4095_v10 = vld [vmem:[%s5097_s1 + $0x10] sm:$0xff] (!%p188_p2)  }
   0x8   : > { %v4088_v3 = vld [vmem:[%s5097_s1 + $0x80] sm:$0xff] (!%p188_p2)   ;;  %3596 = vmatpush3.bf16.msra.mxu0 (!%p188_p2), %v4087_v2  ;;  %v4092_v7 = vld [vmem:[%s5097_s1 + $0x88] sm:$0xff] (!%p188_p2)   ;;  %v4096_v11 = vld [vmem:[%s5097_s1 + $0x90] sm:$0xff] (!%p188_p2)  }
   0x9   : > { %3636 = vmatpush3.bf16.msra.mxu1 (!%p188_p2), %v4088_v3  ;;  %3597 = vmatprep.subr.bf16.mxu0 (!%p188_p2), %v4089_v4  ;;  %v4097_v12 = vld [vmem:[%s5097_s1 + $0x58] sm:$0xff] (!%p188_p2)   ;;  %v4101_v16 = vld [vmem:[%s5097_s1 + $0x60] sm:$0xff] (!%p188_p2)   ;;  %v4105_v20 = vld [vmem:[%s5097_s1 + $0x68] sm:$0xff] (!%p188_p2)  }
   0xa   : > { %3637 = vmatprep.subr.bf16.mxu1 (!%p188_p2), %v4090_v5  ;;  %v4098_v13 = vld [vmem:[%s5097_s1 + $0xd8] sm:$0xff] (!%p188_p2)   ;;  %v4102_v17 = vld [vmem:[%s5097_s1 + $0xe0] sm:$0xff] (!%p188_p2)   ;;  %v4106_v21 = vld [vmem:[%s5097_s1 + $0xe8] sm:$0xff] (!%p188_p2)  }
   0xb   : > { %v4099_v14 = vld [vmem:[%s5097_s1 + $0x18] sm:$0xff] (!%p188_p2)   ;;  %v4103_v18 = vld [vmem:[%s5097_s1 + $0x20] sm:$0xff] (!%p188_p2)   ;;  %v4107_v22 = vld [vmem:[%s5097_s1 + $0x28] sm:$0xff] (!%p188_p2)  }
   0xc   : > { %3598 = vmatpush3.bf16.msra.mxu0 (!%p188_p2), %v4091_v6  ;;  %v4100_v15 = vld [vmem:[%s5097_s1 + $0x98] sm:$0xff] (!%p188_p2)   ;;  %v4104_v19 = vld [vmem:[%s5097_s1 + $0xa0] sm:$0xff] (!%p188_p2)   ;;  %v4108_v23 = vld [vmem:[%s5097_s1 + $0xa8] sm:$0xff] (!%p188_p2)  }
   0xd   : > { %3638 = vmatpush3.bf16.msra.mxu1 %v4092_v7  ;;  %3599 = vmatprep.subr.bf16.mxu0 %v4093_v8  ;;  %s5103_s19 = smov (!%p215_p3, %s3265_s19), 1  ;;  %v4109_v24 = vld [vmem:[%s5097_s1 + $0x70] sm:$0xff]   ;;  %v4113_v28 = vld [vmem:[%s5097_s1 + $0x78] sm:$0xff]   ;;  %v4117_v40 = vld [vmem:[%s5097_s1 + $0x140] sm:$0xff]  }
   0xe   : > { %3639 = vmatprep.subr.bf16.mxu1 %v4094_v9  ;;  %v4110_v25 = vld [vmem:[%s5097_s1 + $0xf0] sm:$0xff]   ;;  %s4075_s26 = smul.u32 672, %s5103_s19  ;;  %v4114_v29 = vld [vmem:[%s5097_s1 + $0xf8] sm:$0xff]   ;;  %v4118_v41 = vld [vmem:[%s5097_s1 + $0x1c0] sm:$0xff]  }
   0xf   : > { %v4111_v26 = vld [vmem:[%s5097_s1 + $0x30] sm:$0xff]   ;;  %v4115_v30 = vld [vmem:[%s5097_s1 + $0x38] sm:$0xff]   ;;  %v4119_v42 = vld [vmem:[%s5097_s1 + $0x100] sm:$0xff]  }
  0x10   : > { %3600 = vmatpush3.bf16.msra.mxu0 %v4095_v10  ;;  %v4112_v27 = vld [vmem:[%s5097_s1 + $0xb0] sm:$0xff]   ;;  %s4461_s12 = scalar_lea.vmem %s5096_s0, %s4075_s26  ;;  %v4116_v31 = vld [vmem:[%s5097_s1 + $0xb8] sm:$0xff]   ;;  %v4120_v43 = vld [vmem:[%s5097_s1 + $0x180] sm:$0xff]   ;;  %s4076_s26 = smul.u32 28, %s5103_s19 }
  0x11   : > { %3640 = vmatpush3.bf16.msra.mxu1 %v4096_v11  ;;  %3601 = vmatprep.subr.bf16.mxu0 %v4097_v12  ;;  %v226_v32 = vld [vmem:[%s4461_s12] sm:$0xff]  ;;  %v227_v34 = vld [vmem:[%s4461_s12 + $0x8] sm:$0xff]  ;;  %v4125_v56 = vld [vmem:[%s5097_s1 + $0x150] sm:$0xff]  }
  0x12   : > { %3641 = vmatprep.subr.bf16.mxu1 %v4098_v13  ;;  %v238_v33 = vld [vmem:[%s4461_s12 + $0x60] sm:$0xff]  ;;  %v239_v37 = vld [vmem:[%s4461_s12 + $0x68] sm:$0xff]  ;;  %v4126_v57 = vld [vmem:[%s5097_s1 + $0x1d0] sm:$0xff]   ;;  %s5084_s29 = scalar_lea.vmem %s5101_s5, %s4076_s26 }
  0x13   : > { %v3272_v35 = vcombine.low %v226_v32, %v238_v33  ;;  %v3273_v36 = vcombine.high %v226_v32, %v238_v33  ;;  %v3274_v38 = vcombine.low %v227_v34, %v239_v37  ;;  %v3275_v39 = vcombine.high %v227_v34, %v239_v37  ;;  %v4121_v44 = vld [vmem:[%s5097_s1 + $0x148] sm:$0xff]   ;;  %v250_v48 = vld [vmem:[%s4461_s12 + $0xc0] sm:$0xff]  ;;  %v4127_v58 = vld [vmem:[%s5097_s1 + $0x110] sm:$0xff]  }
  0x14   : > { %3602 = vmatpush3.bf16.msra.mxu0 %v4099_v14  ;;  %v4122_v45 = vld [vmem:[%s5097_s1 + $0x1c8] sm:$0xff]   ;;  %v262_v49 = vld [vmem:[%s4461_s12 + $0x120] sm:$0xff]  ;;  %v4128_v59 = vld [vmem:[%s5097_s1 + $0x190] sm:$0xff]  }
  0x15   : > { %3642 = vmatpush3.bf16.msra.mxu1 %v4100_v15  ;;  %3603 = vmatprep.subr.bf16.mxu0 %v4101_v16  ;;  %v4123_v46 = vld [vmem:[%s5097_s1 + $0x108] sm:$0xff]   ;;  %v3297_v50 = vcombine.high %v250_v48, %v262_v49  ;;  %v3296_v53 = vcombine.low %v250_v48, %v262_v49  ;;  %v4129_v60 = vld [vmem:[%s5097_s1 + $0x158] sm:$0xff]   ;;  %v274_v0 = vld [vmem:[%s4461_s12 + $0x180] sm:$0xff] }
  0x16   : > { %3643 = vmatprep.subr.bf16.mxu1 %v4102_v17  ;;  %2329 = vmatprep.mubr.bf16.mxu0 %v3273_v36  ;;  %v4124_v47 = vld [vmem:[%s5097_s1 + $0x188] sm:$0xff]   ;;  %v4130_v61 = vld [vmem:[%s5097_s1 + $0x1d8] sm:$0xff]   ;;  %v286_v1 = vld [vmem:[%s4461_s12 + $0x1e0] sm:$0xff] }
  0x17   : > { %2393 = vmatprep.mubr.bf16.mxu1 %v3275_v39  ;;  %v251_v51 = vld [vmem:[%s4461_s12 + $0xc8] sm:$0xff]  ;;  %v4131_v62 = vld [vmem:[%s5097_s1 + $0x118] sm:$0xff]   ;;  %v3321_v4 = vcombine.high %v274_v0, %v286_v1  ;;  %v3320_v6 = vcombine.low %v274_v0, %v286_v1  ;;  %v4133_v8 = vld [vmem:[%s5097_s1 + $0x160] sm:$0xff]  }
  0x18   : > { %3604 = vmatpush3.bf16.msra.mxu0 %v4103_v18  ;;  %v263_v52 = vld [vmem:[%s4461_s12 + $0x128] sm:$0xff]  ;;  %v4132_v63 = vld [vmem:[%s5097_s1 + $0x198] sm:$0xff]   ;;  %v4134_v9 = vld [vmem:[%s5097_s1 + $0x1e0] sm:$0xff]  }
  0x19   : > { %3644 = vmatpush3.bf16.msra.mxu1 %v4104_v19  ;;  %3605 = vmatprep.subr.bf16.mxu0 %v4105_v20  ;;  %v3299_v54 = vcombine.high %v251_v51, %v263_v52  ;;  %v3298_v55 = vcombine.low %v251_v51, %v263_v52  ;;  %v275_v2 = vld [vmem:[%s4461_s12 + $0x188] sm:$0xff]  ;;  %v4135_v10 = vld [vmem:[%s5097_s1 + $0x120] sm:$0xff]   ;;  %v229_v32 = vld [vmem:[%s4461_s12 + $0x18] sm:$0xff] }
  0x1a   : > { %3645 = vmatprep.subr.bf16.mxu1 %v4106_v21  ;;  %v287_v3 = vld [vmem:[%s4461_s12 + $0x1e8] sm:$0xff]  ;;  %v4136_v11 = vld [vmem:[%s5097_s1 + $0x1a0] sm:$0xff]   ;;  %v4145_v21 = vld [vmem:[%s5097_s1 + $0x170] sm:$0xff]  }
  0x1b   : > { %v3323_v5 = vcombine.high %v275_v2, %v287_v3  ;;  %v3322_v7 = vcombine.low %v275_v2, %v287_v3  ;;  %v4137_v12 = vld [vmem:[%s5097_s1 + $0x168] sm:$0xff]   ;;  %v298_v16 = vld [vmem:[%s4461_s12 + $0x240] sm:$0x11]  ;;  %v241_v33 = vld [vmem:[%s4461_s12 + $0x78] sm:$0xff] }
  0x1c   : > { %3606 = vmatpush3.bf16.msra.mxu0 %v4107_v22  ;;  %v4138_v13 = vld [vmem:[%s5097_s1 + $0x1e8] sm:$0xff]   ;;  %v3345_v18 = vcombine.high %v298_v16, %v298_v16  ;;  %v3344_v20 = vcombine.low %v298_v16, %v298_v16  ;;  %v3278_v36 = vcombine.low %v229_v32, %v241_v33  ;;  %v4153_v37 = vld [vmem:[%s5097_s1 + $0x240] sm:$0xff]   ;;  %v253_v48 = vld [vmem:[%s4461_s12 + $0xd8] sm:$0xff] }
  0x1d   : > { %3646 = vmatpush3.bf16.msra.mxu1 %v4108_v23  ;;  %3607 = vmatprep.subr.bf16.mxu0 %v4109_v24  ;;  %v4139_v14 = vld [vmem:[%s5097_s1 + $0x128] sm:$0xff]   ;;  %v4146_v23 = vld [vmem:[%s5097_s1 + $0x1f0] sm:$0xff]   ;;  %v4154_v39 = vld [vmem:[%s5097_s1 + $0x2c0] sm:$0xff]  }
  0x1e   : > { %3647 = vmatprep.subr.bf16.mxu1 %v4110_v25  ;;  %v4140_v15 = vld [vmem:[%s5097_s1 + $0x1a8] sm:$0xff]   ;;  %v4147_v24 = vld [vmem:[%s5097_s1 + $0x130] sm:$0xff]   ;;  %v277_v1 = vld [vmem:[%s4461_s12 + $0x198] sm:$0xff] }
  0x1f   : > { %v299_v17 = vld [vmem:[%s4461_s12 + $0x248] sm:$0x11]  ;;  %v4148_v25 = vld [vmem:[%s5097_s1 + $0x1b0] sm:$0xff]   ;;  %v289_v2 = vld [vmem:[%s4461_s12 + $0x1f8] sm:$0xff] }
  0x20   : > { %3608 = vmatpush3.bf16.msra.mxu0 %v4111_v26  ;;  %v3347_v19 = vcombine.high %v299_v17, %v299_v17  ;;  %v3346_v22 = vcombine.low %v299_v17, %v299_v17  ;;  %v4149_v26 = vld [vmem:[%s5097_s1 + $0x178] sm:$0xff]  }
  0x21   : > { %3648 = vmatpush3.bf16.msra.mxu1 %v4112_v27  ;;  %3609 = vmatprep.subr.bf16.mxu0 %v4113_v28  ;;  %v4150_v27 = vld [vmem:[%s5097_s1 + $0x1f8] sm:$0xff]  }
  0x22   : > { %3649 = vmatprep.subr.bf16.mxu1 %v4114_v29  ;;  %v4151_v28 = vld [vmem:[%s5097_s1 + $0x138] sm:$0xff]  }
  0x23   : > { %v4152_v29 = vld [vmem:[%s5097_s1 + $0x1b8] sm:$0xff]  }
  0x24   : > { %3610 = vmatpush3.bf16.msra.mxu0 %v4115_v30  ;;  %v228_v30 = vld [vmem:[%s4461_s12 + $0x10] sm:$0xff]  ;;  %v301_v16 = vld [vmem:[%s4461_s12 + $0x258] sm:$0x11] }
  0x25   : > { %3650 = vmatpush3.bf16.msra.mxu1 %v4116_v31  ;;  %3675 = vmatprep.subr.bf16.mxu0 %v4117_v40  ;;  %v240_v31 = vld [vmem:[%s4461_s12 + $0x70] sm:$0xff]  ;;  %v4155_v40 = vld [vmem:[%s5097_s1 + $0x200] sm:$0xff]  }
  0x26   : > { %3715 = vmatprep.subr.bf16.mxu1 %v4118_v41  ;;  %v3276_v34 = vcombine.low %v228_v30, %v240_v31  ;;  %v4156_v41 = vld [vmem:[%s5097_s1 + $0x280] sm:$0xff]  }
  0x27   : > { %2330 = vmatmul.mubr.bf16.vlgmr.msra.gmra.mrb[0].mxu0 %v3272_v35  ;;  %v3277_v35 = vcombine.high %v228_v30, %v240_v31 }
  0x28   : > { %2394 = vmatmul.mubr.bf16.vlgmr.msra.gmra.mrb[0].mxu1 %v3274_v38  ;;  %3676 = vmatpush3.bf16.msra.mxu0 %v4119_v42  ;;  %v3279_v38 = vcombine.high %v229_v32, %v241_v33  ;;  %v4157_v42 = vld [vmem:[%s5097_s1 + $0x248] sm:$0xff]  }
  0x29   : > { %3716 = vmatpush3.bf16.msra.mxu1 %v4120_v43  ;;  %3677 = vmatprep.subr.bf16.mxu0 %v4121_v44  ;;  %v4158_v43 = vld [vmem:[%s5097_s1 + $0x2c8] sm:$0xff]  }
  0x2a   : > { %3717 = vmatprep.subr.bf16.mxu1 %v4122_v45  ;;  %2337 = vmatprep.mubr.bf16.mxu0 %v3297_v50  ;;  %v4159_v44 = vld [vmem:[%s5097_s1 + $0x208] sm:$0xff]   ;;  %v265_v50 = vld [vmem:[%s4461_s12 + $0x138] sm:$0xff] }
  0x2b   : > { %2401 = vmatprep.mubr.bf16.mxu1 %v3299_v54  ;;  %v4160_v45 = vld [vmem:[%s5097_s1 + $0x288] sm:$0xff]   ;;  %v3303_v52 = vcombine.high %v253_v48, %v265_v50  ;;  %v4161_v54 = vld [vmem:[%s5097_s1 + $0x250] sm:$0xff]  }
  0x2c   : > { %3678 = vmatpush3.bf16.msra.mxu0 %v4123_v46  ;;  %v252_v46 = vld [vmem:[%s4461_s12 + $0xd0] sm:$0xff]  ;;  %v231_v32 = vld [vmem:[%s4461_s12 + $0x28] sm:$0xff] }
  0x2d   : > { %3718 = vmatpush3.bf16.msra.mxu1 %v4124_v47  ;;  %3679 = vmatprep.subr.bf16.mxu0 %v4125_v56  ;;  %v264_v47 = vld [vmem:[%s4461_s12 + $0x130] sm:$0xff]  ;;  %v243_v33 = vld [vmem:[%s4461_s12 + $0x88] sm:$0xff] }
  0x2e   : > { %3719 = vmatprep.subr.bf16.mxu1 %v4126_v57  ;;  %v3301_v49 = vcombine.high %v252_v46, %v264_v47  ;;  %v3300_v51 = vcombine.low %v252_v46, %v264_v47  ;;  %v4163_v56 = vld [vmem:[%s5097_s1 + $0x210] sm:$0xff]   ;;  %v255_v46 = vld [vmem:[%s4461_s12 + $0xe8] sm:$0xff] }
  0x2f   : > { %2338 = vmatmul.mubr.bf16.gmra.mrb[4].mxu0 %v3296_v53  ;;  %v3302_v53 = vcombine.low %v253_v48, %v265_v50  ;;  %v4164_v57 = vld [vmem:[%s5097_s1 + $0x290] sm:$0xff]   ;;  %v267_v47 = vld [vmem:[%s4461_s12 + $0x148] sm:$0xff] }
  0x30   : > { %2402 = vmatmul.mubr.bf16.gmra.mrb[4].mxu1 %v3298_v55  ;;  %3680 = vmatpush3.bf16.msra.mxu0 %v4127_v58  ;;  %v4162_v55 = vld [vmem:[%s5097_s1 + $0x2d0] sm:$0xff]   ;;  %v4165_v58 = vld [vmem:[%s5097_s1 + $0x258] sm:$0xff]  }
  0x31   : > { %3720 = vmatpush3.bf16.msra.mxu1 %v4128_v59  ;;  %3681 = vmatprep.subr.bf16.mxu0 %v4129_v60  ;;  %v4166_v59 = vld [vmem:[%s5097_s1 + $0x2d8] sm:$0xff]  }
  0x32   : > { %3721 = vmatprep.subr.bf16.mxu1 %v4130_v61  ;;  %2345 = vmatprep.mubr.bf16.mxu0 %v3321_v4  ;;  %v4167_v60 = vld [vmem:[%s5097_s1 + $0x218] sm:$0xff]   ;;  %v3327_v4 = vcombine.high %v277_v1, %v289_v2 }
  0x33   : > { %2409 = vmatprep.mubr.bf16.mxu1 %v3323_v5  ;;  %v4168_v61 = vld [vmem:[%s5097_s1 + $0x298] sm:$0xff]   ;;  %v3326_v5 = vcombine.low %v277_v1, %v289_v2 }
  0x34   : > { %3682 = vmatpush3.bf16.msra.mxu0 %v4131_v62  ;;  %v276_v62 = vld [vmem:[%s4461_s12 + $0x190] sm:$0xff] }
  0x35   : > { %3722 = vmatpush3.bf16.msra.mxu1 %v4132_v63  ;;  %3683 = vmatprep.subr.bf16.mxu0 %v4133_v8  ;;  %v288_v63 = vld [vmem:[%s4461_s12 + $0x1f0] sm:$0xff]  ;;  %v4171_v8 = vld [vmem:[%s5097_s1 + $0x220] sm:$0xff]  }
  0x36   : > { %3723 = vmatprep.subr.bf16.mxu1 %v4134_v9  ;;  %v3325_v0 = vcombine.high %v276_v62, %v288_v63  ;;  %v3324_v3 = vcombine.low %v276_v62, %v288_v63  ;;  %v4172_v9 = vld [vmem:[%s5097_s1 + $0x2a0] sm:$0xff]   ;;  %v279_v62 = vld [vmem:[%s4461_s12 + $0x1a8] sm:$0xff] }
  0x37   : > { %2346 = vmatmul.mubr.bf16.gmra.mrb[8].mxu0 %v3320_v6  ;;  %v4169_v6 = vld [vmem:[%s5097_s1 + $0x260] sm:$0xff]  }
  0x38   : > { %2410 = vmatmul.mubr.bf16.gmra.mrb[8].mxu1 %v3322_v7  ;;  %3684 = vmatpush3.bf16.msra.mxu0 %v4135_v10  ;;  %v4170_v7 = vld [vmem:[%s5097_s1 + $0x2e0] sm:$0xff]   ;;  %v4173_v10 = vld [vmem:[%s5097_s1 + $0x268] sm:$0xff]  }
  0x39   : > { %3724 = vmatpush3.bf16.msra.mxu1 %v4136_v11  ;;  %3685 = vmatprep.subr.bf16.mxu0 %v4137_v12  ;;  %v4174_v11 = vld [vmem:[%s5097_s1 + $0x2e8] sm:$0xff]  }
  0x3a   : > { %3725 = vmatprep.subr.bf16.mxu1 %v4138_v13  ;;  %2353 = vmatprep.mubr.bf16.mxu0 %v3345_v18  ;;  %v4175_v12 = vld [vmem:[%s5097_s1 + $0x228] sm:$0xff]   ;;  %v3351_v18 = vcombine.high %v301_v16, %v301_v16 }
  0x3b   : > { %2417 = vmatprep.mubr.bf16.mxu1 %v3347_v19  ;;  %v4176_v13 = vld [vmem:[%s5097_s1 + $0x2a8] sm:$0xff]   ;;  %v3350_v19 = vcombine.low %v301_v16, %v301_v16 }
  0x3c   : > { %3686 = vmatpush3.bf16.msra.mxu0 %v4139_v14  ;;  %v300_v14 = vld [vmem:[%s4461_s12 + $0x250] sm:$0x11] }
  0x3d   : > { %3726 = vmatpush3.bf16.msra.mxu1 %v4140_v15  ;;  %3687 = vmatprep.subr.bf16.mxu0 %v4145_v21  ;;  %v3349_v15 = vcombine.high %v300_v14, %v300_v14  ;;  %v3348_v17 = vcombine.low %v300_v14, %v300_v14  ;;  %v4182_v21 = vld [vmem:[%s5097_s1 + $0x2f0] sm:$0xff]  }
  0x3e   : > { %3727 = vmatprep.subr.bf16.mxu1 %v4146_v23  ;;  %v4184_v23 = vld [vmem:[%s5097_s1 + $0x2b0] sm:$0xff]  }
  0x3f   : > { %2354 = vmatmul.mubr.bf16.gmra.mrb[12].mxu0 %v3344_v20  ;;  %v4181_v20 = vld [vmem:[%s5097_s1 + $0x270] sm:$0xff]  }
  0x40   : > { %2418 = vmatmul.mubr.bf16.gmra.mrb[12].mxu1 %v3346_v22  ;;  %3688 = vmatpush3.bf16.msra.mxu0 %v4147_v24  ;;  %v4183_v22 = vld [vmem:[%s5097_s1 + $0x230] sm:$0xff]   ;;  %v4185_v24 = vld [vmem:[%s5097_s1 + $0x278] sm:$0xff]  }
  0x41   : > { %3728 = vmatpush3.bf16.msra.mxu1 %v4148_v25  ;;  %3689 = vmatprep.subr.bf16.mxu0 %v4149_v26  ;;  %v4186_v25 = vld [vmem:[%s5097_s1 + $0x2f8] sm:$0xff]  }
  0x42   : > { %3729 = vmatprep.subr.bf16.mxu1 %v4150_v27  ;;  %2457 = vmatprep.mubr.bf16.mxu0 %v3277_v35  ;;  %v4187_v26 = vld [vmem:[%s5097_s1 + $0x238] sm:$0xff]   ;;  %v3283_v35 = vcombine.high %v231_v32, %v243_v33 }
  0x43   : > { %2521 = vmatprep.mubr.bf16.mxu1 %v3279_v38  ;;  %v4188_v27 = vld [vmem:[%s5097_s1 + $0x2b8] sm:$0xff]   ;;  %v4191_v38 = vld [vmem:[%s5097_s1 + $0x300] sm:$0xff]  }
  0x44   : > { %3690 = vmatpush3.bf16.msra.mxu0 %v4151_v28  ;;  %v230_v28 = vld [vmem:[%s4461_s12 + $0x20] sm:$0xff] }
  0x45   : > { %3730 = vmatpush3.bf16.msra.mxu1 %v4152_v29  ;;  %3755 = vmatprep.subr.bf16.mxu0 %v4153_v37  ;;  %v242_v29 = vld [vmem:[%s4461_s12 + $0x80] sm:$0xff] }
  0x46   : > { %3795 = vmatprep.subr.bf16.mxu1 %v4154_v39  ;;  %v3280_v30 = vcombine.low %v230_v28, %v242_v29  ;;  %v3281_v31 = vcombine.high %v230_v28, %v242_v29  ;;  %v4190_v37 = vld [vmem:[%s5097_s1 + $0x3c0] sm:$0xff]   ;;  %v233_v28 = vld [vmem:[%s4461_s12 + $0x38] sm:$0xff] }
  0x47   : > { %2458 = vmatmul.mubr.bf16.vlgmr.msra.gmra.mrb[16].mxu0 %v3276_v34  ;;  %v3282_v34 = vcombine.low %v231_v32, %v243_v33  ;;  %v4192_v39 = vld [vmem:[%s5097_s1 + $0x380] sm:$0xff]  }
  0x48   : > { %2522 = vmatmul.mubr.bf16.vlgmr.msra.gmra.mrb[16].mxu1 %v3278_v36  ;;  %3756 = vmatpush3.bf16.msra.mxu0 %v4155_v40  ;;  %v4189_v36 = vld [vmem:[%s5097_s1 + $0x340] sm:$0xff]   ;;  %v4193_v40 = vld [vmem:[%s5097_s1 + $0x348] sm:$0xff]  }
  0x49   : > { %3796 = vmatpush3.bf16.msra.mxu1 %v4156_v41  ;;  %3757 = vmatprep.subr.bf16.mxu0 %v4157_v42  ;;  %v4194_v41 = vld [vmem:[%s5097_s1 + $0x3c8] sm:$0xff]  }
  0x4a   : > { %3797 = vmatprep.subr.bf16.mxu1 %v4158_v43  ;;  %2465 = vmatprep.mubr.bf16.mxu0 %v3301_v49  ;;  %v4195_v42 = vld [vmem:[%s5097_s1 + $0x308] sm:$0xff]   ;;  %v3307_v49 = vcombine.high %v255_v46, %v267_v47 }
  0x4b   : > { %2529 = vmatprep.mubr.bf16.mxu1 %v3303_v52  ;;  %v4196_v43 = vld [vmem:[%s5097_s1 + $0x388] sm:$0xff]   ;;  %v4197_v52 = vld [vmem:[%s5097_s1 + $0x350] sm:$0xff]  }
  0x4c   : > { %3758 = vmatpush3.bf16.msra.mxu0 %v4159_v44  ;;  %v254_v44 = vld [vmem:[%s4461_s12 + $0xe0] sm:$0xff] }
  0x4d   : > { %3798 = vmatpush3.bf16.msra.mxu1 %v4160_v45  ;;  %3759 = vmatprep.subr.bf16.mxu0 %v4161_v54  ;;  %v266_v45 = vld [vmem:[%s4461_s12 + $0x140] sm:$0xff]  ;;  %v4199_v54 = vld [vmem:[%s5097_s1 + $0x310] sm:$0xff]  }
  0x4e   : > { %3799 = vmatprep.subr.bf16.mxu1 %v4162_v55  ;;  %v3305_v48 = vcombine.high %v254_v44, %v266_v45  ;;  %v3304_v50 = vcombine.low %v254_v44, %v266_v45  ;;  %v4200_v55 = vld [vmem:[%s5097_s1 + $0x390] sm:$0xff]   ;;  %v257_v45 = vld [vmem:[%s4461_s12 + $0xf8] sm:$0xff] }
  0x4f   : > { %2466 = vmatmul.mubr.bf16.gmra.mrb[20].mxu0 %v3300_v51  ;;  %v3306_v51 = vcombine.low %v255_v46, %v267_v47  ;;  %v269_v46 = vld [vmem:[%s4461_s12 + $0x158] sm:$0xff] }
  0x50   : > { %2530 = vmatmul.mubr.bf16.gmra.mrb[20].mxu1 %v3302_v53  ;;  %3760 = vmatpush3.bf16.msra.mxu0 %v4163_v56  ;;  %v4198_v53 = vld [vmem:[%s5097_s1 + $0x3d0] sm:$0xff]   ;;  %v4201_v56 = vld [vmem:[%s5097_s1 + $0x358] sm:$0xff]  }
  0x51   : > { %3800 = vmatpush3.bf16.msra.mxu1 %v4164_v57  ;;  %3761 = vmatprep.subr.bf16.mxu0 %v4165_v58  ;;  %v4202_v57 = vld [vmem:[%s5097_s1 + $0x3d8] sm:$0xff]  }
  0x52   : > { %3801 = vmatprep.subr.bf16.mxu1 %v4166_v59  ;;  %2473 = vmatprep.mubr.bf16.mxu0 %v3325_v0  ;;  %v4203_v58 = vld [vmem:[%s5097_s1 + $0x318] sm:$0xff]   ;;  %v291_v0 = vld [vmem:[%s4461_s12 + $0x208] sm:$0xff] }
  0x53   : > { %2537 = vmatprep.mubr.bf16.mxu1 %v3327_v4  ;;  %v4204_v59 = vld [vmem:[%s5097_s1 + $0x398] sm:$0xff]   ;;  %v3331_v2 = vcombine.high %v279_v62, %v291_v0  ;;  %v4205_v4 = vld [vmem:[%s5097_s1 + $0x360] sm:$0xff]  }
  0x54   : > { %3762 = vmatpush3.bf16.msra.mxu0 %v4167_v60  ;;  %v278_v60 = vld [vmem:[%s4461_s12 + $0x1a0] sm:$0xff] }
  0x55   : > { %3802 = vmatpush3.bf16.msra.mxu1 %v4168_v61  ;;  %3763 = vmatprep.subr.bf16.mxu0 %v4169_v6  ;;  %v290_v61 = vld [vmem:[%s4461_s12 + $0x200] sm:$0xff] }
  0x56   : > { %3803 = vmatprep.subr.bf16.mxu1 %v4170_v7  ;;  %v3329_v63 = vcombine.high %v278_v60, %v290_v61  ;;  %v3328_v1 = vcombine.low %v278_v60, %v290_v61  ;;  %v4207_v6 = vld [vmem:[%s5097_s1 + $0x320] sm:$0xff]   ;;  %v281_v60 = vld [vmem:[%s4461_s12 + $0x1b8] sm:$0xff] }
  0x57   : > { %2474 = vmatmul.mubr.bf16.gmra.mrb[24].mxu0 %v3324_v3  ;;  %v3330_v3 = vcombine.low %v279_v62, %v291_v0  ;;  %v4208_v7 = vld [vmem:[%s5097_s1 + $0x3a0] sm:$0xff]   ;;  %v293_v61 = vld [vmem:[%s4461_s12 + $0x218] sm:$0xff] }
  0x58   : > { %2538 = vmatmul.mubr.bf16.gmra.mrb[24].mxu1 %v3326_v5  ;;  %3764 = vmatpush3.bf16.msra.mxu0 %v4171_v8  ;;  %v4206_v5 = vld [vmem:[%s5097_s1 + $0x3e0] sm:$0xff]   ;;  %v4209_v8 = vld [vmem:[%s5097_s1 + $0x368] sm:$0xff]  }
  0x59   : > { %3804 = vmatpush3.bf16.msra.mxu1 %v4172_v9  ;;  %3765 = vmatprep.subr.bf16.mxu0 %v4173_v10  ;;  %v4210_v9 = vld [vmem:[%s5097_s1 + $0x3e8] sm:$0xff]  }
  0x5a   : > { %3805 = vmatprep.subr.bf16.mxu1 %v4174_v11  ;;  %2481 = vmatprep.mubr.bf16.mxu0 %v3349_v15  ;;  %v4211_v10 = vld [vmem:[%s5097_s1 + $0x328] sm:$0xff]  }
  0x5b   : > { %2545 = vmatprep.mubr.bf16.mxu1 %v3351_v18  ;;  %v4212_v11 = vld [vmem:[%s5097_s1 + $0x3a8] sm:$0xff]   ;;  %v4217_v18 = vld [vmem:[%s5097_s1 + $0x370] sm:$0xff]  }
  0x5c   : > { %3766 = vmatpush3.bf16.msra.mxu0 %v4175_v12  ;;  %v302_v12 = vld [vmem:[%s4461_s12 + $0x260] sm:$0x11] }
  0x5d   : > { %3806 = vmatpush3.bf16.msra.mxu1 %v4176_v13  ;;  %3767 = vmatprep.subr.bf16.mxu0 %v4181_v20  ;;  %v303_v13 = vld [vmem:[%s4461_s12 + $0x268] sm:$0x11]  ;;  %v3353_v14 = vcombine.high %v302_v12, %v302_v12  ;;  %v3352_v16 = vcombine.low %v302_v12, %v302_v12  ;;  %v4219_v20 = vld [vmem:[%s5097_s1 + $0x330] sm:$0xff]  }
  0x5e   : > { %3807 = vmatprep.subr.bf16.mxu1 %v4182_v21  ;;  %v3355_v15 = vcombine.high %v303_v13, %v303_v13  ;;  %v4220_v21 = vld [vmem:[%s5097_s1 + $0x3b0] sm:$0xff]  }
  0x5f   : > { %2482 = vmatmul.mubr.bf16.gmra.mrb[28].mxu0 %v3348_v17  ;;  %v3354_v17 = vcombine.low %v303_v13, %v303_v13 }
  0x60   : > { %2546 = vmatmul.mubr.bf16.gmra.mrb[28].mxu1 %v3350_v19  ;;  %3768 = vmatpush3.bf16.msra.mxu0 %v4183_v22  ;;  %v4218_v19 = vld [vmem:[%s5097_s1 + $0x3f0] sm:$0xff]   ;;  %v4221_v22 = vld [vmem:[%s5097_s1 + $0x378] sm:$0xff]  }
  0x61   : > { %3808 = vmatpush3.bf16.msra.mxu1 %v4184_v23  ;;  %3769 = vmatprep.subr.bf16.mxu0 %v4185_v24  ;;  %v4222_v23 = vld [vmem:[%s5097_s1 + $0x3f8] sm:$0xff]  }
  0x62   : > { %3809 = vmatprep.subr.bf16.mxu1 %v4186_v25  ;;  %2585 = vmatprep.mubr.bf16.mxu0 %v3281_v31  ;;  %v4223_v24 = vld [vmem:[%s5097_s1 + $0x338] sm:$0xff]  }
  0x63   : > { %2649 = vmatprep.mubr.bf16.mxu1 %v3283_v35  ;;  %v4224_v25 = vld [vmem:[%s5097_s1 + $0x3b8] sm:$0xff]   ;;  %v4226_v35 = vld [vmem:[%s5097_s1 + $0x4c0] sm:$0xff]  }
  0x64   : > { %3770 = vmatpush3.bf16.msra.mxu0 %v4187_v26  ;;  %v232_v26 = vld [vmem:[%s4461_s12 + $0x30] sm:$0xff]  ;;  %v245_v31 = vld [vmem:[%s4461_s12 + $0x98] sm:$0xff] }
  0x65   : > { %3810 = vmatpush3.bf16.msra.mxu1 %v4188_v27  ;;  %3835 = vmatprep.subr.bf16.mxu0 %v4189_v36  ;;  %v244_v27 = vld [vmem:[%s4461_s12 + $0x90] sm:$0xff]  ;;  %v3286_v32 = vcombine.low %v233_v28, %v245_v31  ;;  %v3287_v33 = vcombine.high %v233_v28, %v245_v31  ;;  %v4227_v36 = vld [vmem:[%s5097_s1 + $0x400] sm:$0xff]  }
  0x66   : > { %3875 = vmatprep.subr.bf16.mxu1 %v4190_v37  ;;  %v3284_v29 = vcombine.low %v232_v26, %v244_v27  ;;  %v4228_v37 = vld [vmem:[%s5097_s1 + $0x480] sm:$0xff]  }
  0x67   : > { %2586 = vmatmul.mubr.bf16.vlgmr.msra.gmra.mrb[32].mxu0 %v3280_v30  ;;  %v3285_v30 = vcombine.high %v232_v26, %v244_v27  ;;  %v235_v26 = vld [vmem:[%s4461_s12 + $0x48] sm:$0xff]  ;;  %v4261_v31 = vld [vmem:[%s5097_s1 + $0x540] sm:$0xff]  }
  0x68   : > { %2650 = vmatmul.mubr.bf16.vlgmr.msra.gmra.mrb[32].mxu1 %v3282_v34  ;;  %3836 = vmatpush3.bf16.msra.mxu0 %v4191_v38  ;;  %v4225_v34 = vld [vmem:[%s5097_s1 + $0x440] sm:$0xff]   ;;  %v4229_v38 = vld [vmem:[%s5097_s1 + $0x448] sm:$0xff]  }
  0x69   : > { %3876 = vmatpush3.bf16.msra.mxu1 %v4192_v39  ;;  %3837 = vmatprep.subr.bf16.mxu0 %v4193_v40  ;;  %v4230_v39 = vld [vmem:[%s5097_s1 + $0x4c8] sm:$0xff]  }
  0x6a   : > { %3877 = vmatprep.subr.bf16.mxu1 %v4194_v41  ;;  %2593 = vmatprep.mubr.bf16.mxu0 %v3305_v48  ;;  %v4231_v40 = vld [vmem:[%s5097_s1 + $0x408] sm:$0xff]   ;;  %v3311_v48 = vcombine.high %v257_v45, %v269_v46 }
  0x6b   : > { %2657 = vmatprep.mubr.bf16.mxu1 %v3307_v49  ;;  %v4232_v41 = vld [vmem:[%s5097_s1 + $0x488] sm:$0xff]   ;;  %v3310_v49 = vcombine.low %v257_v45, %v269_v46 }
  0x6c   : > { %3838 = vmatpush3.bf16.msra.mxu0 %v4195_v42  ;;  %v256_v42 = vld [vmem:[%s4461_s12 + $0xf0] sm:$0xff]  ;;  %v247_v27 = vld [vmem:[%s4461_s12 + $0xa8] sm:$0xff] }
  0x6d   : > { %3878 = vmatpush3.bf16.msra.mxu1 %v4196_v43  ;;  %3839 = vmatprep.subr.bf16.mxu0 %v4197_v52  ;;  %v268_v43 = vld [vmem:[%s4461_s12 + $0x150] sm:$0xff] }
  0x6e   : > { %3879 = vmatprep.subr.bf16.mxu1 %v4198_v53  ;;  %v3309_v44 = vcombine.high %v256_v42, %v268_v43  ;;  %v3308_v47 = vcombine.low %v256_v42, %v268_v43  ;;  %v4235_v52 = vld [vmem:[%s5097_s1 + $0x410] sm:$0xff]   ;;  %v259_v42 = vld [vmem:[%s4461_s12 + $0x108] sm:$0xff] }
  0x6f   : > { %2594 = vmatmul.mubr.bf16.gmra.mrb[36].mxu0 %v3304_v50  ;;  %v4233_v50 = vld [vmem:[%s5097_s1 + $0x450] sm:$0xff]  }
  0x70   : > { %2658 = vmatmul.mubr.bf16.gmra.mrb[36].mxu1 %v3306_v51  ;;  %3840 = vmatpush3.bf16.msra.mxu0 %v4199_v54  ;;  %v4234_v51 = vld [vmem:[%s5097_s1 + $0x4d0] sm:$0xff]   ;;  %v4237_v54 = vld [vmem:[%s5097_s1 + $0x458] sm:$0xff]  }
  0x71   : > { %3880 = vmatpush3.bf16.msra.mxu1 %v4200_v55  ;;  %3841 = vmatprep.subr.bf16.mxu0 %v4201_v56  ;;  %v4236_v53 = vld [vmem:[%s5097_s1 + $0x490] sm:$0xff]   ;;  %v4238_v55 = vld [vmem:[%s5097_s1 + $0x4d8] sm:$0xff]  }
  0x72   : > { %3881 = vmatprep.subr.bf16.mxu1 %v4202_v57  ;;  %2601 = vmatprep.mubr.bf16.mxu0 %v3329_v63  ;;  %v4239_v56 = vld [vmem:[%s5097_s1 + $0x418] sm:$0xff]   ;;  %v3335_v63 = vcombine.high %v281_v60, %v293_v61 }
  0x73   : > { %2665 = vmatprep.mubr.bf16.mxu1 %v3331_v2  ;;  %v4240_v57 = vld [vmem:[%s5097_s1 + $0x498] sm:$0xff]   ;;  %v4241_v2 = vld [vmem:[%s5097_s1 + $0x460] sm:$0xff]  }
  0x74   : > { %3842 = vmatpush3.bf16.msra.mxu0 %v4203_v58  ;;  %v280_v58 = vld [vmem:[%s4461_s12 + $0x1b0] sm:$0xff] }
  0x75   : > { %3882 = vmatpush3.bf16.msra.mxu1 %v4204_v59  ;;  %3843 = vmatprep.subr.bf16.mxu0 %v4205_v4  ;;  %v292_v59 = vld [vmem:[%s4461_s12 + $0x210] sm:$0xff]  ;;  %v4243_v4 = vld [vmem:[%s5097_s1 + $0x420] sm:$0xff]  }
  0x76   : > { %3883 = vmatprep.subr.bf16.mxu1 %v4206_v5  ;;  %v3333_v62 = vcombine.high %v280_v58, %v292_v59  ;;  %v3332_v0 = vcombine.low %v280_v58, %v292_v59  ;;  %v4244_v5 = vld [vmem:[%s5097_s1 + $0x4a0] sm:$0xff]   ;;  %v283_v59 = vld [vmem:[%s4461_s12 + $0x1c8] sm:$0xff] }
  0x77   : > { %2602 = vmatmul.mubr.bf16.gmra.mrb[40].mxu0 %v3328_v1  ;;  %v3334_v1 = vcombine.low %v281_v60, %v293_v61  ;;  %v295_v60 = vld [vmem:[%s4461_s12 + $0x228] sm:$0xff] }
  0x78   : > { %2666 = vmatmul.mubr.bf16.gmra.mrb[40].mxu1 %v3330_v3  ;;  %3844 = vmatpush3.bf16.msra.mxu0 %v4207_v6  ;;  %v4242_v3 = vld [vmem:[%s5097_s1 + $0x4e0] sm:$0xff]   ;;  %v4245_v6 = vld [vmem:[%s5097_s1 + $0x468] sm:$0xff]  }
  0x79   : > { %3884 = vmatpush3.bf16.msra.mxu1 %v4208_v7  ;;  %3845 = vmatprep.subr.bf16.mxu0 %v4209_v8  ;;  %v4246_v7 = vld [vmem:[%s5097_s1 + $0x4e8] sm:$0xff]  }
  0x7a   : > { %3885 = vmatprep.subr.bf16.mxu1 %v4210_v9  ;;  %2609 = vmatprep.mubr.bf16.mxu0 %v3353_v14  ;;  %v4247_v8 = vld [vmem:[%s5097_s1 + $0x428] sm:$0xff]  }
  0x7b   : > { %2673 = vmatprep.mubr.bf16.mxu1 %v3355_v15  ;;  %v4248_v9 = vld [vmem:[%s5097_s1 + $0x4a8] sm:$0xff]   ;;  %v4253_v15 = vld [vmem:[%s5097_s1 + $0x470] sm:$0xff]  }
  0x7c   : > { %3846 = vmatpush3.bf16.msra.mxu0 %v4211_v10  ;;  %v304_v10 = vld [vmem:[%s4461_s12 + $0x270] sm:$0x11] }
  0x7d   : > { %3886 = vmatpush3.bf16.msra.mxu1 %v4212_v11  ;;  %3847 = vmatprep.subr.bf16.mxu0 %v4217_v18  ;;  %v305_v11 = vld [vmem:[%s4461_s12 + $0x278] sm:$0x11]  ;;  %v3357_v12 = vcombine.high %v304_v10, %v304_v10  ;;  %v3356_v14 = vcombine.low %v304_v10, %v304_v10  ;;  %v4255_v18 = vld [vmem:[%s5097_s1 + $0x430] sm:$0xff]   ;;  %v307_v10 = vld [vmem:[%s4461_s12 + $0x288] sm:$0x11] }
  0x7e   : > { %3887 = vmatprep.subr.bf16.mxu1 %v4218_v19  ;;  %v3359_v13 = vcombine.high %v305_v11, %v305_v11  ;;  %v4256_v19 = vld [vmem:[%s5097_s1 + $0x4b0] sm:$0xff]  }
  0x7f   : > { %2610 = vmatmul.mubr.bf16.gmra.mrb[44].mxu0 %v3352_v16  ;;  %v3358_v16 = vcombine.low %v305_v11, %v305_v11 }
  0x80   : > { %2674 = vmatmul.mubr.bf16.gmra.mrb[44].mxu1 %v3354_v17  ;;  %3848 = vmatpush3.bf16.msra.mxu0 %v4219_v20  ;;  %v4254_v17 = vld [vmem:[%s5097_s1 + $0x4f0] sm:$0xff]   ;;  %v4257_v20 = vld [vmem:[%s5097_s1 + $0x478] sm:$0xff]  }
  0x81   : > { %3888 = vmatpush3.bf16.msra.mxu1 %v4220_v21  ;;  %3849 = vmatprep.subr.bf16.mxu0 %v4221_v22  ;;  %v4258_v21 = vld [vmem:[%s5097_s1 + $0x4f8] sm:$0xff]  }
  0x82   : > { %3889 = vmatprep.subr.bf16.mxu1 %v4222_v23  ;;  %2713 = vmatprep.mubr.bf16.mxu0 %v3285_v30  ;;  %v4259_v22 = vld [vmem:[%s5097_s1 + $0x438] sm:$0xff]   ;;  %v3290_v30 = vcombine.low %v235_v26, %v247_v27 }
  0x83   : > { %2777 = vmatprep.mubr.bf16.mxu1 %v3287_v33  ;;  %v4260_v23 = vld [vmem:[%s5097_s1 + $0x4b8] sm:$0xff]   ;;  %v4262_v33 = vld [vmem:[%s5097_s1 + $0x5c0] sm:$0xff]  }
  0x84   : > { %3850 = vmatpush3.bf16.msra.mxu0 %v4223_v24  ;;  %v234_v24 = vld [vmem:[%s4461_s12 + $0x40] sm:$0xff] }
  0x85   : > { %3890 = vmatpush3.bf16.msra.mxu1 %v4224_v25  ;;  %3915 = vmatprep.subr.bf16.mxu0 %v4225_v34  ;;  %v246_v25 = vld [vmem:[%s4461_s12 + $0xa0] sm:$0xff] }
  0x86   : > { %3955 = vmatprep.subr.bf16.mxu1 %v4226_v35  ;;  %v3288_v28 = vcombine.low %v234_v24, %v246_v25  ;;  %v4263_v34 = vld [vmem:[%s5097_s1 + $0x500] sm:$0xff]  }
  0x87   : > { %2714 = vmatmul.mubr.bf16.vlgmr.msra.gmra.mrb[48].mxu0 %v3284_v29  ;;  %v3289_v29 = vcombine.high %v234_v24, %v246_v25  ;;  %v4264_v35 = vld [vmem:[%s5097_s1 + $0x580] sm:$0xff]  }
  0x88   : > { %2778 = vmatmul.mubr.bf16.vlgmr.msra.gmra.mrb[48].mxu1 %v3286_v32  ;;  %3916 = vmatpush3.bf16.msra.mxu0 %v4227_v36  ;;  %v3291_v32 = vcombine.high %v235_v26, %v247_v27  ;;  %v4265_v36 = vld [vmem:[%s5097_s1 + $0x548] sm:$0xff]   ;;  %v237_v26 = vld [vmem:[%s4461_s12 + $0x58] sm:$0xff] }
  0x89   : > { %3956 = vmatpush3.bf16.msra.mxu1 %v4228_v37  ;;  %3917 = vmatprep.subr.bf16.mxu0 %v4229_v38  ;;  %v4266_v37 = vld [vmem:[%s5097_s1 + $0x5c8] sm:$0xff]   ;;  %v249_v27 = vld [vmem:[%s4461_s12 + $0xb8] sm:$0xff] }
  0x8a   : > { %3957 = vmatprep.subr.bf16.mxu1 %v4230_v39  ;;  %2721 = vmatprep.mubr.bf16.mxu0 %v3309_v44  ;;  %v4267_v38 = vld [vmem:[%s5097_s1 + $0x508] sm:$0xff]  }
  0x8b   : > { %2785 = vmatprep.mubr.bf16.mxu1 %v3311_v48  ;;  %v4268_v39 = vld [vmem:[%s5097_s1 + $0x588] sm:$0xff]   ;;  %v4269_v48 = vld [vmem:[%s5097_s1 + $0x550] sm:$0xff]  }
  0x8c   : > { %3918 = vmatpush3.bf16.msra.mxu0 %v4231_v40  ;;  %v258_v40 = vld [vmem:[%s4461_s12 + $0x100] sm:$0xff]  ;;  %v271_v44 = vld [vmem:[%s4461_s12 + $0x168] sm:$0xff] }
  0x8d   : > { %3958 = vmatpush3.bf16.msra.mxu1 %v4232_v41  ;;  %3919 = vmatprep.subr.bf16.mxu0 %v4233_v50  ;;  %v270_v41 = vld [vmem:[%s4461_s12 + $0x160] sm:$0xff]  ;;  %v3315_v46 = vcombine.high %v259_v42, %v271_v44  ;;  %v4271_v50 = vld [vmem:[%s5097_s1 + $0x510] sm:$0xff]  }
  0x8e   : > { %3959 = vmatprep.subr.bf16.mxu1 %v4234_v51  ;;  %v3313_v43 = vcombine.high %v258_v40, %v270_v41  ;;  %v3312_v45 = vcombine.low %v258_v40, %v270_v41  ;;  %v4272_v51 = vld [vmem:[%s5097_s1 + $0x590] sm:$0xff]  }
  0x8f   : > { %2722 = vmatmul.mubr.bf16.gmra.mrb[52].mxu0 %v3308_v47  ;;  %v3314_v47 = vcombine.low %v259_v42, %v271_v44  ;;  %v308_v44 = vld [vmem:[%s4461_s12 + $0x290] sm:$0x11] }
  0x90   : > { %2786 = vmatmul.mubr.bf16.gmra.mrb[52].mxu1 %v3310_v49  ;;  %3920 = vmatpush3.bf16.msra.mxu0 %v4235_v52  ;;  %v4270_v49 = vld [vmem:[%s5097_s1 + $0x5d0] sm:$0xff]   ;;  %v4273_v52 = vld [vmem:[%s5097_s1 + $0x558] sm:$0xff]  }
  0x91   : > { %3960 = vmatpush3.bf16.msra.mxu1 %v4236_v53  ;;  %3921 = vmatprep.subr.bf16.mxu0 %v4237_v54  ;;  %v4274_v53 = vld [vmem:[%s5097_s1 + $0x5d8] sm:$0xff]  }
  0x92   : > { %3961 = vmatprep.subr.bf16.mxu1 %v4238_v55  ;;  %2729 = vmatprep.mubr.bf16.mxu0 %v3333_v62  ;;  %v4275_v54 = vld [vmem:[%s5097_s1 + $0x518] sm:$0xff]   ;;  %v3339_v62 = vcombine.high %v283_v59, %v295_v60 }
  0x93   : > { %2793 = vmatprep.mubr.bf16.mxu1 %v3335_v63  ;;  %v4276_v55 = vld [vmem:[%s5097_s1 + $0x598] sm:$0xff]   ;;  %v3338_v63 = vcombine.low %v283_v59, %v295_v60 }
  0x94   : > { %3922 = vmatpush3.bf16.msra.mxu0 %v4239_v56  ;;  %v282_v56 = vld [vmem:[%s4461_s12 + $0x1c0] sm:$0xff] }
  0x95   : > { %3962 = vmatpush3.bf16.msra.mxu1 %v4240_v57  ;;  %3923 = vmatprep.subr.bf16.mxu0 %v4241_v2  ;;  %v294_v57 = vld [vmem:[%s4461_s12 + $0x220] sm:$0xff] }
  0x96   : > { %3963 = vmatprep.subr.bf16.mxu1 %v4242_v3  ;;  %v3337_v58 = vcombine.high %v282_v56, %v294_v57  ;;  %v3336_v61 = vcombine.low %v282_v56, %v294_v57  ;;  %v4279_v2 = vld [vmem:[%s5097_s1 + $0x520] sm:$0xff]  }
  0x97   : > { %2730 = vmatmul.mubr.bf16.gmra.mrb[56].mxu0 %v3332_v0  ;;  %v4277_v0 = vld [vmem:[%s5097_s1 + $0x560] sm:$0xff]  }
  0x98   : > { %2794 = vmatmul.mubr.bf16.gmra.mrb[56].mxu1 %v3334_v1  ;;  %3924 = vmatpush3.bf16.msra.mxu0 %v4243_v4  ;;  %v4278_v1 = vld [vmem:[%s5097_s1 + $0x5e0] sm:$0xff]   ;;  %v4281_v4 = vld [vmem:[%s5097_s1 + $0x568] sm:$0xff]  }
  0x99   : > { %3964 = vmatpush3.bf16.msra.mxu1 %v4244_v5  ;;  %3925 = vmatprep.subr.bf16.mxu0 %v4245_v6  ;;  %v4280_v3 = vld [vmem:[%s5097_s1 + $0x5a0] sm:$0xff]   ;;  %v4282_v5 = vld [vmem:[%s5097_s1 + $0x5e8] sm:$0xff]  }
  0x9a   : > { %3965 = vmatprep.subr.bf16.mxu1 %v4246_v7  ;;  %2737 = vmatprep.mubr.bf16.mxu0 %v3357_v12  ;;  %v4283_v6 = vld [vmem:[%s5097_s1 + $0x528] sm:$0xff]   ;;  %v3363_v12 = vcombine.high %v307_v10, %v307_v10 }
  0x9b   : > { %2801 = vmatprep.mubr.bf16.mxu1 %v3359_v13  ;;  %v4284_v7 = vld [vmem:[%s5097_s1 + $0x5a8] sm:$0xff]   ;;  %v3362_v13 = vcombine.low %v307_v10, %v307_v10 }
  0x9c   : > { %3926 = vmatpush3.bf16.msra.mxu0 %v4247_v8  ;;  %v306_v8 = vld [vmem:[%s4461_s12 + $0x280] sm:$0x11] }
  0x9d   : > { %3966 = vmatpush3.bf16.msra.mxu1 %v4248_v9  ;;  %3927 = vmatprep.subr.bf16.mxu0 %v4253_v15  ;;  %v3361_v9 = vcombine.high %v306_v8, %v306_v8  ;;  %v3360_v11 = vcombine.low %v306_v8, %v306_v8  ;;  %v4290_v15 = vld [vmem:[%s5097_s1 + $0x5f0] sm:$0xff]  }
  0x9e   : > { %3967 = vmatprep.subr.bf16.mxu1 %v4254_v17  ;;  %v4292_v17 = vld [vmem:[%s5097_s1 + $0x5b0] sm:$0xff]  }
  0x9f   : > { %2738 = vmatmul.mubr.bf16.gmra.mrb[60].mxu0 %v3356_v14  ;;  %v4289_v14 = vld [vmem:[%s5097_s1 + $0x570] sm:$0xff]  }
  0xa0   : > { %2802 = vmatmul.mubr.bf16.gmra.mrb[60].mxu1 %v3358_v16  ;;  %3928 = vmatpush3.bf16.msra.mxu0 %v4255_v18  ;;  %v4291_v16 = vld [vmem:[%s5097_s1 + $0x530] sm:$0xff]   ;;  %v4293_v18 = vld [vmem:[%s5097_s1 + $0x578] sm:$0xff]  }
  0xa1   : > { %3968 = vmatpush3.bf16.msra.mxu1 %v4256_v19  ;;  %3929 = vmatprep.subr.bf16.mxu0 %v4257_v20  ;;  %v4294_v19 = vld [vmem:[%s5097_s1 + $0x5f8] sm:$0xff]   ;;  %v696_v8 = vld [vmem:[%s5098_s2 + $0x10] sm:$0xff] }
  0xa2   : > { %3969 = vmatprep.subr.bf16.mxu1 %v4258_v21  ;;  %2841 = vmatprep.mubr.bf16.mxu0 %v3289_v29  ;;  %v4295_v20 = vld [vmem:[%s5097_s1 + $0x538] sm:$0xff]   ;;  %v3294_v29 = vcombine.low %v237_v26, %v249_v27 }
  0xa3   : > { %2905 = vmatprep.mubr.bf16.mxu1 %v3291_v32  ;;  %v4296_v21 = vld [vmem:[%s5097_s1 + $0x5b8] sm:$0xff]  }
  0xa4   : > { %3930 = vmatpush3.bf16.msra.mxu0 %v4259_v22  ;;  %v236_v22 = vld [vmem:[%s4461_s12 + $0x50] sm:$0xff]  ;;  %v261_v32 = vld [vmem:[%s4461_s12 + $0x118] sm:$0xff] }
  0xa5   : > { %3970 = vmatpush3.bf16.msra.mxu1 %v4260_v23  ;;  %3995 = vmatprep.subr.bf16.mxu0 %v4261_v31  ;;  %v248_v23 = vld [vmem:[%s4461_s12 + $0xb0] sm:$0xff] }
  0xa6   : > { %4035 = vmatprep.subr.bf16.mxu1 %v4262_v33  ;;  %v3292_v24 = vcombine.low %v236_v22, %v248_v23  ;;  %v3293_v25 = vcombine.high %v236_v22, %v248_v23  ;;  %v272_v31 = vld [vmem:[%s4461_s12 + $0x170] sm:$0xff]  ;;  %v273_v33 = vld [vmem:[%s4461_s12 + $0x178] sm:$0xff] }
  0xa7   : > { %2842 = vmatmul.mubr.bf16.vlgmr.msra.gmra.mrb[64].mxu0 %v3288_v28  ;;  %v260_v28 = vld [vmem:[%s4461_s12 + $0x110] sm:$0xff]  ;;  %v3318_v41 = vcombine.low %v261_v32, %v273_v33 }
  0xa8   : > { %2906 = vmatmul.mubr.bf16.vlgmr.msra.gmra.mrb[64].mxu1 %v3290_v30  ;;  %3996 = vmatpush3.bf16.msra.mxu0 %v4263_v34  ;;  %v3295_v30 = vcombine.high %v237_v26, %v249_v27  ;;  %v3317_v34 = vcombine.high %v260_v28, %v272_v31  ;;  %v3316_v40 = vcombine.low %v260_v28, %v272_v31  ;;  %v698_v26 = vld [vmem:[%s5098_s2 + $0x20] sm:$0xff] }
  0xa9   : > { %4036 = vmatpush3.bf16.msra.mxu1 %v4264_v35  ;;  %3997 = vmatprep.subr.bf16.mxu0 %v4265_v36  ;;  %v3319_v35 = vcombine.high %v261_v32, %v273_v33  ;;  %v284_v36 = vld [vmem:[%s4461_s12 + $0x1d0] sm:$0xff]  ;;  %v699_v33 = vld [vmem:[%s5098_s2 + $0x28] sm:$0xff] }
  0xaa   : > { %4037 = vmatprep.subr.bf16.mxu1 %v4266_v37  ;;  %2849 = vmatprep.mubr.bf16.mxu0 %v3313_v43  ;;  %v296_v37 = vld [vmem:[%s4461_s12 + $0x230] sm:$0xff] }
  0xab   : > { %2913 = vmatprep.mubr.bf16.mxu1 %v3315_v46  ;;  %v3341_v42 = vcombine.high %v284_v36, %v296_v37  ;;  %v3340_v46 = vcombine.low %v284_v36, %v296_v37 }
  0xac   : > { %3998 = vmatpush3.bf16.msra.mxu0 %v4267_v38  ;;  %v285_v38 = vld [vmem:[%s4461_s12 + $0x1d8] sm:$0xff] }
  0xad   : > { %4038 = vmatpush3.bf16.msra.mxu1 %v4268_v39  ;;  %3999 = vmatprep.subr.bf16.mxu0 %v4269_v48  ;;  %v297_v39 = vld [vmem:[%s4461_s12 + $0x238] sm:$0xff]  ;;  %v3365_v48 = vcombine.high %v308_v44, %v308_v44 }
  0xae   : > { %4039 = vmatprep.subr.bf16.mxu1 %v4270_v49  ;;  %v3343_v43 = vcombine.high %v285_v38, %v297_v39 }
  0xaf   : > { %2850 = vmatmul.mubr.bf16.gmra.mrb[68].mxu0 %v3312_v45  ;;  %v309_v45 = vld [vmem:[%s4461_s12 + $0x298] sm:$0x11] }
  0xb0   : > { %2914 = vmatmul.mubr.bf16.gmra.mrb[68].mxu1 %v3314_v47  ;;  %4000 = vmatpush3.bf16.msra.mxu0 %v4271_v50  ;;  %v3342_v47 = vcombine.low %v285_v38, %v297_v39  ;;  %v3367_v49 = vcombine.high %v309_v45, %v309_v45  ;;  %v3364_v50 = vcombine.low %v308_v44, %v308_v44  ;;  %v700_v44 = vld [vmem:[%s5098_s2 + $0x30] sm:$0x3] }
  0xb1   : > { %4040 = vmatpush3.bf16.msra.mxu1 %v4272_v51  ;;  %4001 = vmatprep.subr.bf16.mxu0 %v4273_v52  ;;  %v3366_v51 = vcombine.low %v309_v45, %v309_v45 }
  0xb2   : > { %4041 = vmatprep.subr.bf16.mxu1 %v4274_v53  ;;  %2857 = vmatprep.mubr.bf16.mxu0 %v3337_v58 }
  0xb3   : > { %2921 = vmatprep.mubr.bf16.mxu1 %v3339_v62 }
  0xb4   : > { %4002 = vmatpush3.bf16.msra.mxu0 %v4275_v54  ;;  %v694_v54 = vld [vmem:[%s5098_s2] sm:$0xff] }
  0xb5   : > { %4042 = vmatpush3.bf16.msra.mxu1 %v4276_v55  ;;  %4003 = vmatprep.subr.bf16.mxu0 %v4277_v0 }
  0xb6   : > { %4043 = vmatprep.subr.bf16.mxu1 %v4278_v1 }
  0xb7   : > { %2858 = vmatmul.mubr.bf16.gmra.mrb[72].mxu0 %v3336_v61  ;;  %v695_v61 = vld [vmem:[%s5098_s2 + $0x8] sm:$0xff] }
  0xb8   : > { %2922 = vmatmul.mubr.bf16.gmra.mrb[72].mxu1 %v3338_v63  ;;  %4004 = vmatpush3.bf16.msra.mxu0 %v4279_v2 }
  0xb9   : > { %4044 = vmatpush3.bf16.msra.mxu1 %v4280_v3  ;;  %4005 = vmatprep.subr.bf16.mxu0 %v4281_v4 }
  0xba   : > { %4045 = vmatprep.subr.bf16.mxu1 %v4282_v5  ;;  %2865 = vmatprep.mubr.bf16.mxu0 %v3361_v9 }
  0xbb   : > { %2929 = vmatprep.mubr.bf16.mxu1 %v3363_v12 }
  0xbc   : > { %4006 = vmatpush3.bf16.msra.mxu0 %v4283_v6 }
  0xbd   : > { %4046 = vmatpush3.bf16.msra.mxu1 %v4284_v7  ;;  %4007 = vmatprep.subr.bf16.mxu0 %v4289_v14 }
  0xbe   : > { %4047 = vmatprep.subr.bf16.mxu1 %v4290_v15  ;;  %v697_v15 = vld [vmem:[%s5098_s2 + $0x18] sm:$0xff] }
  0xbf   : > { %2866 = vmatmul.mubr.bf16.gmra.mrb[76].mxu0 %v3360_v11 }
  0xc0   : > { %2930 = vmatmul.mubr.bf16.gmra.mrb[76].mxu1 %v3362_v13  ;;  %4008 = vmatpush3.bf16.msra.mxu0 %v4291_v16 }
  0xc1   : > { %4048 = vmatpush3.bf16.msra.mxu1 %v4292_v17  ;;  %4009 = vmatprep.subr.bf16.mxu0 %v4293_v18 }
  0xc2   : > { %4049 = vmatprep.subr.bf16.mxu1 %v4294_v19  ;;  %2969 = vmatprep.mubr.bf16.mxu0 %v3293_v25 }
  0xc3   : > { %3033 = vmatprep.mubr.bf16.mxu1 %v3295_v30 }
  0xc4   : > { %4010 = vmatpush3.bf16.msra.mxu0 %v4295_v20 }
  0xc5   : > { %4050 = vmatpush3.bf16.msra.mxu1 %v4296_v21 }
  0xc7   : > { %2970 = vmatmul.mubr.bf16.vlgmr.msra.gmra.mrb[80].mxu0 %v3292_v24 }
  0xc8   : > { %3034 = vmatmul.mubr.bf16.vlgmr.msra.gmra.mrb[80].mxu1 %v3294_v29  ;;  %2977 = vmatprep.mubr.bf16.mxu0 %v3317_v34 }
  0xc9   : > { %3041 = vmatprep.mubr.bf16.mxu1 %v3319_v35 }
  0xcf   : > { %2978 = vmatmul.mubr.bf16.gmra.mrb[84].mxu0 %v3316_v40 }
  0xd0   : > { %3042 = vmatmul.mubr.bf16.gmra.mrb[84].mxu1 %v3318_v41  ;;  %2985 = vmatprep.mubr.bf16.mxu0 %v3341_v42 }
  0xd1   : > { %3049 = vmatprep.mubr.bf16.mxu1 %v3343_v43 }
  0xd7   : > { %2986 = vmatmul.mubr.bf16.gmra.mrb[88].mxu0 %v3340_v46 }
  0xd8   : > { %3050 = vmatmul.mubr.bf16.gmra.mrb[88].mxu1 %v3342_v47  ;;  %2993 = vmatprep.mubr.bf16.mxu0 %v3365_v48 }
  0xd9   : > { %3057 = vmatprep.mubr.bf16.mxu1 %v3367_v49 }
  0xdf   : > { %2994 = vmatmul.mubr.bf16.gmra.mrb[92].mxu0 %v3364_v50 }
  0xe0   : > { %3058 = vmatmul.mubr.bf16.gmra.mrb[92].mxu1 %v3366_v51 }
  0xfa   : > { %v3611_v52 = vpop.f32.mrb[0].mxu0 }
  0xfb   : > { %v3651_v53 = vpop.f32.mrb[0].mxu1  ;;  %v3612_v55 = vpop.f32.mrb[1].mxu0 }
  0xfc   : > { %v3613_v56 = vadd.f32 %v3612_v55, %v3611_v52  ;;  %v3652_v57 = vpop.f32.mrb[1].mxu1  ;;  %v3614_v58 = vpop.f32.mrb[2].mxu0 }
  0xfd   : > { %v3653_v59 = vadd.f32 %v3652_v57, %v3651_v53  ;;  %v3654_v60 = vpop.f32.mrb[2].mxu1  ;;  %v3615_v62 = vpop.f32.mrb[3].mxu0 }
  0xfe   : > { %v2332_v63 = vadd.f32 %v3613_v56, %v694_v54  ;;  %v3616_v0 = vadd.f32 %v3615_v62, %v3614_v58  ;;  %v3655_v1 = vpop.f32.mrb[3].mxu1 }
  0xff   : > { %v3656_v2 = vadd.f32 %v3655_v1, %v3654_v60 }
 0x100   : > { %v2396_v3 = vadd.f32 %v3653_v59, %v2332_v63  ;;  %v2335_v4 = vadd.f32 %v3616_v0, %v695_v61 }
 0x102   : > { %v5039_v5 = vadd.f32 %v3656_v2, %v2335_v4  ;;  %v3617_v6 = vpop.f32.mrb[4].mxu0 }
 0x103   : > { %v3657_v7 = vpop.f32.mrb[4].mxu1  ;;  %v3618_v9 = vpop.f32.mrb[5].mxu0 }
 0x104   : > { %v3619_v10 = vadd.f32 %v3618_v9, %v3617_v6  ;;  %v3658_v11 = vpop.f32.mrb[5].mxu1  ;;  %v3620_v12 = vpop.f32.mrb[6].mxu0 }
 0x105   : > { %v3659_v13 = vadd.f32 %v3658_v11, %v3657_v7  ;;  %v3660_v14 = vpop.f32.mrb[6].mxu1  ;;  %v3621_v16 = vpop.f32.mrb[7].mxu0 }
 0x106   : > { %v2340_v17 = vadd.f32 %v3619_v10, %v696_v8  ;;  %v3622_v18 = vadd.f32 %v3621_v16, %v3620_v12  ;;  %v3661_v19 = vpop.f32.mrb[7].mxu1 }
 0x107   : > { %v3662_v20 = vadd.f32 %v3661_v19, %v3660_v14 }
 0x108   : > { %v2404_v21 = vadd.f32 %v3659_v13, %v2340_v17  ;;  %v2343_v22 = vadd.f32 %v3622_v18, %v697_v15 }
 0x10a   : > { %v2407_v23 = vadd.f32 %v3662_v20, %v2343_v22  ;;  %v3623_v24 = vpop.f32.mrb[8].mxu0 }
 0x10b   : > { %v3663_v25 = vpop.f32.mrb[8].mxu1  ;;  %v3624_v27 = vpop.f32.mrb[9].mxu0 }
 0x10c   : > { %v3664_v28 = vpop.f32.mrb[9].mxu1  ;;  %v3625_v29 = vadd.f32 %v3624_v27, %v3623_v24  ;;  %v3626_v31 = vpop.f32.mrb[10].mxu0 }
 0x10d   : > { %v3665_v30 = vadd.f32 %v3664_v28, %v3663_v25  ;;  %v3666_v32 = vpop.f32.mrb[10].mxu1  ;;  %v3627_v34 = vpop.f32.mrb[11].mxu0 }
 0x10e   : > { %v3667_v35 = vpop.f32.mrb[11].mxu1  ;;  %v2348_v36 = vadd.f32 %v3625_v29, %v698_v26  ;;  %v3628_v37 = vadd.f32 %v3627_v34, %v3626_v31 }
 0x10f   : > { %v3668_v38 = vadd.f32 %v3667_v35, %v3666_v32 }
 0x110   : > { %v2412_v39 = vadd.f32 %v3665_v30, %v2348_v36  ;;  %v2351_v40 = vadd.f32 %v3628_v37, %v699_v33 }
 0x112   : > { %v2415_v41 = vadd.f32 %v3668_v38, %v2351_v40  ;;  %v3629_v42 = vpop.f32.mrb[12].mxu0 }
 0x113   : > { %v3669_v43 = vpop.f32.mrb[12].mxu1  ;;  %v3630_v45 = vpop.f32.mrb[13].mxu0 }
 0x114   : > { %v3670_v46 = vpop.f32.mrb[13].mxu1  ;;  %v3631_v47 = vadd.f32 %v3630_v45, %v3629_v42  ;;  %v3632_v49 = vpop.f32.mrb[14].mxu0 }
 0x115   : > { %v3671_v48 = vadd.f32 %v3670_v46, %v3669_v43  ;;  %v3672_v50 = vpop.f32.mrb[14].mxu1  ;;  %v3633_v51 = vpop.f32.mrb[15].mxu0 }
 0x116   : > { %v3673_v52 = vpop.f32.mrb[15].mxu1  ;;  %v2356_v53 = vadd.f32 %v3631_v47, %v700_v44 }
 0x118   : > { %v2420_v54 = vadd.f32 %v3671_v48, %v2356_v53 }
 0x11a   : > { %v3691_v55 = vpop.f32.mrb[16].mxu0 }
 0x11b   : > { %v3731_v56 = vpop.f32.mrb[16].mxu1  ;;  %v3692_v57 = vpop.f32.mrb[17].mxu0 }
 0x11c   : > { %v3693_v58 = vadd.f32 %v3692_v57, %v3691_v55  ;;  %v3732_v59 = vpop.f32.mrb[17].mxu1  ;;  %v3694_v60 = vpop.f32.mrb[18].mxu0 }
 0x11d   : > { %v3733_v61 = vadd.f32 %v3732_v59, %v3731_v56  ;;  %v3734_v62 = vpop.f32.mrb[18].mxu1  ;;  %v3695_v63 = vpop.f32.mrb[19].mxu0 }
 0x11e   : > { %v2460_v0 = vadd.f32 %v3693_v58, %v2396_v3  ;;  %v3696_v1 = vadd.f32 %v3695_v63, %v3694_v60  ;;  %v3735_v2 = vpop.f32.mrb[19].mxu1 }
 0x11f   : > { %v3736_v4 = vadd.f32 %v3735_v2, %v3734_v62 }
 0x120   : > { %v2524_v6 = vadd.f32 %v3733_v61, %v2460_v0  ;;  %v2463_v7 = vadd.f32 %v3696_v1, %v5039_v5 }
 0x122   : > { %v2527_v8 = vadd.f32 %v3736_v4, %v2463_v7  ;;  %v3697_v9 = vpop.f32.mrb[20].mxu0 }
 0x123   : > { %v3737_v10 = vpop.f32.mrb[20].mxu1  ;;  %v3698_v11 = vpop.f32.mrb[21].mxu0 }
 0x124   : > { %v3699_v12 = vadd.f32 %v3698_v11, %v3697_v9  ;;  %v3738_v13 = vpop.f32.mrb[21].mxu1  ;;  %v3700_v14 = vpop.f32.mrb[22].mxu0 }
 0x125   : > { %v3739_v15 = vadd.f32 %v3738_v13, %v3737_v10  ;;  %v3740_v16 = vpop.f32.mrb[22].mxu1  ;;  %v3701_v17 = vpop.f32.mrb[23].mxu0 }
 0x126   : > { %v2468_v18 = vadd.f32 %v3699_v12, %v2404_v21  ;;  %v3702_v19 = vadd.f32 %v3701_v17, %v3700_v14  ;;  %v3741_v20 = vpop.f32.mrb[23].mxu1 }
 0x127   : > { %v3742_v3 = vadd.f32 %v3741_v20, %v3740_v16 }
 0x128   : > { %v2532_v22 = vadd.f32 %v3739_v15, %v2468_v18  ;;  %v2471_v24 = vadd.f32 %v3702_v19, %v2407_v23 }
 0x12a   : > { %v2535_v25 = vadd.f32 %v3742_v3, %v2471_v24  ;;  %v3703_v26 = vpop.f32.mrb[24].mxu0 }
 0x12b   : > { %v3743_v27 = vpop.f32.mrb[24].mxu1  ;;  %v3704_v5 = vpop.f32.mrb[25].mxu0 }
 0x12c   : > { %v3705_v28 = vadd.f32 %v3704_v5, %v3703_v26  ;;  %v3744_v29 = vpop.f32.mrb[25].mxu1  ;;  %v3706_v30 = vpop.f32.mrb[26].mxu0 }
 0x12d   : > { %v3745_v31 = vadd.f32 %v3744_v29, %v3743_v27  ;;  %v3746_v32 = vpop.f32.mrb[26].mxu1  ;;  %v3707_v33 = vpop.f32.mrb[27].mxu0 }
 0x12e   : > { %v2476_v34 = vadd.f32 %v3705_v28, %v2412_v39  ;;  %v3708_v35 = vadd.f32 %v3707_v33, %v3706_v30  ;;  %v3747_v36 = vpop.f32.mrb[27].mxu1 }
 0x12f   : > { %v3748_v37 = vadd.f32 %v3747_v36, %v3746_v32 }
 0x130   : > { %v2540_v21 = vadd.f32 %v3745_v31, %v2476_v34  ;;  %v2479_v38 = vadd.f32 %v3708_v35, %v2415_v41 }
 0x132   : > { %v2543_v40 = vadd.f32 %v3748_v37, %v2479_v38  ;;  %v3709_v42 = vpop.f32.mrb[28].mxu0 }
 0x133   : > { %v3749_v43 = vpop.f32.mrb[28].mxu1  ;;  %v3710_v23 = vpop.f32.mrb[29].mxu0 }
 0x134   : > { %v3711_v44 = vadd.f32 %v3710_v23, %v3709_v42  ;;  %v3750_v45 = vpop.f32.mrb[29].mxu1  ;;  %v3712_v46 = vpop.f32.mrb[30].mxu0 }
 0x135   : > { %v3751_v47 = vadd.f32 %v3750_v45, %v3749_v43  ;;  %v3752_v48 = vpop.f32.mrb[30].mxu1  ;;  %v3713_v49 = vpop.f32.mrb[31].mxu0 }
 0x136   : > { %v2484_v50 = vadd.f32 %v3711_v44, %v2420_v54  ;;  %v3753_v51 = vpop.f32.mrb[31].mxu1 }
 0x138   : > { %v2548_v52 = vadd.f32 %v3751_v47, %v2484_v50 }
 0x13a   : > { %v3771_v53 = vpop.f32.mrb[32].mxu0 }
 0x13b   : > { %v3811_v39 = vpop.f32.mrb[32].mxu1  ;;  %v3772_v55 = vpop.f32.mrb[33].mxu0 }
 0x13c   : > { %v3773_v56 = vadd.f32 %v3772_v55, %v3771_v53  ;;  %v3812_v57 = vpop.f32.mrb[33].mxu1  ;;  %v3774_v58 = vpop.f32.mrb[34].mxu0 }
 0x13d   : > { %v3813_v41 = vadd.f32 %v3812_v57, %v3811_v39  ;;  %v3814_v59 = vpop.f32.mrb[34].mxu1  ;;  %v3775_v60 = vpop.f32.mrb[35].mxu0 }
 0x13e   : > { %v2588_v61 = vadd.f32 %v3773_v56, %v2524_v6  ;;  %v3776_v62 = vadd.f32 %v3775_v60, %v3774_v58  ;;  %v3815_v63 = vpop.f32.mrb[35].mxu1 }
 0x13f   : > { %v3816_v0 = vadd.f32 %v3815_v63, %v3814_v59 }
 0x140   : > { %v2652_v1 = vadd.f32 %v3813_v41, %v2588_v61  ;;  %v2591_v2 = vadd.f32 %v3776_v62, %v2527_v8 }
 0x142   : > { %v2655_v4 = vadd.f32 %v3816_v0, %v2591_v2  ;;  %v3777_v7 = vpop.f32.mrb[36].mxu0 }
 0x143   : > { %v3817_v54 = vpop.f32.mrb[36].mxu1  ;;  %v3778_v9 = vpop.f32.mrb[37].mxu0 }
 0x144   : > { %v3818_v10 = vpop.f32.mrb[37].mxu1  ;;  %v3779_v11 = vadd.f32 %v3778_v9, %v3777_v7  ;;  %v3780_v13 = vpop.f32.mrb[38].mxu0 }
 0x145   : > { %v3819_v12 = vadd.f32 %v3818_v10, %v3817_v54  ;;  %v3820_v14 = vpop.f32.mrb[38].mxu1  ;;  %v3781_v15 = vpop.f32.mrb[39].mxu0 }
 0x146   : > { %v3821_v16 = vpop.f32.mrb[39].mxu1  ;;  %v2596_v17 = vadd.f32 %v3779_v11, %v2532_v22  ;;  %v3782_v18 = vadd.f32 %v3781_v15, %v3780_v13 }
 0x147   : > { %v3822_v19 = vadd.f32 %v3821_v16, %v3820_v14 }
 0x148   : > { %v2660_v6 = vadd.f32 %v3819_v12, %v2596_v17  ;;  %v2599_v20 = vadd.f32 %v3782_v18, %v2535_v25 }
 0x14a   : > { %v2663_v3 = vadd.f32 %v3822_v19, %v2599_v20  ;;  %v3783_v24 = vpop.f32.mrb[40].mxu0 }
 0x14b   : > { %v3823_v26 = vpop.f32.mrb[40].mxu1  ;;  %v3784_v8 = vpop.f32.mrb[41].mxu0 }
 0x14c   : > { %v3785_v27 = vadd.f32 %v3784_v8, %v3783_v24  ;;  %v3824_v5 = vpop.f32.mrb[41].mxu1  ;;  %v3786_v28 = vpop.f32.mrb[42].mxu0 }
 0x14d   : > { %v3825_v29 = vadd.f32 %v3824_v5, %v3823_v26  ;;  %v3826_v30 = vpop.f32.mrb[42].mxu1  ;;  %v3787_v31 = vpop.f32.mrb[43].mxu0 }
 0x14e   : > { %v2604_v32 = vadd.f32 %v3785_v27, %v2540_v21  ;;  %v3788_v33 = vadd.f32 %v3787_v31, %v3786_v28  ;;  %v3827_v34 = vpop.f32.mrb[43].mxu1 }
 0x14f   : > { %v3828_v35 = vadd.f32 %v3827_v34, %v3826_v30 }
 0x150   : > { %v2668_v36 = vadd.f32 %v3825_v29, %v2604_v32  ;;  %v2607_v22 = vadd.f32 %v3788_v33, %v2543_v40 }
 0x152   : > { %v2671_v37 = vadd.f32 %v3828_v35, %v2607_v22  ;;  %v3789_v38 = vpop.f32.mrb[44].mxu0 }
 0x153   : > { %v3829_v42 = vpop.f32.mrb[44].mxu1  ;;  %v3790_v25 = vpop.f32.mrb[45].mxu0 }
 0x154   : > { %v3830_v43 = vpop.f32.mrb[45].mxu1  ;;  %v3791_v23 = vadd.f32 %v3790_v25, %v3789_v38  ;;  %v3792_v45 = vpop.f32.mrb[46].mxu0 }
 0x155   : > { %v3831_v44 = vadd.f32 %v3830_v43, %v3829_v42  ;;  %v3832_v46 = vpop.f32.mrb[46].mxu1  ;;  %v3793_v47 = vpop.f32.mrb[47].mxu0 }
 0x156   : > { %v3833_v48 = vpop.f32.mrb[47].mxu1  ;;  %v2612_v49 = vadd.f32 %v3791_v23, %v2548_v52 }
 0x158   : > { %v2676_v50 = vadd.f32 %v3831_v44, %v2612_v49 }
 0x15a   : > { %v3851_v51 = vpop.f32.mrb[48].mxu0 }
 0x15b   : > { %v3891_v21 = vpop.f32.mrb[48].mxu1  ;;  %v3852_v53 = vpop.f32.mrb[49].mxu0 }
 0x15c   : > { %v3853_v39 = vadd.f32 %v3852_v53, %v3851_v51  ;;  %v3892_v55 = vpop.f32.mrb[49].mxu1  ;;  %v3854_v56 = vpop.f32.mrb[50].mxu0 }
 0x15d   : > { %v3893_v40 = vadd.f32 %v3892_v55, %v3891_v21  ;;  %v3894_v57 = vpop.f32.mrb[50].mxu1  ;;  %v3855_v58 = vpop.f32.mrb[51].mxu0 }
 0x15e   : > { %v2716_v41 = vadd.f32 %v3853_v39, %v2652_v1  ;;  %v3856_v59 = vadd.f32 %v3855_v58, %v3854_v56  ;;  %v3895_v60 = vpop.f32.mrb[51].mxu1 }
 0x15f   : > { %v3896_v61 = vadd.f32 %v3895_v60, %v3894_v57 }
 0x160   : > { %v2780_v62 = vadd.f32 %v3893_v40, %v2716_v41  ;;  %v2719_v63 = vadd.f32 %v3856_v59, %v2655_v4 }
 0x162   : > { %v2783_v0 = vadd.f32 %v3896_v61, %v2719_v63  ;;  %v3857_v2 = vpop.f32.mrb[52].mxu0 }
 0x163   : > { %v3897_v7 = vpop.f32.mrb[52].mxu1  ;;  %v3858_v52 = vpop.f32.mrb[53].mxu0 }
 0x164   : > { %v3859_v54 = vadd.f32 %v3858_v52, %v3857_v2  ;;  %v3898_v9 = vpop.f32.mrb[53].mxu1  ;;  %v3860_v10 = vpop.f32.mrb[54].mxu0 }
 0x165   : > { %v3899_v11 = vadd.f32 %v3898_v9, %v3897_v7  ;;  %v3900_v12 = vpop.f32.mrb[54].mxu1  ;;  %v3861_v13 = vpop.f32.mrb[55].mxu0 }
 0x166   : > { %v2724_v14 = vadd.f32 %v3859_v54, %v2660_v6  ;;  %v3862_v15 = vadd.f32 %v3861_v13, %v3860_v10  ;;  %v3901_v16 = vpop.f32.mrb[55].mxu1 }
 0x167   : > { %v3902_v17 = vadd.f32 %v3901_v16, %v3900_v12 }
 0x168   : > { %v2788_v1 = vadd.f32 %v3899_v11, %v2724_v14  ;;  %v2727_v18 = vadd.f32 %v3862_v15, %v2663_v3 }
 0x16a   : > { %v2791_v19 = vadd.f32 %v3902_v17, %v2727_v18  ;;  %v3863_v20 = vpop.f32.mrb[56].mxu0 }
 0x16b   : > { %v3903_v24 = vpop.f32.mrb[56].mxu1  ;;  %v3864_v4 = vpop.f32.mrb[57].mxu0 }
 0x16c   : > { %v3904_v26 = vpop.f32.mrb[57].mxu1  ;;  %v3865_v8 = vadd.f32 %v3864_v4, %v3863_v20  ;;  %v3866_v5 = vpop.f32.mrb[58].mxu0 }
 0x16d   : > { %v3905_v27 = vadd.f32 %v3904_v26, %v3903_v24  ;;  %v3906_v28 = vpop.f32.mrb[58].mxu1  ;;  %v3867_v29 = vpop.f32.mrb[59].mxu0 }
 0x16e   : > { %v3907_v30 = vpop.f32.mrb[59].mxu1  ;;  %v2732_v31 = vadd.f32 %v3865_v8, %v2668_v36  ;;  %v3868_v32 = vadd.f32 %v3867_v29, %v3866_v5 }
 0x16f   : > { %v3908_v33 = vadd.f32 %v3907_v30, %v3906_v28 }
 0x170   : > { %v2796_v6 = vadd.f32 %v3905_v27, %v2732_v31  ;;  %v2735_v34 = vadd.f32 %v3868_v32, %v2671_v37 }
 0x172   : > { %v2799_v35 = vadd.f32 %v3908_v33, %v2735_v34  ;;  %v3869_v22 = vpop.f32.mrb[60].mxu0 }
 0x173   : > { %v3909_v38 = vpop.f32.mrb[60].mxu1  ;;  %v3870_v3 = vpop.f32.mrb[61].mxu0 }
 0x174   : > { %v3910_v42 = vpop.f32.mrb[61].mxu1  ;;  %v3871_v25 = vadd.f32 %v3870_v3, %v3869_v22  ;;  %v3872_v23 = vpop.f32.mrb[62].mxu0 }
 0x175   : > { %v3911_v43 = vadd.f32 %v3910_v42, %v3909_v38  ;;  %v3912_v44 = vpop.f32.mrb[62].mxu1  ;;  %v3873_v45 = vpop.f32.mrb[63].mxu0 }
 0x176   : > { %v3913_v46 = vpop.f32.mrb[63].mxu1  ;;  %v2740_v47 = vadd.f32 %v3871_v25, %v2676_v50 }
 0x178   : > { %v2804_v48 = vadd.f32 %v3911_v43, %v2740_v47 }
 0x17a   : > { %v3931_v49 = vpop.f32.mrb[64].mxu0 }
 0x17b   : > { %v3971_v51 = vpop.f32.mrb[64].mxu1  ;;  %v3932_v36 = vpop.f32.mrb[65].mxu0 }
 0x17c   : > { %v3933_v21 = vadd.f32 %v3932_v36, %v3931_v49  ;;  %v3972_v53 = vpop.f32.mrb[65].mxu1  ;;  %v3934_v39 = vpop.f32.mrb[66].mxu0 }
 0x17d   : > { %v3973_v37 = vadd.f32 %v3972_v53, %v3971_v51  ;;  %v3974_v55 = vpop.f32.mrb[66].mxu1  ;;  %v3935_v56 = vpop.f32.mrb[67].mxu0 }
 0x17e   : > { %v2844_v40 = vadd.f32 %v3933_v21, %v2780_v62  ;;  %v3936_v57 = vadd.f32 %v3935_v56, %v3934_v39  ;;  %v3975_v58 = vpop.f32.mrb[67].mxu1 }
 0x17f   : > { %v3976_v41 = vadd.f32 %v3975_v58, %v3974_v55 }
 0x180   : > { %v2908_v59 = vadd.f32 %v3973_v37, %v2844_v40  ;;  %v2847_v60 = vadd.f32 %v3936_v57, %v2783_v0 }
 0x182   : > { %v2911_v61 = vadd.f32 %v3976_v41, %v2847_v60  ;;  %v3937_v63 = vpop.f32.mrb[68].mxu0 }
 0x183   : > { %v3977_v2 = vpop.f32.mrb[68].mxu1  ;;  %v3938_v50 = vpop.f32.mrb[69].mxu0 }
 0x184   : > { %v3939_v7 = vadd.f32 %v3938_v50, %v3937_v63  ;;  %v3978_v52 = vpop.f32.mrb[69].mxu1  ;;  %v3940_v54 = vpop.f32.mrb[70].mxu0 }
 0x185   : > { %v3979_v9 = vadd.f32 %v3978_v52, %v3977_v2  ;;  %v3980_v10 = vpop.f32.mrb[70].mxu1  ;;  %v3941_v11 = vpop.f32.mrb[71].mxu0 }
 0x186   : > { %v2852_v12 = vadd.f32 %v3939_v7, %v2788_v1  ;;  %v3942_v13 = vadd.f32 %v3941_v11, %v3940_v54  ;;  %v3981_v14 = vpop.f32.mrb[71].mxu1 }
 0x187   : > { %v3982_v15 = vadd.f32 %v3981_v14, %v3980_v10 }
 0x188   : > { %v2916_v62 = vadd.f32 %v3979_v9, %v2852_v12  ;;  %v2855_v16 = vadd.f32 %v3942_v13, %v2791_v19 }
 0x18a   : > { %v2919_v17 = vadd.f32 %v3982_v15, %v2855_v16  ;;  %v3943_v18 = vpop.f32.mrb[72].mxu0 }
 0x18b   : > { %v3983_v20 = vpop.f32.mrb[72].mxu1  ;;  %v3944_v0 = vpop.f32.mrb[73].mxu0 }
 0x18c   : > { %v3945_v24 = vadd.f32 %v3944_v0, %v3943_v18  ;;  %v3984_v4 = vpop.f32.mrb[73].mxu1  ;;  %v3946_v26 = vpop.f32.mrb[74].mxu0 }
 0x18d   : > { %v3985_v8 = vadd.f32 %v3984_v4, %v3983_v20  ;;  %v3986_v27 = vpop.f32.mrb[74].mxu1  ;;  %v3947_v5 = vpop.f32.mrb[75].mxu0 }
 0x18e   : > { %v2860_v28 = vadd.f32 %v3945_v24, %v2796_v6  ;;  %v3948_v29 = vadd.f32 %v3947_v5, %v3946_v26  ;;  %v3987_v30 = vpop.f32.mrb[75].mxu1 }
 0x18f   : > { %v3988_v31 = vadd.f32 %v3987_v30, %v3986_v27 }
 0x190   : > { %v2924_v1 = vadd.f32 %v3985_v8, %v2860_v28  ;;  %v2863_v32 = vadd.f32 %v3948_v29, %v2799_v35 }
 0x192   : > { %v2927_v33 = vadd.f32 %v3988_v31, %v2863_v32  ;;  %v3949_v34 = vpop.f32.mrb[76].mxu0 }
 0x193   : > { %v3989_v22 = vpop.f32.mrb[76].mxu1  ;;  %v3950_v19 = vpop.f32.mrb[77].mxu0 }
 0x194   : > { %v3951_v38 = vadd.f32 %v3950_v19, %v3949_v34  ;;  %v3990_v3 = vpop.f32.mrb[77].mxu1  ;;  %v3952_v42 = vpop.f32.mrb[78].mxu0 }
 0x195   : > { %v3991_v25 = vadd.f32 %v3990_v3, %v3989_v22  ;;  %v3992_v43 = vpop.f32.mrb[78].mxu1  ;;  %v3953_v23 = vpop.f32.mrb[79].mxu0 }
 0x196   : > { %v2868_v44 = vadd.f32 %v3951_v38, %v2804_v48  ;;  %v3993_v45 = vpop.f32.mrb[79].mxu1 }
 0x198   : > { %v5057_v46 = vadd.f32 %v3991_v25, %v2868_v44 }
 0x19a   : > { %v4011_v6 = vpop.f32.mrb[80].mxu0 }
 0x19b   : > { %v4051_v47 = vpop.f32.mrb[80].mxu1  ;;  %v4012_v49 = vpop.f32.mrb[81].mxu0 }
 0x19c   : > { %v4013_v51 = vadd.f32 %v4012_v49, %v4011_v6  ;;  %v4052_v36 = vpop.f32.mrb[81].mxu1  ;;  %v4014_v35 = vpop.f32.mrb[82].mxu0 }
 0x19d   : > { %v4053_v21 = vadd.f32 %v4052_v36, %v4051_v47  ;;  %v4054_v53 = vpop.f32.mrb[82].mxu1  ;;  %v4015_v39 = vpop.f32.mrb[83].mxu0 }
 0x19e   : > { %v2972_v37 = vadd.f32 %v4013_v51, %v2908_v59  ;;  %v4016_v55 = vadd.f32 %v4015_v39, %v4014_v35  ;;  %v4055_v56 = vpop.f32.mrb[83].mxu1 }
 0x19f   : > { %v4056_v40 = vadd.f32 %v4055_v56, %v4054_v53 }
 0x1a0   : > { %v2975_v57 = vadd.f32 %v4016_v55, %v2911_v61  ;;  %v3036_v58 = vadd.f32 %v4053_v21, %v2972_v37 }
 0x1a2   : > { %v4017_v41 = vpop.f32.mrb[84].mxu0  ;;  %3067 = vadd.xlane.f32.xlu0 %v3036_v58  ;;  %v3039_v48 = vadd.f32 %v4056_v40, %v2975_v57 }
 0x1a3   : > { %v4057_v60 = vpop.f32.mrb[84].mxu1  ;;  %v4018_v63 = vpop.f32.mrb[85].mxu0 }
 0x1a4   : > { %v4019_v2 = vadd.f32 %v4018_v63, %v4017_v41  ;;  %v4058_v50 = vpop.f32.mrb[85].mxu1  ;;  %v4020_v7 = vpop.f32.mrb[86].mxu0  ;;  %3069 = vadd.xlane.f32.xlu1 %v3039_v48 }
 0x1a5   : > { %v4059_v52 = vadd.f32 %v4058_v50, %v4057_v60  ;;  %v4060_v54 = vpop.f32.mrb[86].mxu1  ;;  %v4021_v9 = vpop.f32.mrb[87].mxu0 }
 0x1a6   : > { %v2980_v10 = vadd.f32 %v4019_v2, %v2916_v62  ;;  %v4022_v11 = vadd.f32 %v4021_v9, %v4020_v7  ;;  %v4061_v59 = vpop.f32.mrb[87].mxu1 }
 0x1a7   : > { %v4062_v12 = vadd.f32 %v4061_v59, %v4060_v54 }
 0x1a8   : > { %v2983_v13 = vadd.f32 %v4022_v11, %v2919_v17  ;;  %v3044_v14 = vadd.f32 %v4059_v52, %v2980_v10 }
 0x1aa   : > { %v4023_v61 = vpop.f32.mrb[88].mxu0  ;;  %3071 = vadd.xlane.f32.xlu1 %v3044_v14  ;;  %v3047_v15 = vadd.f32 %v4062_v12, %v2983_v13 }
 0x1ab   : > { %v4063_v16 = vpop.f32.mrb[88].mxu1  ;;  %v4024_v18 = vpop.f32.mrb[89].mxu0 }
 0x1ac   : > { %v4025_v20 = vadd.f32 %v4024_v18, %v4023_v61  ;;  %v4064_v0 = vpop.f32.mrb[89].mxu1  ;;  %v4026_v24 = vpop.f32.mrb[90].mxu0  ;;  %3073 = vadd.xlane.f32.xlu0 %v3047_v15 }
 0x1ad   : > { %v4065_v4 = vadd.f32 %v4064_v0, %v4063_v16  ;;  %v4066_v26 = vpop.f32.mrb[90].mxu1  ;;  %v4027_v8 = vpop.f32.mrb[91].mxu0 }
 0x1ae   : > { %v2988_v27 = vadd.f32 %v4025_v20, %v2924_v1  ;;  %v4028_v5 = vadd.f32 %v4027_v8, %v4026_v24  ;;  %v4067_v62 = vpop.f32.mrb[91].mxu1 }
 0x1af   : > { %v4068_v28 = vadd.f32 %v4067_v62, %v4066_v26  ;;  %v3560_v26 = vld [vmem:[%s5099_s3] ss:$0 sm:$0xff] }
 0x1b0   : > { %v2991_v29 = vadd.f32 %v4028_v5, %v2927_v33  ;;  %v3052_v30 = vadd.f32 %v4065_v4, %v2988_v27 }
 0x1b2   : > { %v4029_v17 = vpop.f32.mrb[92].mxu0  ;;  %3075 = vadd.xlane.f32.xlu1 %v3052_v30  ;;  %v3055_v31 = vadd.f32 %v4068_v28, %v2991_v29  ;;  %v3561_v29 = vld [vmem:[%s5100_s4] ss:$0 sm:$0xff] }
 0x1b3   : > { %v4069_v32 = vpop.f32.mrb[92].mxu1  ;;  %v4030_v34 = vpop.f32.mrb[93].mxu0 }
 0x1b4   : > { %v4031_v22 = vadd.f32 %v4030_v34, %v4029_v17  ;;  %v4070_v19 = vpop.f32.mrb[93].mxu1  ;;  %v4032_v38 = vpop.f32.mrb[94].mxu0 }
 0x1b5   : > { %v4071_v3 = vadd.f32 %v4070_v19, %v4069_v32  ;;  %v4072_v42 = vpop.f32.mrb[94].mxu1  ;;  %v4033_v25 = vpop.f32.mrb[95].mxu0 }
 0x1b6   : > { %v2996_v43 = vadd.f32 %v4031_v22, %v5057_v46  ;;  %v4073_v23 = vpop.f32.mrb[95].mxu1 }
 0x1b8   : > { %v3060_v1 = vadd.f32 %v4071_v3, %v2996_v43 }
 0x1ba   : > { %v3080_v44 = vsel %vm3079_vm0, %v3060_v1, 0.0 }
 0x1bb   : > { %3081 = vadd.xlane.f32.xlu0 %v3080_v44 }
 0x1bf   : > { %3077 = vadd.xlane.f32.xlu0 %v3055_v31 }
 0x22f   : > { %v3068_v33 = vpop.xlane.xlu0 %3067 }
 0x230   : > { %v3084_v45 = vmul.f32 0.0078125, %v3068_v33 }
 0x231   : > { %v3070_v6 = vpop.xlane.xlu1 %3069 }
 0x232   : > { %v3091_v47 = vsub.f32 %v3036_v58, %v3084_v45  ;;  %v3085_v49 = vmul.f32 0.0078125, %v3070_v6 }
 0x234   : > { %v3092_v51 = vsub.f32 %v3039_v48, %v3085_v49  ;;  %v3098_v36 = vmul.f32 %v3091_v47, %v3091_v47 }
 0x236   : > { %3105 = vadd.xlane.f32.xlu1 %v3098_v36  ;;  %v3099_v35 = vmul.f32 %v3092_v51, %v3092_v51 }
 0x237   : > { %v3072_v21 = vpop.xlane.xlu1 %3071 }
 0x238   : > { %v3086_v53 = vmul.f32 0.0078125, %v3072_v21  ;;  %3107 = vadd.xlane.f32.xlu0 %v3099_v35 }
 0x239   : > { %v3074_v46 = vpop.xlane.xlu0 %3073 }
 0x23a   : > { %v3093_v39 = vsub.f32 %v3044_v14, %v3086_v53  ;;  %v3087_v37 = vmul.f32 0.0078125, %v3074_v46 }
 0x23c   : > { %v3094_v55 = vsub.f32 %v3047_v15, %v3087_v37  ;;  %v3100_v56 = vmul.f32 %v3093_v39, %v3093_v39 }
 0x23e   : > { %3109 = vadd.xlane.f32.xlu1 %v3100_v56  ;;  %v3101_v40 = vmul.f32 %v3094_v55, %v3094_v55 }
 0x23f   : > { %v3076_v57 = vpop.xlane.xlu1 %3075 }
 0x240   : > { %v3088_v41 = vmul.f32 0.0078125, %v3076_v57  ;;  %3111 = vadd.xlane.f32.xlu0 %v3101_v40 }
 0x242   : > { %v5061_v60 = vsub.f32 %v3052_v30, %v3088_v41 }
 0x244   : > { %v3102_v58 = vmul.f32 %v5061_v60, %v5061_v60 }
 0x246   : > { %3113 = vadd.xlane.f32.xlu1 %v3102_v58 }
 0x248   : > { %v3082_v48 = vpop.xlane.xlu0 %3081 }
 0x249   : > { %v3090_v63 = vmul.f32 0.0078125, %v3082_v48 }
 0x24b   : > { %v5065_v2 = vsub.f32 %v3060_v1, %v3090_v63 }
 0x24c   : > { %v3078_v50 = vpop.xlane.xlu0 %3077 }
 0x24d   : > { %v3089_v7 = vmul.f32 0.0078125, %v3078_v50  ;;  %v3104_v52 = vmul.f32 %v5065_v2, %v5065_v2 }
 0x24f   : > { %v5069_v54 = vsub.f32 %v3055_v31, %v3089_v7  ;;  %v3117_v9 = vsel %vm3079_vm0, %v3104_v52, 0.0 }
 0x250   : > { %3118 = vadd.xlane.f32.xlu1 %v3117_v9 }
 0x251   : > { %v3103_v10 = vmul.f32 %v5069_v54, %v5069_v54 }
 0x253   : > { %3115 = vadd.xlane.f32.xlu0 %v3103_v10 }
 0x2c3   : > { %v3106_v11 = vpop.xlane.xlu1 %3105 }
 0x2c4   : > { %v3120_v59 = vmul.f32 0.0078125, %v3106_v11 }
 0x2c5   : > { %v3108_v12 = vpop.xlane.xlu0 %3107 }
 0x2c6   : > { %v3127_v13 = vadd.f32 1e-05, %v3120_v59  ;;  %v3121_v14 = vmul.f32 0.0078125, %v3108_v12 }
 0x2c8   : > { %4301 = vrsqrt.f32 %v3127_v13  ;;  %v3128_v61 = vadd.f32 1e-05, %v3121_v14 }
 0x2ca   : > { %4303 = vrsqrt.f32 %v3128_v61 }
 0x2cb   : > { %v3110_v15 = vpop.xlane.xlu1 %3109 }
 0x2cc   : > { %v3122_v16 = vmul.f32 0.0078125, %v3110_v15 }
 0x2cd   : > { %v3112_v18 = vpop.xlane.xlu0 %3111 }
 0x2ce   : > { %v3129_v20 = vadd.f32 1e-05, %v3122_v16  ;;  %v3123_v0 = vmul.f32 0.0078125, %v3112_v18 }
 0x2d0   : > { %4305 = vrsqrt.f32 %v3129_v20  ;;  %v3130_v24 = vadd.f32 1e-05, %v3123_v0 }
 0x2d2   : > { %v4302_v4 = vpop.eup %4301  ;;  %4307 = vrsqrt.f32 %v3130_v24 }
 0x2d3   : > { %v3141_v8 = vmul.f32 %v4302_v4, %v3091_v47  ;;  %v3114_v5 = vpop.xlane.xlu1 %3113 }
 0x2d4   : > { %v4304_v27 = vpop.eup %4303  ;;  %v3124_v17 = vmul.f32 0.0078125, %v3114_v5 }
 0x2d5   : > { %v3154_v62 = vmul.f32 %v3560_v26, %v3141_v8  ;;  %v3142_v28 = vmul.f32 %v4304_v27, %v3092_v51 }
 0x2d6   : > { %v3131_v38 = vadd.f32 1e-05, %v3124_v17 }
 0x2d7   : > { %v3155_v30 = vmul.f32 %v3560_v26, %v3142_v28  ;;  %v3167_v31 = vadd.f32 %v3561_v29, %v3154_v62 }
 0x2d8   : > { %4309 = vrsqrt.f32 %v3131_v38 }
 0x2d9   : > { %v3168_v32 = vadd.f32 %v3561_v29, %v3155_v30 }
 0x2da   : > { %v4306_v34 = vpop.eup %4305 }
 0x2db   : > { %v3581_v22 = vpack.c.bf16 %v3168_v32, %v3167_v31  ;;  %v3143_v19 = vmul.f32 %v4306_v34, %v3093_v39 }
 0x2dc   : > { %v4308_v3 = vpop.eup %4307 }
 0x2dd   : > { %3582 = vst [vmem:[%s5084_s29] sm:$0xff] %v3581_v22   ;;  %v3156_v42 = vmul.f32 %v3560_v26, %v3143_v19  ;;  %v3144_v25 = vmul.f32 %v4308_v3, %v3094_v55  ;;  %v3119_v43 = vpop.xlane.xlu1 %3118 }
 0x2de   : > { %v3126_v23 = vmul.f32 0.0078125, %v3119_v43 }
 0x2df   : > { %v3157_v1 = vmul.f32 %v3560_v26, %v3144_v25  ;;  %v3169_v45 = vadd.f32 %v3561_v29, %v3156_v42 }
 0x2e0   : > { %v3133_v44 = vadd.f32 1e-05, %v3126_v23  ;;  %v3116_v33 = vpop.xlane.xlu0 %3115 }
 0x2e1   : > { %v3170_v6 = vadd.f32 %v3561_v29, %v3157_v1  ;;  %v3125_v47 = vmul.f32 0.0078125, %v3116_v33 }
 0x2e2   : > { %4311 = vrsqrt.f32 %v3133_v44  ;;  %v4310_v36 = vpop.eup %4309 }
 0x2e3   : > { %v3586_v49 = vpack.c.bf16 %v3170_v6, %v3169_v45  ;;  %v3132_v51 = vadd.f32 1e-05, %v3125_v47  ;;  %v3145_v21 = vmul.f32 %v4310_v36, %v5061_v60 }
 0x2e5   : > { %3593 = vst [vmem:[%s5084_s29 + $0x8] sm:$0xff] %v3586_v49   ;;  %4313 = vrsqrt.f32 %v3132_v51  ;;  %v3158_v37 = vmul.f32 %v3560_v26, %v3145_v21 }
 0x2e7   : > { %v3171_v41 = vadd.f32 %v3561_v29, %v3158_v37 }
 0x2ec   : > { %v4312_v35 = vpop.eup %4311 }
 0x2ed   : > { %v3147_v53 = vmul.f32 %v4312_v35, %v5065_v2 }
 0x2ef   : > { %v4314_v46 = vpop.eup %4313  ;;  %v3160_v39 = vmul.f32 %v3560_v26, %v3147_v53 }
 0x2f0   : > { %v3146_v55 = vmul.f32 %v4314_v46, %v5069_v54 }
 0x2f1   : > { %v3173_v56 = vadd.f32 %v3561_v29, %v3160_v39 }
 0x2f2   : > { %v3159_v40 = vmul.f32 %v3560_v26, %v3146_v55 }
 0x2f3   : > { %v3577_v57 = vpack.c.bf16 %v3173_v56, %v3173_v56 }
 0x2f4   : > { %v3172_v58 = vadd.f32 %v3561_v29, %v3159_v40 }
 0x2f5   : > { %3209 = vst [vmem:[%s5084_s29 + $0x18] sm:$0x1] %v3577_v57 }
 0x2f6   : > { %v3591_v48 = vpack.c.bf16 %v3172_v58, %v3171_v41 }
 0x2f8   : > { %3594 = vst [vmem:[%s5084_s29 + $0x10] sm:$0xff] %v3591_v48  }
 0x2f9 PF: > { %s15_s18 = sadd.s32 1, %s4321_s18  }
 0x2fa   : > { %p12_p4 = scmp.ge.s32.totalorder %s15_s18, 4  }
 0x2fc   :  { %14 = sbr.rel (!%p12_p4) target bundleno = 1 (0x1), region = 70 }

// kernel: forward.3
= control target key start
LH: loop header
LB: loop body
LE: loop exit
PB: predicated region body
PF: predicated region fallthrough
CT: control target
= control target key end

     0   :  { %s6696_s0 = inlined_call_operand.vmem [shape: bf16[2,50,128], index: 0, kind: input, shape index: {}]   ;;  %s6697_s1 = inlined_call_operand.vmem [shape: f32[54,54], index: 1, kind: input, shape index: {}]   ;;  %s6698_s2 = inlined_call_operand.vmem [shape: f32[3,1,128], index: 2, kind: input, shape index: {}]   ;;  %s6699_s3 = inlined_call_operand.vmem [shape: f32[3,1,128], index: 3, kind: input, shape index: {}]   ;;  %s6700_s4 = inlined_call_operand.vmem [shape: bf16[3,128,384], index: 4, kind: input, shape index: {}]   ;;  %s6701_s5 = inlined_call_operand.vmem [shape: f32[3,1,384], index: 5, kind: input, shape index: {}]   ;;  %s6702_s6 = inlined_call_operand.vmem [shape: bf16[3,128,128], index: 6, kind: input, shape index: {}]   ;;  %s6703_s7 = inlined_call_operand.vmem [shape: f32[3,1,128], index: 7, kind: input, shape index: {}]   ;;  %s6704_s8 = inlined_call_operand.vmem [shape: f32[3,1,128], index: 8, kind: input, shape index: {}]   ;;  %s6705_s9 = inlined_call_operand.vmem [shape: f32[3,1,128], index: 9, kind: input, shape index: {}]   ;;  %s6706_s10 = inlined_call_operand.vmem [shape: bf16[3,128,512], index: 10, kind: input, shape index: {}]   ;;  %s6707_s11 = inlined_call_operand.vmem [shape: f32[3,1,512], index: 11, kind: input, shape index: {}]   ;;  %s6708_s12 = inlined_call_operand.vmem [shape: bf16[3,512,128], index: 12, kind: input, shape index: {}]   ;;  %s6709_s13 = inlined_call_operand.vmem [shape: f32[3,1,128], index: 13, kind: input, shape index: {}]   ;;  %s6710_s14 = inlined_call_operand.vmem [shape: f32[1,128], index: 14, kind: input, shape index: {}]   ;;  %s6711_s15 = inlined_call_operand.vmem [shape: f32[1,128], index: 15, kind: input, shape index: {}]   ;;  %s6712_s16 = inlined_call_operand.vmem [shape: bf16[128,128], index: 16, kind: input, shape index: {}]   ;;  %s6713_s17 = inlined_call_operand.hbm [shape: f32[2,4,128], index: 17, kind: output, shape index: {}]  }
   0x1   :  { %6732 = sst [smem:[#allocation20_spill]] %s6696_s0 }
   0x2   :  { %6733 = sst [smem:[#allocation21_spill]] %s6697_s1 }
   0x3   :  { %6734 = sst [smem:[#allocation22_spill]] %s6699_s3 }
   0x4   :  { %6735 = sst [smem:[#allocation23_spill]] %s6700_s4 }
   0x5   :  { %6736 = sst [smem:[#allocation24_spill]] %s6702_s6 }
   0x6   :  { %6737 = sst [smem:[#allocation25_spill]] %s6710_s14 }
   0x7   :  { %6738 = sst [smem:[#allocation26_spill]] %s6711_s15 }
   0x8   :  { %6739 = sst [smem:[#allocation27_spill]] %s6712_s16 }
   0x9   :  { %6740 = sst [smem:[#allocation28_spill]] %s6713_s17 }
   0xa   :  { %22 = vsyncpa [#allocation4], 0 }
   0xb   :  { %24 = vsyncpa [#allocation4 + $0x1], 0  ;;  %s5434_s24 = smov 0   ;;  %s5436_s25 = smov 0  }
   0xc   :  { %s5438_s26 = smov 0   ;;  %s5440_s27 = smov 0  }
   0xd   :  { %s5442_s28 = smov 0   ;;  %s5444_s29 = smov 0  }
   0xe   :  { %s5446_s0 = smov 0   ;;  %s5448_s30 = smov 0  }
   0xf LB: > { %6741 = sst [smem:[#allocation6_spill]] %s5307_s24  ;;  %s4117_s18 = sadd.s32 4294967295, %s5335_s30   ;;  %s5335_s30 = sphi %s5448_s30, %s30_s30   ;;  %s5331_s0 = sphi %s5446_s0, %s6788_s0   ;;  %s5327_s29 = sphi %s5444_s29, %s6787_s29   ;;  %s5323_s28 = sphi %s5442_s28, %s6786_s28   ;;  %s5319_s27 = sphi %s5440_s27, %s6785_s27   ;;  %s5315_s26 = sphi %s5438_s26, %s6784_s26   ;;  %s5311_s25 = sphi %s5436_s25, %s6783_s25   ;;  %s5307_s24 = sphi %s5434_s24, %s6782_s24  }
  0x10   : > { %6742 = sst [smem:[#allocation7_spill]] %s5311_s25  ;;  %s4118_s19 = sadd.s32 4294967294, %s5335_s30  }
  0x11   : > { %6743 = sst [smem:[#allocation8_spill]] %s5315_s26  ;;  %s39_s1 = sadd.s32 1, %s5327_s29 }
  0x12   : > { %6744 = sst [smem:[#allocation9_spill]] %s5319_s27  ;;  %p40_p0 = scmp.ge.s32.totalorder %s39_s1, 3 }
  0x13   : > { %6745 = sst [smem:[#allocation10_spill]] %s5323_s28  ;;  %s42_s20 = sadd.s32 1, %s5331_s0 }
  0x14   : > { %6746 = sst [smem:[#allocation11_spill]] %s5327_s29  ;;  %p481_p1 = scmp.ne.s32.totalorder %s5315_s26, %s5311_s25 }
  0x15   : > { %6747 = sst [smem:[#allocation12_spill]] %s5331_s0  ;;  %p482_p2 = scmp.eq.s32.totalorder %s4117_s18, 5 }
  0x16   : > { %6748 = sst [smem:[#allocation13_spill]] %s5335_s30  ;;  %s6790_s1 = smov (%p40_p0, %s39_s1), 0 }
  0x17   : > { %6749 = sst [smem:[#allocation14_spill]] %s6790_s1  ;;  %s6792_s20 = smov (!%p40_p0, %s42_s20), %s5331_s0 }
  0x18   : > { %p5483_p3 = por %p482_p2, %p481_p1  ;;  %p487_p4 = scmp.ne.s32.totalorder %s5311_s25, %s5307_s24 }
  0x19   : > { %p44_p5 = scmp.ge.s32.totalorder %s6792_s20, 2  ;;  %p488_p6 = scmp.eq.s32.totalorder %s4118_s19, 5 }
  0x1a   : > { %s6750_s21 = scalar_select %p5483_p3, 1, 0 }
  0x1b   : > { %p4121_p7 = scmp.ge.s32.totalorder %s5335_s30, 1  ;;  %p608_p8 = scmp.lt.s32.totalorder %s5335_s30, 7 }
  0x1c   : > { %6751 = sst [smem:[#allocation15_spill]] %s6750_s21  ;;  %s6794_s20 = smov (%p44_p5, %s6792_s20), 0 }
  0x1d   : > { %6752 = sst [smem:[#allocation16_spill]] %s6794_s20  ;;  %p5493_p9 = por %p488_p6, %p487_p4 }
  0x1e   : > { %p609_p10 = pnand %p4121_p7, %p608_p8  ;;  %s468_s23 = ssub.s32 %s5331_s0, %s6794_s20 }
  0x1f   : > { %s6753_s22 = scalar_select %p5493_p9, 1, 0 }
  0x20   : > { %s471_s18 = sadd.s32 1, %s5315_s26  ;;  %p469_p11 = scmp.eq.s32.totalorder %s468_s23, 0 }
  0x21   : > { %6754 = sst [smem:[#allocation17_spill]] %s6753_s22  ;;  %612 = sbr.rel (%p609_p10) target bundleno = 4579 (0x11e3), region = 88 }
  0x22   : > { %s5501_s1 = scalar_select %p469_p11, %s5315_s26, %s471_s18  }
  0x24   : > { %6755 = sst [smem:[#allocation18_spill]] %s5501_s1 }
  0x28   : > { %s6719_s19 = sand.u32 1, %s5311_s25   ;;  %p706_p12 = scmp.lt.s32.totalorder %s5323_s28, 1 }
  0x29   : > { %s5507_s29 = sshll.u32 %s6719_s19, 2  ;;  %p711_p13 = scmp.lt.s32.totalorder %s5319_s27, 2 }
  0x2a   : > { %s707_s22 = scalar_select %p706_p12, %s5323_s28, 1 }
  0x2b   : > { %s5512_s24 = scalar_select %p711_p13, %s5319_s27, 2 }
  0x2c   : > { %s4720_s23 = smul.u32 28, %s707_s22  ;;  %s6757_s21 = sld [smem:[#allocation20_spill]] }
  0x2d   : > { %s4721_s28 = smul.u32 192, %s5512_s24  ;;  %s4310_s14 = sshll.u32 %s5512_s24, 6 }
  0x2e   : > { %s4722_s15 = smul.u32 3, %s5512_s24  ;;  %s6758_s4 = sld [smem:[#allocation23_spill]] }
  0x2f   : > { %s6759_s6 = sld [smem:[#allocation24_spill]]  ;;  %s4311_s20 = sshll.u32 %s5512_s24, 8 }
  0x30   : > { %s5541_s17 = scalar_lea.vmem %s6701_s5, %s4722_s15  ;;  %s5560_s0 = scalar_lea.vmem %s6706_s10, %s4311_s20 }
  0x31   : > { %s5570_s3 = scalar_lea.vmem %s6708_s12, %s4311_s20  ;;  %s6760_s16 = sld [smem:[#allocation9_spill]] }
  0x32   : > { %s710_s25 = scalar_lea.vmem %s6757_s21, %s4720_s23 }
  0x34   : > { %s5531_s22 = scalar_lea.vmem %s6758_s4, %s4721_s28  ;;  %s756_s28 = scalar_lea.vmem %s6709_s13, %s5512_s24 }
  0x35   : > { %s5536_s19 = scalar_lea.vmem %s6759_s6, %s4310_s14  ;;  %s4129_s14 = sshll.u32 %s5512_s24, 2 }
  0x36   : > { %s5565_s30 = scalar_lea.vmem %s6707_s11, %s4129_s14  ;;  %s705_s4 = scalar_lea.vmem [#allocation3], %s5507_s29 }
  0x37   : > { %p4132_p0 = scmp.ne.s32.totalorder %s6760_s16, 0 }
  0x38   : > { %v4314_v0 = vld [vmem:[%s710_s25] sm:$0xff] (!%p4132_p0)   ;;  %v776_v1 = vlaneseq (!%p4132_p0)  ;;  %v4325_v2 = vld [vmem:[%s710_s25 + $0x8] sm:$0xff] (!%p4132_p0)   ;;  %v4326_v3 = vld [vmem:[%s710_s25 + $0x10] sm:$0xff] (!%p4132_p0)   ;;  %vm780_vm0 = vcmask (!%p4132_p0), 1041408  }
  0x39   : > { %761 = sbr.rel (%p4132_p0) target bundleno = 66 (0x42), region = 92  ;;  %v4315_v4 = vunpack.c.l.bf16 (!%p4132_p0), %v4314_v0  ;;  %v4316_v5 = vunpack.c.h.bf16 (!%p4132_p0), %v4314_v0  ;;  %v4319_v6 = vunpack.c.l.bf16 (!%p4132_p0), %v4325_v2  ;;  %v4320_v7 = vunpack.c.h.bf16 (!%p4132_p0), %v4325_v2  ;;  %v768_v8 = vld [vmem:[%s710_s25 + $0x18] sm:$0x1] (!%p4132_p0) }
  0x3a   : > { %v777_v9 = vshrl.u32 (!%p4132_p0), %v776_v1, 7  ;;  %v4323_v10 = vunpack.c.l.bf16 (!%p4132_p0), %v4326_v3  ;;  %v4324_v11 = vunpack.c.h.bf16 (!%p4132_p0), %v4326_v3  ;;  %v775_v13 = vunpack.c.l.bf16 (!%p4132_p0), %v768_v8 }
  0x3b   : > { %782 = vst [vmem:[#allocation2] sm:$0xff] (!%p4132_p0), %v4315_v4  ;;  %783 = vst [vmem:[#allocation2 + $0x8] sm:$0xff] (!%p4132_p0), %v4316_v5 }
  0x3c   : > { %784 = vst [vmem:[#allocation2 + $0x10] sm:$0xff] (!%p4132_p0), %v4319_v6  ;;  %785 = vst [vmem:[#allocation2 + $0x18] sm:$0xff] (!%p4132_p0), %v4320_v7  ;;  %v778_v12 = vsub.s32 (!%p4132_p0), 0, %v777_v9 }
  0x3d   : > { %786 = vst [vmem:[#allocation2 + $0x20] sm:$0xff] (!%p4132_p0), %v4323_v10  ;;  %787 = vst [vmem:[#allocation2 + $0x28] sm:$0xff] (!%p4132_p0), %v4324_v11 }
  0x3e   : > { %v779_v14 = vrot.slane (!%p4132_p0), %v4315_v4, %v778_v12 }
  0x40   : > { %v781_v15 = vsel %vm780_vm0, %v775_v13, %v779_v14 }
  0x41   : > { %788 = vst [vmem:[#allocation2 + $0x30] sm:$0x3f] %v781_v15 }
  0x42 PF: > { %vm810_vm1 = vcmask 1045504   ;;  %v4845_v24 = vld [vmem:[%s5531_s22 + $0x4] ss:$12 sps:$4 sm:$0xff]   ;;  %v4847_v25 = vld [vmem:[%s5531_s22] ss:$12 sps:$4 sm:$0xff]   ;;  %v5337_v11 = vmov 0  }
  0x43   : > { %v4848_v26 = vld [vmem:[%s5531_s22 + $0x1c] ss:$12 sps:$4 sm:$0xff]   ;;  %1086 = vmatprep.subr.bf16.mxu0 %v4845_v24  ;;  %v4851_v57 = vld [vmem:[%s5531_s22 + $0x18] ss:$12 sps:$4 sm:$0xff]   ;;  %v4852_v58 = vld [vmem:[%s5531_s22 + $0x34] ss:$12 sps:$4 sm:$0xff]   ;;  %1118 = vmatprep.mubr.bf16.mxu0 %v5337_v11 }
  0x44   : > { %v789_v16 = vld [vmem:[#allocation2] sm:$0xff]  ;;  %v790_v18 = vld [vmem:[#allocation2 + $0x8] sm:$0xff]  ;;  %1087 = vmatpush1.bf16.msra.mxu0 %v4847_v25  ;;  %v4855_v60 = vld [vmem:[%s5531_s22 + $0x30] ss:$12 sps:$4 sm:$0xff]   ;;  %s6762_s20 = sld [smem:[#allocation22_spill]]  ;;  %vm1236_vm2 = vcmask 261120  }
  0x45   : > { %v791_v17 = vld [vmem:[#allocation2 + $0x10] sm:$0xff]  ;;  %798 = vadd.xlane.f32.xlu0 %v789_v16  ;;  %v792_v19 = vld [vmem:[#allocation2 + $0x18] sm:$0xff]  ;;  %1088 = vmatprep.subr.bf16.mxu0 %v4848_v26  ;;  %v4854_v59 = vld [vmem:[%s5531_s22 + $0x20] ss:$12 sps:$4 sm:$0xff]   ;;  %vm1438_vm3 = vcmask 1042432   ;;  %s6764_s15 = sld [smem:[#allocation21_spill]] }
  0x46   : > { %802 = vadd.xlane.f32.xlu1 %v791_v17  ;;  %v793_v20 = vld [vmem:[#allocation2 + $0x20] sm:$0xff]  ;;  %v794_v21 = vld [vmem:[#allocation2 + $0x28] sm:$0xff]  ;;  %v4862_v1 = vld [vmem:[%s5531_s22 + $0x50] ss:$12 sps:$4 sm:$0xff]   ;;  %vm1339_vm4 = vcmask 441344   ;;  %vm1358_vm5 = vcmask 439296  }
  0x47   : > { %v4850_v27 = vld [vmem:[%s5531_s22 + $0x8] ss:$12 sps:$4 sm:$0xff]   ;;  %v4856_v61 = vld [vmem:[%s5531_s22 + $0x4c] ss:$12 sps:$4 sm:$0xff]   ;;  %v4860_v0 = vld [vmem:[%s5531_s22 + $0x64] ss:$12 sps:$4 sm:$0xff]  }
  0x48   : > { %v795_v22 = vld [vmem:[#allocation2 + $0x30] sm:$0x3f]  ;;  %4504 = vmatprep.subr.bf16.mxu1 %v4850_v27  ;;  %1089 = vmatpush1.bf16.msra.mxu0 %v4851_v57  ;;  %v4858_v62 = vld [vmem:[%s5531_s22 + $0x38] ss:$12 sps:$4 sm:$0xff]   ;;  %v4863_v2 = vld [vmem:[%s5531_s22 + $0x60] ss:$12 sps:$4 sm:$0xff]  }
  0x49   : > { %800 = vadd.xlane.f32.xlu0 %v790_v18  ;;  %v811_v23 = vsel %vm810_vm1, %v795_v22, 0.0  ;;  %4505 = vmatpush3.bf16.msra.mxu1 %v4850_v27  ;;  %v4859_v63 = vld [vmem:[%s5531_s22 + $0x48] ss:$12 sps:$4 sm:$0xff]   ;;  %v4867_v5 = vld [vmem:[%s5531_s22 + $0x78] ss:$12 sps:$4 sm:$0xff]   ;;  %s5338_s18 = smov 96  }
  0x4a   : > { %804 = vadd.xlane.f32.xlu1 %v792_v19  ;;  %1090 = vmatprep.subr.bf16.mxu0 %v4852_v58  ;;  %v4864_v3 = vld [vmem:[%s5531_s22 + $0x7c] ss:$12 sps:$4 sm:$0xff]   ;;  %v4868_v6 = vld [vmem:[%s5531_s22 + $0x94] ss:$12 sps:$4 sm:$0xff]   ;;  %v4872_v9 = vld [vmem:[%s5531_s22 + $0xac] ss:$12 sps:$4 sm:$0xff]   ;;  %s6763_s14 = scalar_lea.vmem %s6762_s20, %s5512_s24  ;;  %s6768_s20 = scalar_lea.vmem %s6705_s9, %s5512_s24 }
  0x4b   : > { %4506 = vmatprep.subr.bf16.mxu1 %v4854_v59  ;;  %v4866_v4 = vld [vmem:[%s5531_s22 + $0x68] ss:$12 sps:$4 sm:$0xff]   ;;  %v4870_v7 = vld [vmem:[%s5531_s22 + $0x80] ss:$12 sps:$4 sm:$0xff]   ;;  %v4871_v8 = vld [vmem:[%s5531_s22 + $0x90] ss:$12 sps:$4 sm:$0xff]  }
  0x4c   : > { %1091 = vmatpush1.bf16.msra.mxu0 %v4855_v60  ;;  %v4874_v10 = vld [vmem:[%s5531_s22 + $0x98] ss:$12 sps:$4 sm:$0xff]   ;;  %v4875_v12 = vld [vmem:[%s5531_s22 + $0xa8] ss:$12 sps:$4 sm:$0xff]   ;;  %v4876_v13 = vld [vmem:[%s5531_s22 + $0xb0] ss:$12 sps:$4 sm:$0xff]   ;;  %s6761_s22 = scalar_lea.vmem %s6698_s2, %s5512_s24 }
  0x4d   : > { %806 = vadd.xlane.f32.xlu0 %v793_v20  ;;  %4507 = vmatpush3.bf16.msra.mxu1 %v4854_v59  ;;  %s5339_s1 = smov 64   ;;  %s5340_s21 = smov 32   ;;  %vm2476_vm6 = vcmask 523264   ;;  %vm2484_vm7 = vcmask 785408  }
  0x4e   : > { %808 = vadd.xlane.f32.xlu1 %v794_v21  ;;  %1092 = vmatprep.subr.bf16.mxu0 %v4856_v61 }
  0x4f   : > { %4508 = vmatprep.subr.bf16.mxu1 %v4858_v62 }
  0x50   : > { %1093 = vmatpush1.bf16.msra.mxu0 %v4859_v63 }
  0x51   : > { %812 = vadd.xlane.f32.xlu0 %v811_v23  ;;  %4509 = vmatpush3.bf16.msra.mxu1 %v4858_v62 }
  0x52   : > { %1094 = vmatprep.subr.bf16.mxu0 %v4860_v0  ;;  %4510 = vmatprep.subr.bf16.mxu1 %v4862_v1 }
  0x54   : > { %1095 = vmatpush1.bf16.msra.mxu0 %v4863_v2 }
  0x55   : > { %4511 = vmatpush3.bf16.msra.mxu1 %v4862_v1  ;;  %1096 = vmatprep.subr.bf16.mxu0 %v4864_v3 }
  0x56   : > { %4512 = vmatprep.subr.bf16.mxu1 %v4866_v4 }
  0x58   : > { %1097 = vmatpush1.bf16.msra.mxu0 %v4867_v5 }
  0x59   : > { %4513 = vmatpush3.bf16.msra.mxu1 %v4866_v4  ;;  %1098 = vmatprep.subr.bf16.mxu0 %v4868_v6 }
  0x5a   : > { %4514 = vmatprep.subr.bf16.mxu1 %v4870_v7 }
  0x5c   : > { %1099 = vmatpush1.bf16.msra.mxu0 %v4871_v8  ;;  %v941_v8 = vld [vmem:[%s5541_s17] sm:$0x7] }
  0x5d   : > { %4515 = vmatpush3.bf16.msra.mxu1 %v4870_v7  ;;  %1100 = vmatprep.subr.bf16.mxu0 %v4872_v9 }
  0x5e   : > { %4516 = vmatprep.subr.bf16.mxu1 %v4874_v10 }
  0x60   : > { %1101 = vmatpush1.bf16.msra.mxu0 %v4875_v12 }
  0x61   : > { %4517 = vmatpush3.bf16.msra.mxu1 %v4874_v10 }
  0x62   : > { %4518 = vmatprep.subr.bf16.mxu1 %v4876_v13 }
  0x65   : > { %4519 = vmatpush3.bf16.msra.mxu1 %v4876_v13 }
  0xd2   : > { %v799_v28 = vpop.xlane.xlu0 %798 }
  0xd3   : > { %v803_v29 = vpop.xlane.xlu1 %802  ;;  %v815_v30 = vmul.f32 0.0078125, %v799_v28 }
  0xd4   : > { %v817_v31 = vmul.f32 0.0078125, %v803_v29 }
  0xd5   : > { %v5583_v32 = vsub.f32 %v789_v16, %v815_v30 }
  0xd6   : > { %v5585_v33 = vsub.f32 %v791_v17, %v817_v31  ;;  %v801_v34 = vpop.xlane.xlu0 %800 }
  0xd7   : > { %v805_v35 = vpop.xlane.xlu1 %804  ;;  %v816_v36 = vmul.f32 0.0078125, %v801_v34  ;;  %v829_v37 = vmul.f32 %v5583_v32, %v5583_v32 }
  0xd8   : > { %v818_v38 = vmul.f32 0.0078125, %v805_v35  ;;  %v831_v39 = vmul.f32 %v5585_v33, %v5585_v33 }
  0xd9   : > { %836 = vadd.xlane.f32.xlu1 %v829_v37  ;;  %v5591_v40 = vsub.f32 %v790_v18, %v816_v36 }
  0xda   : > { %v5593_v41 = vsub.f32 %v792_v19, %v818_v38  ;;  %v807_v42 = vpop.xlane.xlu0 %806 }
  0xdb   : > { %v809_v43 = vpop.xlane.xlu1 %808  ;;  %v819_v44 = vmul.f32 0.0078125, %v807_v42  ;;  %v830_v45 = vmul.f32 %v5591_v40, %v5591_v40 }
  0xdc   : > { %v820_v46 = vmul.f32 0.0078125, %v809_v43  ;;  %v832_v47 = vmul.f32 %v5593_v41, %v5593_v41 }
  0xdd   : > { %840 = vadd.xlane.f32.xlu1 %v831_v39  ;;  %838 = vadd.xlane.f32.xlu0 %v830_v45  ;;  %v5599_v48 = vsub.f32 %v793_v20, %v819_v44  ;;  %v4133_v39 = vld [vmem:[%s6761_s22] ss:$0 sm:$0xff]  ;;  %s6767_s22 = scalar_lea.vmem %s6704_s8, %s5512_s24 }
  0xde   : > { %v5601_v49 = vsub.f32 %v794_v21, %v820_v46  ;;  %v813_v50 = vpop.xlane.xlu0 %812 }
  0xdf   : > { %v821_v51 = vmul.f32 0.0078125, %v813_v50  ;;  %v833_v52 = vmul.f32 %v5599_v48, %v5599_v48 }
  0xe0   : > { %v834_v54 = vmul.f32 %v5601_v49, %v5601_v49 }
  0xe1   : > { %v5605_v53 = vsub.f32 %v795_v22, %v821_v51  ;;  %842 = vadd.xlane.f32.xlu0 %v832_v47  ;;  %844 = vadd.xlane.f32.xlu1 %v833_v52  ;;  %v4134_v47 = vld [vmem:[%s6763_s14] ss:$0 sm:$0xff] }
  0xe3   : > { %v835_v55 = vmul.f32 %v5605_v53, %v5605_v53 }
  0xe5   : > { %846 = vadd.xlane.f32.xlu0 %v834_v54  ;;  %v848_v56 = vsel %vm810_vm1, %v835_v55, 0.0 }
  0xe6   : > { %849 = vadd.xlane.f32.xlu1 %v848_v56 }
 0x166   : > { %v837_v14 = vpop.xlane.xlu1 %836 }
 0x167   : > { %v851_v15 = vmul.f32 0.0078125, %v837_v14 }
 0x169   : > { %v858_v16 = vadd.f32 1e-05, %v851_v15 }
 0x16a   : > { %v841_v17 = vpop.xlane.xlu1 %840  ;;  %v839_v18 = vpop.xlane.xlu0 %838 }
 0x16b   : > { %4965 = vrsqrt.f32 %v858_v16  ;;  %v853_v19 = vmul.f32 0.0078125, %v841_v17  ;;  %v852_v20 = vmul.f32 0.0078125, %v839_v18 }
 0x16d   : > { %v860_v21 = vadd.f32 1e-05, %v853_v19  ;;  %v859_v22 = vadd.f32 1e-05, %v852_v20 }
 0x16e   : > { %v845_v23 = vpop.xlane.xlu1 %844  ;;  %v843_v24 = vpop.xlane.xlu0 %842 }
 0x16f   : > { %4967 = vrsqrt.f32 %v860_v21  ;;  %v855_v25 = vmul.f32 0.0078125, %v845_v23  ;;  %v854_v26 = vmul.f32 0.0078125, %v843_v24 }
 0x170   : > { %4969 = vrsqrt.f32 %v859_v22 }
 0x171   : > { %v862_v27 = vadd.f32 1e-05, %v855_v25  ;;  %v861_v28 = vadd.f32 1e-05, %v854_v26 }
 0x172   : > { %v847_v29 = vpop.xlane.xlu0 %846 }
 0x173   : > { %4971 = vrsqrt.f32 %v862_v27  ;;  %v856_v30 = vmul.f32 0.0078125, %v847_v29  ;;  %v850_v31 = vpop.xlane.xlu1 %849 }
 0x174   : > { %4973 = vrsqrt.f32 %v861_v28  ;;  %v857_v34 = vmul.f32 0.0078125, %v850_v31 }
 0x175   : > { %v4966_v35 = vpop.eup %4965  ;;  %v863_v36 = vadd.f32 1e-05, %v856_v30 }
 0x176   : > { %v864_v37 = vadd.f32 1e-05, %v857_v34  ;;  %v872_v38 = vmul.f32 %v4966_v35, %v5583_v32 }
 0x177   : > { %4975 = vrsqrt.f32 %v863_v36 }
 0x178   : > { %4977 = vrsqrt.f32 %v864_v37  ;;  %v885_v45 = vmul.f32 %v4133_v39, %v872_v38 }
 0x179   : > { %v4968_v42 = vpop.eup %4967 }
 0x17a   : > { %v4970_v43 = vpop.eup %4969  ;;  %v874_v46 = vmul.f32 %v4968_v42, %v5585_v33  ;;  %v898_v54 = vadd.f32 %v4134_v47, %v885_v45 }
 0x17b   : > { %v873_v44 = vmul.f32 %v4970_v43, %v5591_v40 }
 0x17c   : > { %v887_v57 = vmul.f32 %v4133_v39, %v874_v46 }
 0x17d   : > { %v4972_v50 = vpop.eup %4971  ;;  %v886_v32 = vmul.f32 %v4133_v39, %v873_v44 }
 0x17e   : > { %v4974_v51 = vpop.eup %4973  ;;  %v876_v52 = vmul.f32 %v4972_v50, %v5599_v48  ;;  %v900_v62 = vadd.f32 %v4134_v47, %v887_v57 }
 0x17f   : > { %v899_v55 = vadd.f32 %v4134_v47, %v886_v32  ;;  %v875_v56 = vmul.f32 %v4974_v51, %v5593_v41 }
 0x180   : > { %v889_v61 = vmul.f32 %v4133_v39, %v876_v52 }
 0x181   : > { %v4976_v58 = vpop.eup %4975  ;;  %v905_v40 = vpack.c.bf16 %v899_v55, %v898_v54  ;;  %v888_v59 = vmul.f32 %v4133_v39, %v875_v56 }
 0x182   : > { %v4978_v60 = vpop.eup %4977  ;;  %v877_v33 = vmul.f32 %v4976_v58, %v5601_v49  ;;  %v902_v41 = vadd.f32 %v4134_v47, %v889_v61 }
 0x183   : > { %1119 = vmatmul.mubr.bf16.vlgmr.msra.gmra.mrb[0].mxu0 %v905_v40  ;;  %4520 = vmatprep.mubr.bf16.mxu1 %v905_v40  ;;  %v901_v63 = vadd.f32 %v4134_v47, %v888_v59  ;;  %v878_v0 = vmul.f32 %v4978_v60, %v5605_v53  ;;  %v943_v53 = vlaneseq }
 0x184   : > { %1128 = vmatprep.mubr.bf16.mxu0 %v5337_v11  ;;  %v890_v48 = vmul.f32 %v4133_v39, %v877_v33 }
 0x185   : > { %v906_v1 = vpack.c.bf16 %v901_v63, %v900_v62  ;;  %v891_v2 = vmul.f32 %v4133_v39, %v878_v0  ;;  %v5653_v6 = vshrl.u32 %v943_v53, 7 }
 0x186   : > { %v903_v3 = vadd.f32 %v4134_v47, %v890_v48 }
 0x187   : > { %4521 = vmatmul.mubr.bf16.vlgmr.msra.gmra.mrb[0].mxu1 %v906_v1  ;;  %v904_v5 = vadd.f32 %v4134_v47, %v891_v2  ;;  %v945_v7 = vsub.s32 0, %v5653_v6  ;;  %v949_v9 = vsub.s32 1, %v5653_v6  ;;  %v953_v12 = vsub.s32 2, %v5653_v6 }
 0x188   : > { %v907_v4 = vpack.c.bf16 %v903_v3, %v902_v41 }
 0x189   : > { %v908_v49 = vpack.c.bf16 %v904_v5, %v904_v5  ;;  %v5660_v10 = vrot.slane %v941_v8, %v945_v7  ;;  %v5665_v14 = vrot.slane %v941_v8, %v949_v9  ;;  %v954_v20 = vrot.slane %v941_v8, %v953_v12 }
 0x18a   : > { %4524 = vmatprep.mubr.bf16.mxu1 %v907_v4 }
 0x18b   : > { %1129 = vmatmul.mubr.bf16.gmra.mrb[4].mxu0 %v906_v1 }
 0x18c   : > { %1138 = vmatprep.mubr.bf16.mxu0 %v5337_v11 }
 0x18f   : > { %4525 = vmatmul.mubr.bf16.gmra.mrb[4].mxu1 %v908_v49 }
 0x193   : > { %1139 = vmatmul.mubr.bf16.gmra.mrb[8].mxu0 %v907_v4 }
 0x194   : > { %1148 = vmatprep.mubr.bf16.mxu0 %v5337_v11 }
 0x19b   : > { %1149 = vmatmul.mubr.bf16.gmra.mrb[12].mxu0 %v908_v49 }
 0x256   : > { %v1120_v13 = vpop.f32.mrb[0].mxu0 }
 0x257   : > { %v1122_v15 = vpop.f32.mrb[1].mxu0  ;;  %v1121_v17 = vadd.f32 %v1120_v13, %v5660_v10 }
 0x258   : > { %v1124_v16 = vpop.f32.mrb[2].mxu0  ;;  %v1123_v21 = vadd.f32 %v1122_v15, %v5665_v14 }
 0x259   : > { %v1125_v18 = vadd.f32 %v1124_v16, %v5660_v10  ;;  %v1126_v19 = vpop.f32.mrb[3].mxu0 }
 0x25a   : > { %v1127_v22 = vadd.f32 %v1126_v19, %v5665_v14  ;;  %v4522_v23 = vpop.f32.mrb[0].mxu1 }
 0x25b   : > { %v5673_v24 = vpack.c.bf16 %v1125_v18, %v1121_v17  ;;  %v1191_v25 = vpop.f32.mrb[1].mxu1  ;;  %v1200_v28 = vadd.f32 %v4522_v23, %v954_v20 }
 0x25c   : > { %v5675_v26 = vpack.c.bf16 %v1127_v22, %v1123_v21  ;;  %v4523_v27 = vpop.f32.mrb[2].mxu1  ;;  %v1192_v31 = vadd.f32 %v1191_v25, %v954_v20  ;;  %v5744_v21 = vld [vmem:[%s6764_s15] sm:$0xff] }
 0x25d   : > { %v1203_v29 = vadd.f32 %v4523_v27, %v954_v20  ;;  %v1194_v30 = vpop.f32.mrb[3].mxu1  ;;  %4536 = vmatprep.mubr.msk.bf16.mxu0 %vm1236_vm2, %v5673_v24 }
 0x25e   : > { %v1195_v34 = vadd.f32 %v1194_v30, %v954_v20  ;;  %v1130_v35 = vpop.f32.mrb[4].mxu0  ;;  %4700 = vmatprep.subr.msk.bf16.mxu0 %vm1236_vm2, %v5675_v26  ;;  %v1250_v36 = vsel %vm1236_vm2, %v5675_v26, 0 }
 0x25f   : > { %v5683_v37 = vpack.c.bf16 %v1203_v29, %v1200_v28  ;;  %v1132_v38 = vpop.f32.mrb[5].mxu0  ;;  %4529 = vmatpush3.bf16.xpose.msra.mxu0 %v1250_v36  ;;  %v1131_v43 = vadd.f32 %v1130_v35, %v5660_v10  ;;  %v5754_v28 = vld [vmem:[%s6764_s15 + $0x10] sm:$0xff] }
 0x260   : > { %v5685_v39 = vpack.c.bf16 %v1195_v34, %v1192_v31  ;;  %v1134_v42 = vpop.f32.mrb[6].mxu0  ;;  %v1133_v46 = vadd.f32 %v1132_v38, %v5665_v14  ;;  %v5760_v34 = vld [vmem:[%s6764_s15 + $0x18] sm:$0xff] }
 0x261   : > { %v1135_v44 = vadd.f32 %v1134_v42, %v5660_v10  ;;  %v1136_v45 = vpop.f32.mrb[7].mxu0 }
 0x262   : > { %v1137_v47 = vadd.f32 %v1136_v45, %v5665_v14  ;;  %v4526_v50 = vpop.f32.mrb[4].mxu1  ;;  %4544 = vmatprep.subr.bf16.mxu1 %v5685_v39 }
 0x263   : > { %v5692_v32 = vpack.c.bf16 %v1135_v44, %v1131_v43  ;;  %v1207_v51 = vpop.f32.mrb[5].mxu1  ;;  %4545 = vmatpush3.bf16.msra.mxu1 %v5685_v39  ;;  %v1216_v56 = vadd.f32 %v4526_v50, %v954_v20 }
 0x264   : > { %v5695_v52 = vpack.c.bf16 %v1137_v47, %v1133_v46  ;;  %v4527_v54 = vpop.f32.mrb[6].mxu1  ;;  %4546 = vmatprep.subr.bf16.mxu1 %v5683_v37  ;;  %v1208_v57 = vadd.f32 %v1207_v51, %v954_v20  ;;  %v5770_v46 = vld [vmem:[%s6764_s15 + $0x20] sm:$0xff] }
 0x265   : > { %v1210_v55 = vpop.f32.mrb[7].mxu1  ;;  %v5707_v48 = vpack.c.bf16 %v1216_v56, %v1216_v56  ;;  %v5776_v56 = vld [vmem:[%s6764_s15 + $0x28] sm:$0xff] }
 0x266   : > { %v1211_v58 = vadd.f32 %v1210_v55, %v954_v20  ;;  %v1140_v40 = vpop.f32.mrb[8].mxu0  ;;  %4701 = vmatprep.subr.msk.bf16.mxu0 %vm1236_vm2, %v5695_v52  ;;  %v1253_v59 = vsel %vm1236_vm2, %v5695_v52, 0 }
 0x267   : > { %v1142_v60 = vpop.f32.mrb[9].mxu0  ;;  %4531 = vmatpush3.bf16.xpose.msra.mxu0 %v1253_v59  ;;  %4547 = vmatpush3.bf16.msra.mxu1 %v5683_v37  ;;  %v1141_v62 = vadd.f32 %v1140_v40, %v5660_v10  ;;  %v1440_v49 = vsel %vm1438_vm3, %v5707_v48, 0 }
 0x268   : > { %v5703_v33 = vpack.c.bf16 %v1211_v58, %v1208_v57  ;;  %v1144_v61 = vpop.f32.mrb[10].mxu0  ;;  %v1143_v1 = vadd.f32 %v1142_v60, %v5665_v14  ;;  %v5781_v57 = vld [vmem:[%s6764_s15 + $0x30] sm:$0x3f] }
 0x269   : > { %v1145_v63 = vadd.f32 %v1144_v61, %v5660_v10  ;;  %v1146_v0 = vpop.f32.mrb[11].mxu0 }
 0x26a   : > { %v1147_v2 = vadd.f32 %v1146_v0, %v5665_v14  ;;  %4548 = vmatprep.subr.bf16.mxu1 %v5703_v33 }
 0x26b   : > { %v5712_v41 = vpack.c.bf16 %v1145_v63, %v1141_v62  ;;  %4549 = vmatpush3.bf16.msra.mxu1 %v5703_v33 }
 0x26c   : > { %v5715_v3 = vpack.c.bf16 %v1147_v2, %v1143_v1  ;;  %4704 = vmatprep.subr.msk.bf16.mxu1 %vm1438_vm3, %v5707_v48 }
 0x26e   : > { %v1150_v4 = vpop.f32.mrb[12].mxu0  ;;  %4702 = vmatprep.subr.msk.bf16.mxu0 %vm1236_vm2, %v5715_v3  ;;  %v1256_v5 = vsel %vm1236_vm2, %v5715_v3, 0 }
 0x26f   : > { %v1152_v53 = vpop.f32.mrb[13].mxu0  ;;  %4533 = vmatpush3.bf16.xpose.msra.mxu0 %v1256_v5  ;;  %4551 = vmatpush3.bf16.msra.mxu1 %v1440_v49  ;;  %v1151_v18 = vadd.f32 %v1150_v4, %v5660_v10  ;;  %v5749_v10 = vld [vmem:[%s6764_s15 + $0x8] sm:$0xff] }
 0x270   : > { %v1153_v8 = vadd.f32 %v1152_v53, %v5665_v14  ;;  %v1154_v13 = vpop.f32.mrb[14].mxu0 }
 0x271   : > { %v1155_v15 = vpop.f32.mrb[15].mxu0  ;;  %v5737_v14 = vpack.c.bf16 %v1151_v18, %v1151_v18 }
 0x272   : > { %v5726_v16 = vpack.c.bf16 %v1153_v8, %v1153_v8 }
 0x274   : > { %4703 = vmatprep.subr.msk.bf16.mxu0 %vm1236_vm2, %v5726_v16  ;;  %v1259_v17 = vsel %vm1236_vm2, %v5726_v16, 0 }
 0x277   : > { %4535 = vmatpush3.bf16.xpose.msra.mxu0 %v1259_v17 }
 0x27e   : > { %4537 = vmatmul.mubr.msk.bf16.vlgmr.msra.gmra.mrb[16].mxu0 %vm1236_vm2, %v5692_v32 }
 0x27f   : > { %4540 = vmatprep.mubr.msk.bf16.mxu0 %vm1236_vm2, %v5712_v41 }
 0x286   : > { %4541 = vmatmul.mubr.msk.bf16.gmra.mrb[20].mxu0 %vm1236_vm2, %v5737_v14 }
 0x351   : > { %v4538_v19 = vpop.f32.mrb[16].mxu0 }
 0x352   : > { %v1295_v20 = vpop.f32.mrb[17].mxu0  ;;  %v1327_v22 = vmul.f32 0.17677669, %v4538_v19 }
 0x353   : > { %v1325_v23 = vmul.f32 0.17677669, %v1295_v20  ;;  %v4539_v25 = vpop.f32.mrb[18].mxu0 }
 0x354   : > { %v1298_v27 = vpop.f32.mrb[19].mxu0  ;;  %v1328_v29 = vmul.f32 0.17677669, %v4539_v25  ;;  %v1334_v38 = vadd.f32 %v1327_v22, %v5754_v28 }
 0x355   : > { %v1326_v30 = vmul.f32 0.17677669, %v1298_v27  ;;  %v1332_v31 = vadd.f32 %v1325_v23, %v5744_v21 }
 0x356   : > { %v1335_v44 = vadd.f32 %v1328_v29, %v5760_v34  ;;  %v1346_v54 = vsel %vm1339_vm4, %v1334_v38, -inf }
 0x357   : > { %v1340_v35 = vsel %vm1339_vm4, %v1332_v31, -inf  ;;  %v1333_v36 = vadd.f32 %v1326_v30, %v5749_v10 }
 0x358   : > { %1341 = vmax.xlane.f32.xlu0 %v1340_v35  ;;  %v1349_v40 = vsel %vm1339_vm4, %v1335_v44, -inf }
 0x359   : > { %v4542_v42 = vpop.f32.mrb[20].mxu0  ;;  %v1343_v43 = vsel %vm1339_vm4, %v1333_v36, -inf }
 0x35a   : > { %1344 = vmax.xlane.f32.xlu1 %v1343_v43  ;;  %v1311_v45 = vpop.f32.mrb[21].mxu0  ;;  %v1331_v47 = vmul.f32 0.17677669, %v4542_v42 }
 0x35b   : > { %v1329_v50 = vmul.f32 0.17677669, %v1311_v45  ;;  %v4543_v51 = vpop.f32.mrb[22].mxu0 }
 0x35c   : > { %1347 = vmax.xlane.f32.xlu0 %v1346_v54  ;;  %v1314_v55 = vpop.f32.mrb[23].mxu0  ;;  %v1338_v62 = vadd.f32 %v1331_v47, %v5781_v57 }
 0x35d   : > { %v1330_v58 = vmul.f32 0.17677669, %v1314_v55  ;;  %v1336_v59 = vadd.f32 %v1329_v50, %v5770_v46 }
 0x35e   : > { %1350 = vmax.xlane.f32.xlu1 %v1349_v40  ;;  %v1359_v0 = vsel %vm1358_vm5, %v1338_v62, -inf }
 0x35f   : > { %v1352_v60 = vsel %vm1339_vm4, %v1336_v59, -inf  ;;  %v1337_v61 = vadd.f32 %v1330_v58, %v5776_v56 }
 0x360   : > { %1353 = vmax.xlane.f32.xlu0 %v1352_v60 }
 0x361   : > { %v1355_v63 = vsel %vm1339_vm4, %v1337_v61, -inf }
 0x362   : > { %1356 = vmax.xlane.f32.xlu1 %v1355_v63 }
 0x364   : > { %1360 = vmax.xlane.f32.xlu0 %v1359_v0 }
 0x3e5   : > { %v1342_v1 = vpop.xlane.xlu0 %1341 }
 0x3e6   : > { %v1362_v2 = vsub.f32 %v1332_v31, %v1342_v1 }
 0x3e7   : > { %v1345_v4 = vpop.xlane.xlu1 %1344 }
 0x3e8   : > { %v1363_v49 = vsub.f32 %v1333_v36, %v1345_v4  ;;  %v1369_v8 = vmul.f32 1.442695, %v1362_v2 }
 0x3e9   : > { %v1348_v5 = vpop.xlane.xlu0 %1347 }
 0x3ea   : > { %v1364_v53 = vsub.f32 %v1334_v38, %v1348_v5  ;;  %v1371_v18 = vmul.f32 1.442695, %v1363_v49 }
 0x3eb   : > { %v1351_v13 = vpop.xlane.xlu1 %1350 }
 0x3ec   : > { %v1373_v15 = vmul.f32 1.442695, %v1364_v53  ;;  %v1365_v17 = vsub.f32 %v1335_v44, %v1351_v13 }
 0x3ed   : > { %v1354_v35 = vpop.xlane.xlu0 %1353 }
 0x3ee   : > { %4979 = vpow2.f32 %v1373_v15  ;;  %v1375_v19 = vmul.f32 1.442695, %v1365_v17  ;;  %v1366_v45 = vsub.f32 %v1336_v59, %v1354_v35 }
 0x3ef   : > { %4981 = vpow2.f32 %v1369_v8  ;;  %v1357_v36 = vpop.xlane.xlu1 %1356 }
 0x3f0   : > { %4983 = vpow2.f32 %v1375_v19  ;;  %v1367_v38 = vsub.f32 %v1337_v61, %v1357_v36  ;;  %v1377_v50 = vmul.f32 1.442695, %v1366_v45 }
 0x3f1   : > { %4985 = vpow2.f32 %v1371_v18  ;;  %v1361_v42 = vpop.xlane.xlu0 %1360 }
 0x3f2   : > { %v1379_v43 = vmul.f32 1.442695, %v1367_v38  ;;  %v1368_v44 = vsub.f32 %v1338_v62, %v1361_v42 }
 0x3f4   : > { %4987 = vpow2.f32 %v1379_v43  ;;  %v1381_v47 = vmul.f32 1.442695, %v1368_v44 }
 0x3f6   : > { %4989 = vpow2.f32 %v1381_v47 }
 0x3f7   : > { %4991 = vpow2.f32 %v1377_v50 }
 0x3f8   : > { %v5790_v20 = vpop.eup %4979 }
 0x3f9   : > { %v5792_v22 = vpop.eup %4981  ;;  %v1389_v23 = vsel %vm1339_vm4, %v5790_v20, 0.0 }
 0x3fa   : > { %v5796_v25 = vpop.eup %4983  ;;  %1390 = vadd.xlane.f32.xlu1 %v1389_v23  ;;  %v1383_v30 = vsel %vm1339_vm4, %v5792_v22, 0.0 }
 0x3fb   : > { %v1392_v27 = vsel %vm1339_vm4, %v5796_v25, 0.0  ;;  %v5800_v29 = vpop.eup %4985 }
 0x3fc   : > { %1393 = vadd.xlane.f32.xlu0 %v1392_v27  ;;  %v1386_v31 = vsel %vm1339_vm4, %v5800_v29, 0.0 }
 0x3fe   : > { %1384 = vadd.xlane.f32.xlu1 %v1383_v30  ;;  %v5814_v51 = vpop.eup %4987 }
 0x3ff   : > { %v1398_v54 = vsel %vm1339_vm4, %v5814_v51, 0.0 }
 0x400   : > { %1387 = vadd.xlane.f32.xlu0 %v1386_v31  ;;  %v5818_v55 = vpop.eup %4989 }
 0x401   : > { %v1401_v58 = vsel %vm1358_vm5, %v5818_v55, 0.0  ;;  %v5822_v40 = vpop.eup %4991 }
 0x402   : > { %v1395_v59 = vsel %vm1339_vm4, %v5822_v40, 0.0 }
 0x40f   : > { %1524 = vrot.lane.b32.xlu1 %v5695_v52, %s5338_s18 }
 0x413   : > { %1526 = vrot.lane.b32.xlu1 %v5715_v3, %s5338_s18 }
 0x416   : > { %1522 = vrot.lane.b32.xlu0 %v5675_v26, %s5338_s18 }
 0x417   : > { %1815 = vrot.lane.b32.xlu1 %v5675_v26, %s5339_s1 }
 0x435   : > { %1399 = vadd.xlane.f32.xlu0 %v1398_v54 }
 0x43b   : > { %1402 = vadd.xlane.f32.xlu1 %v1401_v58 }
 0x43f   : > { %1396 = vadd.xlane.f32.xlu1 %v1395_v59 }
 0x44b   : > { %1528 = vrot.lane.b32.xlu0 %v5726_v16, %s5338_s18 }
 0x44f   : > { %1510 = vrot.lane.b32.xlu0 %v5673_v24, %s5338_s18 }
 0x450   : > { %1817 = vrot.lane.b32.xlu1 %v5695_v52, %s5339_s1 }
 0x453   : > { %1819 = vrot.lane.b32.xlu0 %v5715_v3, %s5339_s1 }
 0x454   : > { %1512 = vrot.lane.b32.xlu1 %v5692_v32, %s5338_s18 }
 0x457   : > { %1516 = vrot.lane.b32.xlu0 %v5737_v14, %s5338_s18 }
 0x458   : > { %1514 = vrot.lane.b32.xlu1 %v5712_v41, %s5338_s18 }
 0x45b   : > { %1807 = vrot.lane.b32.xlu0 %v5673_v24, %s5339_s1 }
 0x45c   : > { %1821 = vrot.lane.b32.xlu1 %v5726_v16, %s5339_s1 }
 0x45f   : > { %1811 = vrot.lane.b32.xlu0 %v5712_v41, %s5339_s1 }
 0x460   : > { %1809 = vrot.lane.b32.xlu1 %v5692_v32, %s5339_s1 }
 0x464   : > { %1813 = vrot.lane.b32.xlu1 %v5737_v14, %s5339_s1 }
 0x487   : > { %v1391_v60 = vpop.xlane.xlu1 %1390 }
 0x489   : > { %v1394_v61 = vpop.xlane.xlu0 %1393 }
 0x48a   : > { %4993 = vrcp.f32 %v1394_v61 }
 0x48b   : > { %v1385_v62 = vpop.xlane.xlu1 %1384 }
 0x48c   : > { %4995 = vrcp.f32 %v1385_v62 }
 0x48d   : > { %4997 = vrcp.f32 %v1391_v60  ;;  %v1388_v63 = vpop.xlane.xlu0 %1387 }
 0x48e   : > { %4999 = vrcp.f32 %v1388_v63 }
 0x48f   : > { %v1525_v0 = vpop.permute.xlu1 %1524 }
 0x491   : > { %v1523_v1 = vpop.permute.xlu0 %1522 }
 0x492   : > { %4705 = vmatprep.subr.msk.bf16.mxu1 %vm1236_vm2, %v1523_v1  ;;  %v1543_v30 = vsel %vm1236_vm2, %v1523_v1, 0 }
 0x493   : > { %v1527_v2 = vpop.permute.xlu1 %1526 }
 0x494   : > { %v4994_v4 = vpop.eup %4993 }
 0x495   : > { %v1411_v13 = vmul.f32 %v4994_v4, %v5796_v25  ;;  %v1546_v25 = vsel %vm1236_vm2, %v1525_v0, 0 }
 0x496   : > { %v4996_v5 = vpop.eup %4995 }
 0x497   : > { %v4998_v49 = vpop.eup %4997  ;;  %v1816_v53 = vpop.permute.xlu1 %1815  ;;  %v1405_v17 = vmul.f32 %v4996_v5, %v5792_v22  ;;  %v1549_v22 = vsel %vm1236_vm2, %v1527_v2, 0 }
 0x498   : > { %v5000_v8 = vpop.eup %4999  ;;  %4710 = vmatprep.subr.msk.bf16.mxu0 %vm1236_vm2, %v1816_v53  ;;  %v1836_v15 = vsel %vm1236_vm2, %v1816_v53, 0  ;;  %v1409_v19 = vmul.f32 %v4998_v49, %v5790_v20 }
 0x499   : > { %4593 = vmatpush3.bf16.xpose.msra.mxu0 %v1836_v15  ;;  %v1407_v18 = vmul.f32 %v5000_v8, %v5800_v29 }
 0x49a   : > { %v1419_v27 = vpack.c.bf16 %v1411_v13, %v1409_v19 }
 0x49b   : > { %v1418_v23 = vpack.c.bf16 %v1407_v18, %v1405_v17 }
 0x49d   : > { %4552 = vmatprep.mubr.msk.bf16.mxu1 %vm1339_vm4, %v1418_v23 }
 0x49e   : > { %4553 = vmatmul.mubr.msk.bf16.vlgmr.msra.gmra.mrb[8].mxu1 %vm1339_vm4, %v1419_v27 }
 0x49f   : > { %4561 = vmatpush3.bf16.xpose.msra.mxu1 %v1543_v30 }
 0x4a0   : > { %4706 = vmatprep.subr.msk.bf16.mxu1 %vm1236_vm2, %v1525_v0 }
 0x4a7   : > { %4563 = vmatpush3.bf16.xpose.msra.mxu1 %v1546_v25 }
 0x4a8   : > { %4707 = vmatprep.subr.msk.bf16.mxu1 %vm1236_vm2, %v1527_v2 }
 0x4af   : > { %4565 = vmatpush3.bf16.xpose.msra.mxu1 %v1549_v22 }
 0x4c2   : > { %v1400_v20 = vpop.xlane.xlu0 %1399 }
 0x4c6   : > { %v1529_v29 = vpop.permute.xlu0 %1528 }
 0x4c7   : > { %4708 = vmatprep.subr.msk.bf16.mxu1 %vm1236_vm2, %v1529_v29  ;;  %v1552_v31 = vsel %vm1236_vm2, %v1529_v29, 0 }
 0x4c8   : > { %4567 = vmatpush3.bf16.xpose.msra.mxu1 %v1552_v31  ;;  %v1403_v35 = vpop.xlane.xlu1 %1402 }
 0x4c9   : > { %5001 = vrcp.f32 %v1403_v35 }
 0x4ca   : > { %v1511_v36 = vpop.permute.xlu0 %1510  ;;  %5003 = vrcp.f32 %v1400_v20 }
 0x4cc   : > { %v1397_v38 = vpop.xlane.xlu1 %1396 }
 0x4cd   : > { %5005 = vrcp.f32 %v1397_v38 }
 0x4ce   : > { %v1820_v42 = vpop.permute.xlu0 %1819 }
 0x4cf   : > { %v1842_v0 = vsel %vm1236_vm2, %v1820_v42, 0 }
 0x4d0   : > { %v1818_v43 = vpop.permute.xlu1 %1817 }
 0x4d1   : > { %v1839_v44 = vsel %vm1236_vm2, %v1818_v43, 0  ;;  %4711 = vmatprep.subr.msk.bf16.mxu0 %vm1236_vm2, %v1818_v43 }
 0x4d2   : > { %v1517_v45 = vpop.permute.xlu0 %1516  ;;  %4595 = vmatpush3.bf16.xpose.msra.mxu0 %v1839_v44 }
 0x4d3   : > { %4712 = vmatprep.subr.msk.bf16.mxu0 %vm1236_vm2, %v1820_v42  ;;  %v5002_v47 = vpop.eup %5001 }
 0x4d4   : > { %v1513_v50 = vpop.permute.xlu1 %1512  ;;  %v5004_v54 = vpop.eup %5003  ;;  %v1417_v60 = vmul.f32 %v5002_v47, %v5818_v55 }
 0x4d5   : > { %v1415_v63 = vmul.f32 %v5004_v54, %v5814_v51 }
 0x4d6   : > { %v1808_v58 = vpop.permute.xlu0 %1807  ;;  %v1421_v2 = vpack.c.bf16 %v1417_v60, %v1417_v60 }
 0x4d7   : > { %v5006_v59 = vpop.eup %5005  ;;  %4600 = vmatprep.mubr.msk.bf16.mxu0 %vm1236_vm2, %v1808_v58 }
 0x4d8   : > { %v1515_v61 = vpop.permute.xlu1 %1514  ;;  %v1413_v62 = vmul.f32 %v5006_v59, %v5822_v40 }
 0x4da   : > { %4597 = vmatpush3.bf16.xpose.msra.mxu0 %v1842_v0  ;;  %v1420_v1 = vpack.c.bf16 %v1415_v63, %v1413_v62  ;;  %v1812_v40 = vpop.permute.xlu0 %1811 }
 0x4dc   : > { %4556 = vmatprep.mubr.msk.bf16.mxu1 %vm1339_vm4, %v1420_v1  ;;  %v1822_v4 = vpop.permute.xlu1 %1821 }
 0x4dd   : > { %4557 = vmatmul.mubr.msk.bf16.gmra.mrb[12].mxu1 %vm1339_vm4, %v1421_v2  ;;  %4713 = vmatprep.subr.msk.bf16.mxu0 %vm1236_vm2, %v1822_v4  ;;  %v1845_v55 = vsel %vm1236_vm2, %v1822_v4, 0 }
 0x4de   : > { %4568 = vmatprep.mubr.msk.bf16.mxu1 %vm1236_vm2, %v1511_v36 }
 0x4e0   : > { %v1810_v51 = vpop.permute.xlu1 %1809 }
 0x4e2   : > { %4599 = vmatpush3.bf16.xpose.msra.mxu0 %v1845_v55 }
 0x4e4   : > { %v1814_v5 = vpop.permute.xlu1 %1813 }
 0x4e5   : > { %4569 = vmatmul.mubr.msk.bf16.vlgmr.msra.gmra.mrb[16].mxu1 %vm1236_vm2, %v1513_v50 }
 0x4e6   : > { %4572 = vmatprep.mubr.msk.bf16.mxu1 %vm1236_vm2, %v1515_v61 }
 0x4e9   : > { %4601 = vmatmul.mubr.msk.bf16.vlgmr.msra.gmra.mrb[24].mxu0 %vm1236_vm2, %v1810_v51 }
 0x4ea   : > { %4604 = vmatprep.mubr.msk.bf16.mxu0 %vm1236_vm2, %v1812_v40 }
 0x4ed   : > { %4573 = vmatmul.mubr.msk.bf16.gmra.mrb[20].mxu1 %vm1236_vm2, %v1517_v45 }
 0x4f1   : > { %4605 = vmatmul.mubr.msk.bf16.gmra.mrb[28].mxu0 %vm1236_vm2, %v1814_v5 }
 0x571   : > { %v5885_v49 = vpop.f32.mrb[8].mxu1 }
 0x572   : > { %v5887_v53 = vpop.f32.mrb[9].mxu1 }
 0x573   : > { %v5889_v8 = vpop.f32.mrb[10].mxu1 }
 0x574   : > { %v5891_v13 = vpop.f32.mrb[11].mxu1 }
 0x5b0   : > { %v5893_v15 = vpop.f32.mrb[12].mxu1 }
 0x5b1   : > { %v5895_v17 = vpop.f32.mrb[13].mxu1 }
 0x5b2   : > { %v4559_v18 = vpop.f32.mrb[14].mxu1 }
 0x5b3   : > { %v5897_v19 = vpop.f32.mrb[15].mxu1 }
 0x5b8   : > { %v5899_v23 = vpop.f32.mrb[16].mxu1 }
 0x5b9   : > { %v5901_v27 = vpop.f32.mrb[17].mxu1 }
 0x5ba   : > { %v5903_v30 = vpop.f32.mrb[18].mxu1 }
 0x5bb   : > { %v1591_v25 = vpop.f32.mrb[19].mxu1 }
 0x5bc   : > { %v4602_v22 = vpop.f32.mrb[24].mxu0 }
 0x5bd   : > { %v1881_v20 = vpop.f32.mrb[25].mxu0  ;;  %v1913_v29 = vmul.f32 0.17677669, %v4602_v22 }
 0x5be   : > { %v1911_v31 = vmul.f32 0.17677669, %v1881_v20  ;;  %v4603_v35 = vpop.f32.mrb[26].mxu0 }
 0x5bf   : > { %v1884_v36 = vpop.f32.mrb[27].mxu0  ;;  %v1914_v38 = vmul.f32 0.17677669, %v4603_v35  ;;  %v1920_v58 = vadd.f32 %v1913_v29, %v5754_v28 }
 0x5c0   : > { %v1912_v42 = vmul.f32 0.17677669, %v1884_v36  ;;  %v5905_v43 = vpop.f32.mrb[20].mxu1  ;;  %v1918_v44 = vadd.f32 %v1911_v31, %v5744_v21 }
 0x5c1   : > { %v5908_v45 = vpop.f32.mrb[21].mxu1  ;;  %v1921_v62 = vadd.f32 %v1914_v38, %v5760_v34  ;;  %v1931_v4 = vsel %vm1339_vm4, %v1920_v58, -inf }
 0x5c2   : > { %v4575_v47 = vpop.f32.mrb[22].mxu1  ;;  %v1925_v50 = vsel %vm1339_vm4, %v1918_v44, -inf  ;;  %v1919_v54 = vadd.f32 %v1912_v42, %v5749_v10 }
 0x5c3   : > { %v5913_v59 = vpop.f32.mrb[23].mxu1  ;;  %1926 = vmax.xlane.f32.xlu1 %v1925_v50  ;;  %v1934_v40 = vsel %vm1339_vm4, %v1921_v62, -inf }
 0x5c4   : > { %v4606_v60 = vpop.f32.mrb[28].mxu0  ;;  %v1928_v61 = vsel %vm1339_vm4, %v1919_v54, -inf }
 0x5c5   : > { %1929 = vmax.xlane.f32.xlu0 %v1928_v61  ;;  %v1897_v63 = vpop.f32.mrb[29].mxu0  ;;  %v1917_v0 = vmul.f32 0.17677669, %v4606_v60 }
 0x5c6   : > { %v1915_v1 = vmul.f32 0.17677669, %v1897_v63  ;;  %v4607_v2 = vpop.f32.mrb[30].mxu0 }
 0x5c7   : > { %1932 = vmax.xlane.f32.xlu1 %v1931_v4  ;;  %v1900_v55 = vpop.f32.mrb[31].mxu0  ;;  %v5928_v20 = vadd.f32 %v1917_v0, %v5781_v57 }
 0x5c8   : > { %v1916_v51 = vmul.f32 0.17677669, %v1900_v55  ;;  %v5920_v5 = vadd.f32 %v1915_v1, %v5770_v46 }
 0x5c9   : > { %1935 = vmax.xlane.f32.xlu0 %v1934_v40  ;;  %v1943_v31 = vsel %vm1358_vm5, %v5928_v20, -inf  ;;  %v1619_v40 = vmul.f32 0.17677669, %v1591_v25 }
 0x5ca   : > { %v1937_v18 = vsel %vm1339_vm4, %v5920_v5, -inf  ;;  %v5925_v22 = vadd.f32 %v1916_v51, %v5776_v56 }
 0x5cb   : > { %1938 = vmax.xlane.f32.xlu1 %v1937_v18  ;;  %v5951_v18 = vadd.f32 %v1619_v40, %v5749_v10 }
 0x5cc   : > { %v1940_v29 = vsel %vm1339_vm4, %v5925_v22, -inf }
 0x5cd   : > { %1941 = vmax.xlane.f32.xlu0 %v1940_v29 }
 0x5cf   : > { %1944 = vmax.xlane.f32.xlu1 %v1943_v31 }
 0x5e0   : > { %1719 = vrot.lane.b32.xlu1 %v5683_v37, %s5338_s18 }
 0x5e3   : > { %1717 = vrot.lane.b32.xlu0 %v5685_v39, %s5338_s18 }
 0x5e4   : > { %1721 = vrot.lane.b32.xlu1 %v5703_v33, %s5338_s18 }
 0x650   : > { %v1927_v35 = vpop.xlane.xlu1 %1926 }
 0x651   : > { %v1946_v38 = vsub.f32 %v1918_v44, %v1927_v35 }
 0x652   : > { %v1930_v36 = vpop.xlane.xlu0 %1929 }
 0x653   : > { %v1947_v42 = vsub.f32 %v1919_v54, %v1930_v36  ;;  %v1953_v63 = vmul.f32 1.442695, %v1946_v38  ;;  %v1635_v36 = vsel %vm1339_vm4, %v5951_v18, -inf  ;;  %v1620_v38 = vmul.f32 0.17677669, %v5899_v23 }
 0x654   : > { %v1933_v47 = vpop.xlane.xlu1 %1932  ;;  %v1624_v23 = vmul.f32 0.17677669, %v5905_v43 }
 0x655   : > { %v1955_v50 = vmul.f32 1.442695, %v1947_v42  ;;  %v1948_v60 = vsub.f32 %v1920_v58, %v1933_v47  ;;  %v1618_v47 = vmul.f32 0.17677669, %v5901_v27  ;;  %v1622_v27 = vmul.f32 0.17677669, %v5908_v45 }
 0x656   : > { %v1936_v61 = vpop.xlane.xlu0 %1935 }
 0x657   : > { %5007 = vpow2.f32 %v1955_v50  ;;  %v1957_v0 = vmul.f32 1.442695, %v1948_v60  ;;  %v1949_v1 = vsub.f32 %v1921_v62, %v1936_v61  ;;  %v1627_v60 = vadd.f32 %v1620_v38, %v5754_v28 }
 0x658   : > { %v5940_v2 = vpop.xlane.xlu1 %1938  ;;  %v1621_v61 = vmul.f32 0.17677669, %v5903_v30  ;;  %v1631_v30 = vadd.f32 %v1624_v23, %v5781_v57  ;;  %v1629_v40 = vadd.f32 %v1622_v27, %v5770_v46 }
 0x659   : > { %5009 = vpow2.f32 %v1957_v0  ;;  %v1959_v55 = vmul.f32 1.442695, %v1949_v1  ;;  %v1625_v0 = vadd.f32 %v1618_v47, %v5744_v21 }
 0x65a   : > { %v5942_v4 = vpop.xlane.xlu0 %1941  ;;  %5011 = vpow2.f32 %v1953_v63  ;;  %v1638_v63 = vsel %vm1339_vm4, %v1627_v60, -inf  ;;  %v1650_v21 = vsel %vm1358_vm5, %v1631_v30, -inf  ;;  %v1644_v43 = vsel %vm1339_vm4, %v1629_v40, -inf }
 0x65b   : > { %5013 = vpow2.f32 %v1959_v55  ;;  %v1632_v1 = vsel %vm1339_vm4, %v1625_v0, -inf  ;;  %v1628_v55 = vadd.f32 %v1621_v61, %v5760_v34  ;;  %v1623_v34 = vmul.f32 0.17677669, %v5913_v59 }
 0x65c   : > { %v5944_v51 = vpop.xlane.xlu1 %1944 }
 0x65d   : > { %v1641_v28 = vsel %vm1339_vm4, %v1628_v55, -inf  ;;  %v5982_v45 = vadd.f32 %v1623_v34, %v5776_v56 }
 0x65e   : > { %v1718_v44 = vpop.permute.xlu0 %1717 }
 0x65f   : > { %4576 = vmatprep.subr.bf16.mxu1 %v1718_v44  ;;  %v1647_v57 = vsel %vm1339_vm4, %v5982_v45, -inf }
 0x660   : > { %4577 = vmatpush3.bf16.msra.mxu1 %v1718_v44  ;;  %v1720_v54 = vpop.permute.xlu1 %1719 }
 0x661   : > { %v5946_v58 = vpop.eup %5007  ;;  %4578 = vmatprep.subr.bf16.mxu1 %v1720_v54 }
 0x662   : > { %v1970_v62 = vsel %vm1339_vm4, %v5946_v58, 0.0 }
 0x663   : > { %v5953_v29 = vpop.eup %5009  ;;  %1971 = vadd.xlane.f32.xlu1 %v1970_v62 }
 0x664   : > { %4579 = vmatpush3.bf16.msra.mxu1 %v1720_v54  ;;  %v1722_v31 = vpop.permute.xlu1 %1721  ;;  %v1973_v25 = vsel %vm1339_vm4, %v5953_v29, 0.0  ;;  %v5012_v35 = vpop.eup %5011 }
 0x665   : > { %1974 = vadd.xlane.f32.xlu0 %v1973_v25  ;;  %4580 = vmatprep.subr.bf16.mxu1 %v1722_v31  ;;  %v1967_v10 = vsel %vm1339_vm4, %v5012_v35, 0.0  ;;  %v5014_v42 = vpop.eup %5013 }
 0x666   : > { %v1976_v50 = vsel %vm1339_vm4, %v5014_v42, 0.0 }
 0x667   : > { %1636 = vmax.xlane.f32.xlu1 %v1635_v36 }
 0x668   : > { %4581 = vmatpush3.bf16.msra.mxu1 %v1722_v31 }
 0x669   : > { %1968 = vadd.xlane.f32.xlu0 %v1967_v10 }
 0x66d   : > { %1977 = vadd.xlane.f32.xlu0 %v1976_v50 }
 0x671   : > { %1639 = vmax.xlane.f32.xlu0 %v1638_v63 }
 0x675   : > { %1633 = vmax.xlane.f32.xlu0 %v1632_v1 }
 0x678   : > { %2006 = vrot.lane.b32.xlu1 %v5685_v39, %s5339_s1 }
 0x679   : > { %1642 = vmax.xlane.f32.xlu0 %v1641_v28 }
 0x67d   : > { %1651 = vmax.xlane.f32.xlu0 %v1650_v21 }
 0x681   : > { %1645 = vmax.xlane.f32.xlu0 %v1644_v43 }
 0x697   : > { %1723 = vrot.lane.b32.xlu0 %v5707_v48, %s5338_s18 }
 0x69c   : > { %1648 = vmax.xlane.f32.xlu1 %v1647_v57 }
 0x6ad   : > { %2008 = vrot.lane.b32.xlu1 %v5683_v37, %s5339_s1 }
 0x6f0   : > { %v1972_v46 = vpop.xlane.xlu1 %1971 }
 0x6f1   : > { %5015 = vrcp.f32 %v1972_v46 }
 0x6f2   : > { %v1975_v44 = vpop.xlane.xlu0 %1974 }
 0x6f4   : > { %v1637_v38 = vpop.xlane.xlu1 %1636 }
 0x6f5   : > { %v1654_v27 = vsub.f32 %v5951_v18, %v1637_v38 }
 0x6f6   : > { %v1969_v54 = vpop.xlane.xlu0 %1968 }
 0x6f7   : > { %5017 = vrcp.f32 %v1969_v54  ;;  %v1662_v34 = vmul.f32 1.442695, %v1654_v27 }
 0x6f8   : > { %5019 = vrcp.f32 %v1975_v44 }
 0x6fa   : > { %v1978_v59 = vpop.xlane.xlu0 %1977 }
 0x6fb   : > { %5021 = vrcp.f32 %v1978_v59  ;;  %v5016_v31 = vpop.eup %5015 }
 0x6fc   : > { %v5991_v50 = vmul.f32 %v5016_v31, %v5946_v58 }
 0x6fe   : > { %v1640_v62 = vpop.xlane.xlu0 %1639 }
 0x6ff   : > { %v1655_v25 = vsub.f32 %v1627_v60, %v1640_v62 }
 0x701   : > { %v5018_v56 = vpop.eup %5017  ;;  %v1664_v36 = vmul.f32 1.442695, %v1655_v25  ;;  %v6013_v25 = vpop.permute.xlu1 %2006 }
 0x702   : > { %v1634_v10 = vpop.xlane.xlu0 %1633  ;;  %v5988_v47 = vmul.f32 %v5018_v56, %v5012_v35  ;;  %v5020_v61 = vpop.eup %5019 }
 0x703   : > { %5023 = vpow2.f32 %v1664_v36  ;;  %v1653_v63 = vsub.f32 %v1625_v0, %v1634_v10  ;;  %v5997_v60 = vmul.f32 %v5020_v61, %v5953_v29 }
 0x704   : > { %v2002_v23 = vpack.c.bf16 %v5991_v50, %v5988_v47 }
 0x705   : > { %v5022_v1 = vpop.eup %5021  ;;  %v1660_v28 = vmul.f32 1.442695, %v1653_v63 }
 0x706   : > { %v5999_v21 = vmul.f32 %v5022_v1, %v5014_v42  ;;  %v1643_v35 = vpop.xlane.xlu0 %1642 }
 0x707   : > { %5025 = vpow2.f32 %v1660_v28  ;;  %v1656_v43 = vsub.f32 %v1628_v55, %v1643_v35 }
 0x708   : > { %v2003_v58 = vpack.c.bf16 %v5999_v21, %v5997_v60 }
 0x709   : > { %v1666_v0 = vmul.f32 1.442695, %v1656_v43 }
 0x70a   : > { %v1652_v57 = vpop.xlane.xlu0 %1651 }
 0x70b   : > { %5027 = vpow2.f32 %v1666_v0  ;;  %v1659_v46 = vsub.f32 %v1631_v30, %v1652_v57  ;;  %v1951_v0 = vsub.f32 %v5925_v22, %v5942_v4 }
 0x70c   : > { %5029 = vpow2.f32 %v1662_v34 }
 0x70d   : > { %v6003_v44 = vpop.eup %5023  ;;  %v1672_v18 = vmul.f32 1.442695, %v1659_v46  ;;  %v1963_v57 = vmul.f32 1.442695, %v1951_v0  ;;  %v1952_v46 = vsub.f32 %v5928_v20, %v5944_v51  ;;  %v1950_v20 = vsub.f32 %v5920_v5, %v5940_v2 }
 0x70e   : > { %v1646_v54 = vpop.xlane.xlu0 %1645  ;;  %v1680_v29 = vsel %vm1339_vm4, %v6003_v44, 0.0 }
 0x70f   : > { %v1657_v42 = vsub.f32 %v1629_v40, %v1646_v54  ;;  %1681 = vadd.xlane.f32.xlu0 %v1680_v29  ;;  %5031 = vpow2.f32 %v1672_v18  ;;  %v1961_v4 = vmul.f32 1.442695, %v1950_v20 }
 0x711   : > { %v6007_v59 = vpop.eup %5025  ;;  %v1668_v55 = vmul.f32 1.442695, %v1657_v42 }
 0x712   : > { %v1724_v62 = vpop.permute.xlu0 %1723  ;;  %v1674_v31 = vsel %vm1339_vm4, %v6007_v59, 0.0 }
 0x713   : > { %5033 = vpow2.f32 %v1668_v55  ;;  %v1741_v30 = vsel %vm1438_vm3, %v1724_v62, 0  ;;  %1675 = vadd.xlane.f32.xlu0 %v1674_v31  ;;  %4709 = vmatprep.subr.msk.bf16.mxu1 %vm1438_vm3, %v1724_v62 }
 0x714   : > { %4583 = vmatpush3.bf16.msra.mxu1 %v1741_v30 }
 0x715   : > { %v5028_v56 = vpop.eup %5027  ;;  %4608 = vmatprep.subr.bf16.mxu1 %v6013_v25 }
 0x716   : > { %v1683_v40 = vsel %vm1339_vm4, %v5028_v56, 0.0  ;;  %v5030_v36 = vpop.eup %5029 }
 0x717   : > { %1684 = vadd.xlane.f32.xlu1 %v1683_v40  ;;  %v1677_v38 = vsel %vm1339_vm4, %v5030_v36, 0.0 }
 0x719   : > { %v6018_v10 = vpop.eup %5031 }
 0x71a   : > { %v1692_v1 = vsel %vm1358_vm5, %v6018_v10, 0.0 }
 0x71b   : > { %1678 = vadd.xlane.f32.xlu1 %v1677_v38 }
 0x71d   : > { %v6020_v61 = vpop.eup %5033 }
 0x71e   : > { %v1686_v63 = vsel %vm1339_vm4, %v6020_v61, 0.0 }
 0x71f   : > { %1687 = vadd.xlane.f32.xlu0 %v1686_v63  ;;  %1693 = vadd.xlane.f32.xlu1 %v1692_v1 }
 0x729   : > { %v1649_v27 = vpop.xlane.xlu1 %1648 }
 0x72a   : > { %v1658_v28 = vsub.f32 %v5982_v45, %v1649_v27  ;;  %v1965_v45 = vmul.f32 1.442695, %v1952_v46 }
 0x72c   : > { %v1670_v35 = vmul.f32 1.442695, %v1658_v28 }
 0x72e   : > { %5035 = vpow2.f32 %v1670_v35 }
 0x72f   : > { %5037 = vpow2.f32 %v1963_v57 }
 0x730   : > { %5039 = vpow2.f32 %v1965_v45 }
 0x731   : > { %5041 = vpow2.f32 %v1961_v4 }
 0x735   : > { %2012 = vrot.lane.b32.xlu0 %v5707_v48, %s5339_s1 }
 0x738   : > { %v6029_v43 = vpop.eup %5035 }
 0x739   : > { %v1689_v34 = vsel %vm1339_vm4, %v6029_v43, 0.0  ;;  %v6039_v18 = vpop.eup %5037 }
 0x73a   : > { %1690 = vadd.xlane.f32.xlu1 %v1689_v34  ;;  %v1982_v54 = vsel %vm1339_vm4, %v6039_v18, 0.0  ;;  %v6043_v29 = vpop.eup %5039 }
 0x73b   : > { %v1985_v22 = vsel %vm1358_vm5, %v6043_v29, 0.0  ;;  %v6049_v51 = vpop.eup %5041 }
 0x73c   : > { %v1979_v42 = vsel %vm1339_vm4, %v6049_v51, 0.0 }
 0x74b   : > { %2010 = vrot.lane.b32.xlu1 %v5703_v33, %s5339_s1 }
 0x754   : > { %1983 = vadd.xlane.f32.xlu0 %v1982_v54 }
 0x758   : > { %1986 = vadd.xlane.f32.xlu0 %v1985_v22 }
 0x76e   : > { %2104 = vrot.lane.b32.xlu0 %v5675_v26, %s5340_s21 }
 0x76f   : > { %1980 = vadd.xlane.f32.xlu1 %v1979_v42 }
 0x772   : > { %2096 = vrot.lane.b32.xlu0 %v5673_v24, %s5340_s21  ;;  %v2009_v24 = vpop.permute.xlu1 %2008 }
 0x776   : > { %2100 = vrot.lane.b32.xlu0 %v5712_v41, %s5340_s21 }
 0x780   : > { %2106 = vrot.lane.b32.xlu1 %v5695_v52, %s5340_s21 }
 0x784   : > { %2108 = vrot.lane.b32.xlu1 %v5715_v3, %s5340_s21 }
 0x788   : > { %2110 = vrot.lane.b32.xlu1 %v5726_v16, %s5340_s21 }
 0x78c   : > { %2098 = vrot.lane.b32.xlu1 %v5692_v32, %s5340_s21 }
 0x790   : > { %2102 = vrot.lane.b32.xlu1 %v5737_v14, %s5340_s21 }
 0x79c   : > { %v1682_v26 = vpop.xlane.xlu0 %1681 }
 0x7a0   : > { %v1676_v5 = vpop.xlane.xlu0 %1675 }
 0x7a4   : > { %v1685_v2 = vpop.xlane.xlu1 %1684 }
 0x7a5   : > { %5043 = vrcp.f32 %v1685_v2 }
 0x7a6   : > { %5045 = vrcp.f32 %v1676_v5 }
 0x7a7   : > { %5047 = vrcp.f32 %v1682_v26 }
 0x7a8   : > { %v1679_v52 = vpop.xlane.xlu1 %1678 }
 0x7a9   : > { %5049 = vrcp.f32 %v1679_v52 }
 0x7ac   : > { %v1694_v38 = vpop.xlane.xlu1 %1693  ;;  %v1688_v63 = vpop.xlane.xlu0 %1687 }
 0x7ad   : > { %5051 = vrcp.f32 %v1694_v38 }
 0x7ae   : > { %5053 = vrcp.f32 %v1688_v63 }
 0x7af   : > { %v5044_v41 = vpop.eup %5043 }
 0x7b0   : > { %v5046_v3 = vpop.eup %5045  ;;  %v1702_v16 = vmul.f32 %v5044_v41, %v5028_v56 }
 0x7b1   : > { %v5048_v55 = vpop.eup %5047  ;;  %v1696_v31 = vmul.f32 %v5046_v3, %v6007_v59 }
 0x7b2   : > { %v1700_v30 = vmul.f32 %v5048_v55, %v6003_v44 }
 0x7b3   : > { %v5050_v62 = vpop.eup %5049 }
 0x7b4   : > { %v1698_v32 = vmul.f32 %v5050_v62, %v5030_v36  ;;  %v1710_v40 = vpack.c.bf16 %v1702_v16, %v1700_v30  ;;  %v2013_v36 = vpop.permute.xlu0 %2012 }
 0x7b5   : > { %v2030_v27 = vsel %vm1438_vm3, %v2013_v36, 0 }
 0x7b6   : > { %v1709_v14 = vpack.c.bf16 %v1698_v32, %v1696_v31 }
 0x7b7   : > { %v5052_v44 = vpop.eup %5051 }
 0x7b8   : > { %4584 = vmatprep.mubr.msk.bf16.mxu1 %vm1339_vm4, %v1709_v14  ;;  %v5054_v1 = vpop.eup %5053  ;;  %v1708_v28 = vmul.f32 %v5052_v44, %v6018_v10 }
 0x7b9   : > { %4585 = vmatmul.mubr.msk.bf16.vlgmr.msra.gmra.mrb[24].mxu1 %vm1339_vm4, %v1710_v40  ;;  %v1704_v35 = vmul.f32 %v5054_v1, %v6020_v61 }
 0x7ba   : > { %4609 = vmatpush3.bf16.msra.mxu1 %v6013_v25  ;;  %v1712_v57 = vpack.c.bf16 %v1708_v28, %v1708_v28 }
 0x7bb   : > { %4610 = vmatprep.subr.bf16.mxu1 %v2009_v24 }
 0x7be   : > { %4611 = vmatpush3.bf16.msra.mxu1 %v2009_v24 }
 0x7c7   : > { %v1691_v56 = vpop.xlane.xlu1 %1690 }
 0x7c8   : > { %5055 = vrcp.f32 %v1691_v56 }
 0x7cb   : > { %v2011_v59 = vpop.permute.xlu1 %2010 }
 0x7cc   : > { %4612 = vmatprep.subr.bf16.mxu1 %v2011_v59 }
 0x7cd   : > { %4613 = vmatpush3.bf16.msra.mxu1 %v2011_v59 }
 0x7ce   : > { %4714 = vmatprep.subr.msk.bf16.mxu1 %vm1438_vm3, %v2013_v36 }
 0x7d1   : > { %4615 = vmatpush3.bf16.msra.mxu1 %v2030_v27 }
 0x7d2   : > { %v5056_v25 = vpop.eup %5055 }
 0x7d3   : > { %v1706_v34 = vmul.f32 %v5056_v25, %v6029_v43 }
 0x7d5   : > { %v1711_v0 = vpack.c.bf16 %v1706_v34, %v1704_v35 }
 0x7d7   : > { %4588 = vmatprep.mubr.msk.bf16.mxu1 %vm1339_vm4, %v1711_v0 }
 0x7d8   : > { %4589 = vmatmul.mubr.msk.bf16.gmra.mrb[28].mxu1 %vm1339_vm4, %v1712_v57 }
 0x7d9   : > { %4616 = vmatprep.mubr.msk.bf16.mxu1 %vm1339_vm4, %v2002_v23 }
 0x7e0   : > { %4617 = vmatmul.mubr.msk.bf16.vlgmr.msra.gmra.mrb[32].mxu1 %vm1339_vm4, %v2003_v58 }
 0x7e1   : > { %v1984_v10 = vpop.xlane.xlu0 %1983 }
 0x7e5   : > { %v1987_v61 = vpop.xlane.xlu0 %1986 }
 0x7e6   : > { %5057 = vrcp.f32 %v1987_v61 }
 0x7e7   : > { %5059 = vrcp.f32 %v1984_v10 }
 0x7e9   : > { %v2105_v46 = vpop.permute.xlu0 %2104 }
 0x7ea   : > { %v2125_v43 = vsel %vm1236_vm2, %v2105_v46, 0  ;;  %4715 = vmatprep.subr.msk.bf16.mxu1 %vm1236_vm2, %v2105_v46 }
 0x7eb   : > { %4625 = vmatpush3.bf16.xpose.msra.mxu1 %v2125_v43 }
 0x7ed   : > { %v2097_v5 = vpop.permute.xlu0 %2096 }
 0x7f0   : > { %v5058_v23 = vpop.eup %5057 }
 0x7f1   : > { %v5060_v21 = vpop.eup %5059  ;;  %v2001_v54 = vmul.f32 %v5058_v23, %v6043_v29 }
 0x7f2   : > { %v1999_v20 = vmul.f32 %v5060_v21, %v6039_v18  ;;  %v2101_v18 = vpop.permute.xlu0 %2100 }
 0x7f3   : > { %v2005_v24 = vpack.c.bf16 %v2001_v54, %v2001_v54 }
 0x7fc   : > { %v1981_v45 = vpop.xlane.xlu1 %1980 }
 0x7fd   : > { %5061 = vrcp.f32 %v1981_v45  ;;  %v5217_v45 = vld [vmem:[%s6764_s15] sm:$0xff] }
 0x800   : > { %v2107_v47 = vpop.permute.xlu1 %2106 }
 0x801   : > { %v2128_v50 = vsel %vm1236_vm2, %v2107_v47, 0  ;;  %4716 = vmatprep.subr.msk.bf16.mxu1 %vm1236_vm2, %v2107_v47 }
 0x802   : > { %4627 = vmatpush3.bf16.xpose.msra.mxu1 %v2128_v50 }
 0x804   : > { %v2109_v60 = vpop.permute.xlu1 %2108 }
 0x805   : > { %4717 = vmatprep.subr.msk.bf16.mxu1 %vm1236_vm2, %v2109_v60  ;;  %v2131_v4 = vsel %vm1236_vm2, %v2109_v60, 0  ;;  %v5218_v60 = vld [vmem:[%s6764_s15 + $0x8] sm:$0xff] }
 0x807   : > { %v5062_v58 = vpop.eup %5061 }
 0x808   : > { %v1997_v22 = vmul.f32 %v5062_v58, %v6049_v51  ;;  %v2111_v42 = vpop.permute.xlu1 %2110  ;;  %v5219_v58 = vld [vmem:[%s6764_s15 + $0x10] sm:$0xff] }
 0x809   : > { %v2134_v29 = vsel %vm1236_vm2, %v2111_v42, 0 }
 0x80a   : > { %4629 = vmatpush3.bf16.xpose.msra.mxu1 %v2131_v4  ;;  %v2004_v26 = vpack.c.bf16 %v1999_v20, %v1997_v22 }
 0x80b   : > { %4718 = vmatprep.subr.msk.bf16.mxu1 %vm1236_vm2, %v2111_v42 }
 0x80c   : > { %4620 = vmatprep.mubr.msk.bf16.mxu1 %vm1339_vm4, %v2004_v26  ;;  %v2099_v51 = vpop.permute.xlu1 %2098 }
 0x80d   : > { %4621 = vmatmul.mubr.msk.bf16.gmra.mrb[36].mxu1 %vm1339_vm4, %v2005_v24 }
 0x80e   : > { %4632 = vmatprep.mubr.msk.bf16.mxu1 %vm1236_vm2, %v2097_v5  ;;  %v5220_v5 = vld [vmem:[%s6764_s15 + $0x18] sm:$0xff] }
 0x810   : > { %v2103_v2 = vpop.permute.xlu1 %2102 }
 0x812   : > { %4631 = vmatpush3.bf16.xpose.msra.mxu1 %v2134_v29 }
 0x819   : > { %4633 = vmatmul.mubr.msk.bf16.vlgmr.msra.gmra.mrb[40].mxu1 %vm1236_vm2, %v2099_v51 }
 0x81a   : > { %4636 = vmatprep.mubr.msk.bf16.mxu1 %vm1236_vm2, %v2101_v18 }
 0x821   : > { %4637 = vmatmul.mubr.msk.bf16.gmra.mrb[44].mxu1 %vm1236_vm2, %v2103_v2 }
 0x822   : > { %3002 = vmatprep.mubr.bf16.mxu1 %v5337_v11 }
 0x88c   : > { %v6107_v52 = vpop.f32.mrb[24].mxu1 }
 0x88d   : > { %v6109_v41 = vpop.f32.mrb[25].mxu1 }
 0x88e   : > { %v6111_v3 = vpop.f32.mrb[26].mxu1 }
 0x88f   : > { %v4805_v55 = vpack.i.bf16 %v6111_v3, %v6107_v52  ;;  %v6115_v62 = vpop.f32.mrb[27].mxu1 }
 0x890   : > { %v4800_v16 = vpack.i.bf16 %v6115_v62, %v6109_v41 }
 0x8ab   : > { %v6119_v31 = vpop.f32.mrb[28].mxu1 }
 0x8ac   : > { %v6121_v32 = vpop.f32.mrb[29].mxu1 }
 0x8ad   : > { %v4591_v30 = vpop.f32.mrb[30].mxu1 }
 0x8ae   : > { %v6123_v14 = vpop.f32.mrb[31].mxu1 }
 0x8af   : > { %v4830_v40 = vpack.i.bf16 %v6123_v14, %v6121_v32 }
 0x8b3   : > { %v6127_v38 = vpop.f32.mrb[32].mxu1 }
 0x8b4   : > { %v6129_v63 = vpop.f32.mrb[33].mxu1 }
 0x8b5   : > { %v6131_v56 = vpop.f32.mrb[34].mxu1 }
 0x8b6   : > { %v4815_v59 = vpack.i.bf16 %v6131_v56, %v6127_v38  ;;  %v6135_v36 = vpop.f32.mrb[35].mxu1 }
 0x8b7   : > { %v4810_v44 = vpack.i.bf16 %v6135_v36, %v6129_v63 }
 0x8e0   : > { %v6139_v1 = vpop.f32.mrb[36].mxu1 }
 0x8e1   : > { %v6141_v27 = vpop.f32.mrb[37].mxu1 }
 0x8e2   : > { %v4623_v25 = vpop.f32.mrb[38].mxu1 }
 0x8e3   : > { %v6143_v28 = vpop.f32.mrb[39].mxu1  ;;  %v5221_v25 = vld [vmem:[%s6764_s15 + $0x28] sm:$0xff] }
 0x8e4   : > { %v4835_v35 = vpack.i.bf16 %v6143_v28, %v6141_v27 }
 0x8ec   : > { %v4634_v34 = vpop.f32.mrb[40].mxu1 }
 0x8ed   : > { %v2170_v0 = vpop.f32.mrb[41].mxu1  ;;  %v2202_v57 = vmul.f32 0.17677669, %v4634_v34 }
 0x8ee   : > { %v2200_v10 = vmul.f32 0.17677669, %v2170_v0  ;;  %v4635_v61 = vpop.f32.mrb[42].mxu1  ;;  %v5222_v0 = vld [vmem:[%s6764_s15 + $0x20] sm:$0xff] }
 0x8ef   : > { %v2173_v46 = vpop.f32.mrb[43].mxu1  ;;  %v2203_v50 = vmul.f32 0.17677669, %v4635_v61  ;;  %v2209_v54 = vadd.f32 %v5219_v58, %v2202_v57 }
 0x8f0   : > { %v2201_v43 = vmul.f32 0.17677669, %v2173_v46  ;;  %v2207_v47 = vadd.f32 %v5217_v45, %v2200_v10  ;;  %v5223_v46 = vld [vmem:[%s6764_s15 + $0x30] sm:$0x3f] }
 0x8f1   : > { %v2220_v24 = vsel %vm1339_vm4, %v2209_v54, -inf  ;;  %v2210_v29 = vadd.f32 %v5220_v5, %v2203_v50 }
 0x8f2   : > { %v2214_v23 = vsel %vm1339_vm4, %v2207_v47, -inf  ;;  %v2208_v21 = vadd.f32 %v5218_v60, %v2201_v43 }
 0x8f3   : > { %2215 = vmax.xlane.f32.xlu0 %v2214_v23  ;;  %v2223_v30 = vsel %vm1339_vm4, %v2210_v29, -inf }
 0x8f4   : > { %v4638_v22 = vpop.f32.mrb[44].mxu1  ;;  %v2217_v20 = vsel %vm1339_vm4, %v2208_v21, -inf }
 0x8f5   : > { %2218 = vmax.xlane.f32.xlu1 %v2217_v20  ;;  %v2186_v4 = vpop.f32.mrb[45].mxu1  ;;  %v2206_v2 = vmul.f32 0.17677669, %v4638_v22 }
 0x8f6   : > { %v2204_v42 = vmul.f32 0.17677669, %v2186_v4  ;;  %v4639_v26 = vpop.f32.mrb[46].mxu1 }
 0x8f7   : > { %2221 = vmax.xlane.f32.xlu0 %v2220_v24  ;;  %v2189_v51 = vpop.f32.mrb[47].mxu1  ;;  %v2213_v43 = vadd.f32 %v5223_v46, %v2206_v2 }
 0x8f8   : > { %v2205_v18 = vmul.f32 0.17677669, %v2189_v51  ;;  %v2211_v57 = vadd.f32 %v5222_v0, %v2204_v42 }
 0x8f9   : > { %v2232_v45 = vsel %vm1358_vm5, %v2213_v43, -inf }
 0x8fa   : > { %v2212_v34 = vadd.f32 %v5221_v25, %v2205_v18  ;;  %v2226_v61 = vsel %vm1339_vm4, %v2211_v57, -inf }
 0x8fb   : > { %2224 = vmax.xlane.f32.xlu0 %v2223_v30 }
 0x8fc   : > { %v2229_v10 = vsel %vm1339_vm4, %v2212_v34, -inf }
 0x8fd   : > { %2230 = vmax.xlane.f32.xlu1 %v2229_v10 }
 0x8ff   : > { %2227 = vmax.xlane.f32.xlu0 %v2226_v61 }
 0x903   : > { %2233 = vmax.xlane.f32.xlu0 %v2232_v45 }
 0x90e   : > { %2295 = vrot.lane.b32.xlu1 %v5685_v39, %s5340_s21 }
 0x980   : > { %v2216_v50 = vpop.xlane.xlu0 %2215 }
 0x981   : > { %v2235_v23 = vsub.f32 %v2207_v47, %v2216_v50 }
 0x982   : > { %v2219_v60 = vpop.xlane.xlu1 %2218 }
 0x983   : > { %v2242_v20 = vmul.f32 1.442695, %v2235_v23  ;;  %v2236_v4 = vsub.f32 %v2208_v21, %v2219_v60 }
 0x984   : > { %v2222_v58 = vpop.xlane.xlu0 %2221 }
 0x985   : > { %v2237_v22 = vsub.f32 %v2209_v54, %v2222_v58  ;;  %v2244_v51 = vmul.f32 1.442695, %v2236_v4 }
 0x987   : > { %v2246_v42 = vmul.f32 1.442695, %v2237_v22 }
 0x988   : > { %v2225_v26 = vpop.xlane.xlu0 %2224 }
 0x989   : > { %5063 = vpow2.f32 %v2246_v42  ;;  %v2238_v24 = vsub.f32 %v2210_v29, %v2225_v26 }
 0x98a   : > { %v2231_v5 = vpop.xlane.xlu1 %2230  ;;  %5065 = vpow2.f32 %v2242_v20 }
 0x98b   : > { %v2248_v18 = vmul.f32 1.442695, %v2238_v24  ;;  %v2240_v21 = vsub.f32 %v2212_v34, %v2231_v5 }
 0x98c   : > { %v2228_v2 = vpop.xlane.xlu0 %2227 }
 0x98d   : > { %5067 = vpow2.f32 %v2248_v18  ;;  %v2239_v39 = vsub.f32 %v2211_v57, %v2228_v2  ;;  %v2252_v45 = vmul.f32 1.442695, %v2240_v21 }
 0x98e   : > { %v2296_v30 = vpop.permute.xlu1 %2295  ;;  %5069 = vpow2.f32 %v2244_v51 }
 0x98f   : > { %4640 = vmatprep.subr.bf16.mxu0 %v2296_v30  ;;  %v2250_v0 = vmul.f32 1.442695, %v2239_v39 }
 0x990   : > { %v2234_v47 = vpop.xlane.xlu0 %2233  ;;  %4641 = vmatpush3.bf16.msra.mxu0 %v2296_v30 }
 0x991   : > { %v2241_v25 = vsub.f32 %v2213_v43, %v2234_v47 }
 0x993   : > { %v6177_v54 = vpop.eup %5063  ;;  %v2254_v10 = vmul.f32 1.442695, %v2241_v25 }
 0x994   : > { %v2262_v29 = vsel %vm1339_vm4, %v6177_v54, 0.0  ;;  %v5066_v61 = vpop.eup %5065 }
 0x995   : > { %5071 = vpow2.f32 %v2254_v10  ;;  %2263 = vadd.xlane.f32.xlu1 %v2262_v29  ;;  %v2256_v50 = vsel %vm1339_vm4, %v5066_v61, 0.0  ;;  %v4878_v29 = vld [vmem:[%s5536_s19 + $0x8] sm:$0xff]  }
 0x996   : > { %5073 = vpow2.f32 %v2250_v0 }
 0x997   : > { %v5068_v46 = vpop.eup %5067  ;;  %5075 = vpow2.f32 %v2252_v45  ;;  %v4881_v45 = vld [vmem:[%s5536_s19 + $0x20] sm:$0xff]  }
 0x998   : > { %v2265_v57 = vsel %vm1339_vm4, %v5068_v46, 0.0  ;;  %v5070_v23 = vpop.eup %5069 }
 0x999   : > { %2266 = vadd.xlane.f32.xlu0 %v2265_v57  ;;  %2257 = vadd.xlane.f32.xlu1 %v2256_v50  ;;  %v2259_v34 = vsel %vm1339_vm4, %v5070_v23, 0.0  ;;  %v4882_v57 = vld [vmem:[%s5536_s19 + $0x28] sm:$0xff]   ;;  %v4883_v50 = vld [vmem:[%s5536_s19 + $0x30] sm:$0xff]  }
 0x99d   : > { %2260 = vadd.xlane.f32.xlu0 %v2259_v34 }
 0x99f   : > { %v5072_v43 = vpop.eup %5071 }
 0x9a0   : > { %v2274_v60 = vsel %vm1358_vm5, %v5072_v43, 0.0  ;;  %v5074_v58 = vpop.eup %5073 }
 0x9a1   : > { %2275 = vadd.xlane.f32.xlu0 %v2274_v60  ;;  %v2268_v22 = vsel %vm1339_vm4, %v5074_v58, 0.0  ;;  %v5076_v20 = vpop.eup %5075 }
 0x9a2   : > { %v2271_v4 = vsel %vm1339_vm4, %v5076_v20, 0.0 }
 0x9a5   : > { %2269 = vadd.xlane.f32.xlu0 %v2268_v22 }
 0x9a9   : > { %2272 = vadd.xlane.f32.xlu0 %v2271_v4 }
 0x9aa   : > { %2299 = vrot.lane.b32.xlu1 %v5703_v33, %s5340_s21 }
 0x9ae   : > { %2301 = vrot.lane.b32.xlu1 %v5707_v48, %s5340_s21 }
 0x9b2   : > { %4801 = vrot.lane.b32.xlu1 %v4800_v16, %s5340_s21 }
 0x9b6   : > { %4806 = vrot.lane.b32.xlu1 %v4805_v55, %s5340_s21 }
 0x9ba   : > { %4811 = vrot.lane.b32.xlu1 %v4810_v44, %s5339_s1 }
 0x9be   : > { %4816 = vrot.lane.b32.xlu1 %v4815_v59, %s5339_s1 }
 0x9bf   : > { %2297 = vrot.lane.b32.xlu0 %v5683_v37, %s5340_s21 }
 0xa22   : > { %v2264_v33 = vpop.xlane.xlu1 %2263 }
 0xa26   : > { %v2267_v48 = vpop.xlane.xlu0 %2266  ;;  %v2258_v41 = vpop.xlane.xlu1 %2257 }
 0xa27   : > { %5077 = vrcp.f32 %v2258_v41 }
 0xa2a   : > { %v2261_v62 = vpop.xlane.xlu0 %2260  ;;  %v2300_v59 = vpop.permute.xlu1 %2299 }
 0xa2b   : > { %5079 = vrcp.f32 %v2261_v62 }
 0xa2c   : > { %5081 = vrcp.f32 %v2267_v48 }
 0xa2d   : > { %5083 = vrcp.f32 %v2264_v33 }
 0xa2e   : > { %v2276_v52 = vpop.xlane.xlu0 %2275  ;;  %v2302_v24 = vpop.permute.xlu1 %2301 }
 0xa2f   : > { %v2319_v30 = vsel %vm1438_vm3, %v2302_v24, 0 }
 0xa31   : > { %v5078_v55 = vpop.eup %5077 }
 0xa32   : > { %v2270_v3 = vpop.xlane.xlu0 %2269  ;;  %v2278_v36 = vmul.f32 %v5078_v55, %v5066_v61  ;;  %v4879_v61 = vld [vmem:[%s5536_s19 + $0x10] sm:$0xff]  }
 0xa33   : > { %5085 = vrcp.f32 %v2270_v3 }
 0xa35   : > { %v5080_v16 = vpop.eup %5079 }
 0xa36   : > { %v2273_v63 = vpop.xlane.xlu0 %2272  ;;  %v2280_v38 = vmul.f32 %v5080_v16, %v5070_v23  ;;  %v5082_v44 = vpop.eup %5081  ;;  %v4884_v23 = vld [vmem:[%s5536_s19 + $0x38] sm:$0xff]  }
 0xa37   : > { %5087 = vrcp.f32 %v2273_v63  ;;  %v5084_v42 = vpop.eup %5083  ;;  %v2284_v51 = vmul.f32 %v5082_v44, %v5068_v46  ;;  %v4880_v46 = vld [vmem:[%s5536_s19 + $0x18] sm:$0xff]  }
 0xa38   : > { %v2291_v56 = vpack.c.bf16 %v2280_v38, %v2278_v36  ;;  %5089 = vrcp.f32 %v2276_v52  ;;  %v2282_v2 = vmul.f32 %v5084_v42, %v6177_v54  ;;  %v4877_v54 = vld [vmem:[%s5536_s19] sm:$0xff]  }
 0xa3a   : > { %v2298_v37 = vpop.permute.xlu0 %2297  ;;  %4648 = vmatprep.mubr.msk.bf16.mxu0 %vm1339_vm4, %v2291_v56  ;;  %v2292_v47 = vpack.c.bf16 %v2284_v51, %v2282_v2 }
 0xa3b   : > { %4642 = vmatprep.subr.bf16.mxu0 %v2298_v37 }
 0xa3c   : > { %4643 = vmatpush3.bf16.msra.mxu0 %v2298_v37 }
 0xa3d   : > { %4644 = vmatprep.subr.bf16.mxu0 %v2300_v59  ;;  %v5086_v26 = vpop.eup %5085 }
 0xa3e   : > { %v2286_v39 = vmul.f32 %v5086_v26, %v5074_v58 }
 0xa40   : > { %4645 = vmatpush3.bf16.msra.mxu0 %v2300_v59 }
 0xa41   : > { %v5088_v5 = vpop.eup %5087  ;;  %4719 = vmatprep.subr.msk.bf16.mxu0 %vm1438_vm3, %v2302_v24 }
 0xa42   : > { %v2288_v18 = vmul.f32 %v5088_v5, %v5076_v20  ;;  %v5090_v25 = vpop.eup %5089 }
 0xa43   : > { %v2290_v0 = vmul.f32 %v5090_v25, %v5072_v43 }
 0xa44   : > { %4647 = vmatpush3.bf16.msra.mxu0 %v2319_v30  ;;  %v2293_v21 = vpack.c.bf16 %v2288_v18, %v2286_v39 }
 0xa45   : > { %v2294_v10 = vpack.c.bf16 %v2290_v0, %v2290_v0  ;;  %4656 = vmatprep.subr.bf16.mxu0 %v4877_v54 }
 0xa47   : > { %4649 = vmatmul.mubr.msk.bf16.vlgmr.msra.gmra.mrb[32].mxu0 %vm1339_vm4, %v2292_v47 }
 0xa48   : > { %4652 = vmatprep.mubr.msk.bf16.mxu0 %vm1339_vm4, %v2293_v21  ;;  %4657 = vmatpush3.bf16.msra.mxu0 %v4877_v54 }
 0xa49   : > { %4658 = vmatprep.subr.bf16.mxu0 %v4878_v29 }
 0xa4c   : > { %4659 = vmatpush3.bf16.msra.mxu0 %v4878_v29 }
 0xa4d   : > { %4660 = vmatprep.subr.bf16.mxu0 %v4879_v61 }
 0xa4f   : > { %4653 = vmatmul.mubr.msk.bf16.gmra.mrb[36].mxu0 %vm1339_vm4, %v2294_v10 }
 0xa50   : > { %4661 = vmatpush3.bf16.msra.mxu0 %v4879_v61 }
 0xa51   : > { %4662 = vmatprep.subr.bf16.mxu0 %v4880_v46 }
 0xa54   : > { %4663 = vmatpush3.bf16.msra.mxu0 %v4880_v46 }
 0xa55   : > { %4664 = vmatprep.subr.bf16.mxu0 %v4881_v45 }
 0xa58   : > { %4665 = vmatpush3.bf16.msra.mxu0 %v4881_v45 }
 0xa59   : > { %4666 = vmatprep.subr.bf16.mxu0 %v4882_v57 }
 0xa5c   : > { %4667 = vmatpush3.bf16.msra.mxu0 %v4882_v57 }
 0xa5d   : > { %4668 = vmatprep.subr.bf16.mxu0 %v4883_v50 }
 0xa60   : > { %4669 = vmatpush3.bf16.msra.mxu0 %v4883_v50 }
 0xa61   : > { %4670 = vmatprep.subr.bf16.mxu0 %v4884_v23 }
 0xa64   : > { %4671 = vmatpush3.bf16.msra.mxu0 %v4884_v23 }
 0xb1a   : > { %v4650_v34 = vpop.f32.mrb[32].mxu0 }
 0xb1b   : > { %v2355_v43 = vpop.f32.mrb[33].mxu0 }
 0xb1c   : > { %v4651_v60 = vpop.f32.mrb[34].mxu0 }
 0xb1d   : > { %v4825_v58 = vpack.i.bf16 %v4651_v60, %v4650_v34  ;;  %v2358_v22 = vpop.f32.mrb[35].mxu0 }
 0xb1e   : > { %v4820_v20 = vpack.i.bf16 %v2358_v22, %v2355_v43 }
 0xb1f   : > { %4826 = vrot.lane.b32.xlu1 %v4825_v58, %s5338_s18 }
 0xb20   : > { %4821 = vrot.lane.b32.xlu0 %v4820_v20, %s5338_s18 }
 0xb22   : > { %v4654_v4 = vpop.f32.mrb[36].mxu0 }
 0xb23   : > { %2404 = vrot.lane.b32.xlu1 %v6119_v31, %s5340_s21  ;;  %v2371_v33 = vpop.f32.mrb[37].mxu0  ;;  %v4802_v31 = vpop.permute.xlu1 %4801 }
 0xb24   : > { %4831 = vrot.lane.b32.xlu0 %v4830_v40, %s5340_s21  ;;  %v4655_v48 = vpop.f32.mrb[38].mxu0  ;;  %v4804_v14 = vunpack.i.h.bf16 %v4802_v31  ;;  %v4803_v40 = vunpack.i.l.bf16 %v4802_v31 }
 0xb25   : > { %v2374_v41 = vpop.f32.mrb[39].mxu0 }
 0xb26   : > { %v4840_v62 = vpack.i.bf16 %v2374_v41, %v2371_v33  ;;  %v2470_v27 = vsel %vm1236_vm2, %v5891_v13, %v4804_v14  ;;  %v2469_v28 = vsel %vm1236_vm2, %v5887_v53, %v4803_v40 }
 0xb27   : > { %2432 = vrot.lane.b32.xlu1 %v6139_v1, %s5339_s1  ;;  %v4807_v52 = vpop.permute.xlu1 %4806 }
 0xb28   : > { %4836 = vrot.lane.b32.xlu0 %v4835_v35, %s5339_s1  ;;  %v4809_v55 = vunpack.i.h.bf16 %v4807_v52  ;;  %v4808_v16 = vunpack.i.l.bf16 %v4807_v52  ;;  %s6765_s1 = scalar_lea.vmem %s6703_s7, %s5512_s24  ;;  %s6770_s24 = sld [smem:[#allocation9_spill]] }
 0xb29   : > { %v4199_v48 = vld [vmem:[%s6765_s1] ss:$0 sm:$0xff] }
 0xb2a   : > { %v2472_v56 = vsel %vm1236_vm2, %v5889_v8, %v4809_v55  ;;  %v2471_v59 = vsel %vm1236_vm2, %v5885_v49, %v4808_v16  ;;  %v5226_v55 = vld [vmem:[#allocation2 + $0x8] sm:$0xff] }
 0xb2b   : > { %2460 = vrot.lane.b32.xlu1 %v4654_v4, %s5338_s18  ;;  %v4812_v3 = vpop.permute.xlu1 %4811 }
 0xb2c   : > { %4841 = vrot.lane.b32.xlu0 %v4840_v62, %s5338_s18  ;;  %v4814_v1 = vunpack.i.h.bf16 %v4812_v3  ;;  %v4813_v38 = vunpack.i.l.bf16 %v4812_v3  ;;  %v5224_v62 = vld [vmem:[#allocation2] sm:$0xff] }
 0xb2e   : > { %v2477_v53 = vsel %vm2476_vm6, %v2469_v28, %v4813_v38  ;;  %v2478_v51 = vsel %vm2476_vm6, %v2470_v27, %v4814_v1  ;;  %v5227_v1 = vld [vmem:[#allocation2 + $0x18] sm:$0xff]  ;;  %p4295_p1 = scmp.ne.s32.totalorder %s6770_s24, 2 }
 0xb2f   : > { %v4817_v32 = vpop.permute.xlu1 %4816  ;;  %vm3770_vm8 = vcmask (!%p4295_p1), 1045506   ;;  %s6771_s17 = sld [smem:[#allocation27_spill]] (!%p4295_p1)  ;;  %vm5342_vm9 = vmmov (!%p4295_p1), 0   ;;  %s6773_s27 = sld [smem:[#allocation26_spill]] (!%p4295_p1) }
 0xb30   : > { %v4819_v63 = vunpack.i.h.bf16 %v4817_v32  ;;  %v4818_v36 = vunpack.i.l.bf16 %v4817_v32  ;;  %v5225_v32 = vld [vmem:[#allocation2 + $0x10] sm:$0xff] }
 0xb32   : > { %v2479_v26 = vsel %vm2476_vm6, %v2471_v59, %v4818_v36  ;;  %v2480_v24 = vsel %vm2476_vm6, %v2472_v56, %v4819_v63 }
 0xb91   : > { %v4827_v35 = vpop.permute.xlu1 %4826 }
 0xb92   : > { %v4829_v37 = vunpack.i.h.bf16 %v4827_v35  ;;  %v4828_v44 = vunpack.i.l.bf16 %v4827_v35  ;;  %v4822_v42 = vpop.permute.xlu0 %4821  ;;  %v5228_v35 = vld [vmem:[#allocation2 + $0x30] sm:$0x3f] }
 0xb93   : > { %v4824_v13 = vunpack.i.h.bf16 %v4822_v42  ;;  %v4823_v5 = vunpack.i.l.bf16 %v4822_v42 }
 0xb94   : > { %v2487_v18 = vsel %vm2484_vm7, %v2479_v26, %v4828_v44  ;;  %v2488_v8 = vsel %vm2484_vm7, %v2480_v24, %v4829_v37  ;;  %v5229_v37 = vld [vmem:[#allocation2 + $0x20] sm:$0xff] }
 0xb95   : > { %v2493_v2 = vpack.c.bf16 %v2488_v8, %v2487_v18  ;;  %v2405_v30 = vpop.permute.xlu1 %2404  ;;  %v2485_v49 = vsel %vm2484_vm7, %v2477_v53, %v4823_v5  ;;  %v2486_v39 = vsel %vm2484_vm7, %v2478_v51, %v4824_v13  ;;  %v5230_v13 = vld [vmem:[#allocation2 + $0x28] sm:$0xff]  ;;  %v4885_v8 = vld [vmem:[%s5560_s0] ss:$16 sps:$4 sm:$0xff]  }
 0xb96   : > { %v4832_v47 = vpop.permute.xlu0 %4831  ;;  %v2492_v25 = vpack.c.bf16 %v2486_v39, %v2485_v49  ;;  %v2475_v45 = vsel %vm1236_vm2, %v5893_v15, %v2405_v30  ;;  %v4888_v30 = vld [vmem:[%s5560_s0 + $0x8] ss:$16 sps:$4 sm:$0xff]   ;;  %v4890_v49 = vld [vmem:[%s5560_s0 + $0xc] ss:$16 sps:$4 sm:$0xff]   ;;  %v4893_v39 = vld [vmem:[%s5560_s0 + $0x24] ss:$16 sps:$4 sm:$0xff]  }
 0xb97   : > { %v4834_v0 = vunpack.i.h.bf16 %v4832_v47  ;;  %v4833_v54 = vunpack.i.l.bf16 %v4832_v47  ;;  %v4896_v47 = vld [vmem:[%s5560_s0 + $0x2c] ss:$16 sps:$4 sm:$0xff]   ;;  %3041 = vmatprep.subr.bf16.mxu0 %v4890_v49  ;;  %v4921_v49 = vld [vmem:[%s5560_s0 + $0xc0] ss:$16 sps:$4 sm:$0xff]  }
 0xb98   : > { %4672 = vmatprep.mubr.bf16.mxu0 %v2492_v25  ;;  %v4891_v25 = vld [vmem:[%s5560_s0 + $0x20] ss:$16 sps:$4 sm:$0xff]  }
 0xb99   : > { %v2433_v21 = vpop.permute.xlu1 %2432  ;;  %4673 = vmatmul.mubr.bf16.vlgmr.msra.gmra.mrb[40].mxu0 %v2493_v2  ;;  %v2474_v57 = vsel %vm1236_vm2, %v5897_v19, %v4834_v0  ;;  %v2473_v23 = vsel %vm1236_vm2, %v5895_v17, %v4833_v54  ;;  %v4887_v2 = vld [vmem:[%s5560_s0 + $0x4] ss:$16 sps:$4 sm:$0xff]  }
 0xb9a   : > { %v4837_v10 = vpop.permute.xlu0 %4836  ;;  %v2483_v34 = vsel %vm2476_vm6, %v2475_v45, %v2433_v21  ;;  %2970 = vmatprep.subr.bf16.mxu1 %v4887_v2  ;;  %3042 = vmatpush1.bf16.msra.mxu0 %v4888_v30  ;;  %v4894_v21 = vld [vmem:[%s5560_s0 + $0x28] ss:$16 sps:$4 sm:$0xff]   ;;  %v4923_v2 = vld [vmem:[%s5560_s0 + $0xc4] ss:$16 sps:$4 sm:$0xff]   ;;  %v4926_v30 = vld [vmem:[%s5560_s0 + $0xcc] ss:$16 sps:$4 sm:$0xff]  }
 0xb9b   : > { %v4839_v29 = vunpack.i.h.bf16 %v4837_v10  ;;  %v4838_v61 = vunpack.i.l.bf16 %v4837_v10  ;;  %2971 = vmatpush1.bf16.msra.mxu1 %v4885_v8  ;;  %3043 = vmatprep.subr.bf16.mxu0 %v4896_v47  ;;  %v4918_v8 = vld [vmem:[%s5560_s0 + $0xa8] ss:$16 sps:$4 sm:$0xff]   ;;  %v4929_v47 = vld [vmem:[%s5560_s0 + $0xe4] ss:$16 sps:$4 sm:$0xff]  }
 0xb9c   : > { %2972 = vmatprep.subr.bf16.mxu1 %v4893_v39  ;;  %v4924_v39 = vld [vmem:[%s5560_s0 + $0xc8] ss:$16 sps:$4 sm:$0xff]  }
 0xb9d   : > { %v2461_v46 = vpop.permute.xlu1 %2460  ;;  %v2481_v58 = vsel %vm2476_vm6, %v2473_v23, %v4838_v61  ;;  %v2482_v22 = vsel %vm2476_vm6, %v2474_v57, %v4839_v29 }
 0xb9e   : > { %v4842_v50 = vpop.permute.xlu0 %4841  ;;  %v2491_v20 = vsel %vm2484_vm7, %v2483_v34, %v2461_v46  ;;  %3044 = vmatpush1.bf16.msra.mxu0 %v4894_v21  ;;  %v4927_v21 = vld [vmem:[%s5560_s0 + $0xe0] ss:$16 sps:$4 sm:$0xff]  }
 0xb9f   : > { %v4844_v43 = vunpack.i.h.bf16 %v4842_v50  ;;  %v4843_v60 = vunpack.i.l.bf16 %v4842_v50  ;;  %v2495_v33 = vpack.c.bf16 %v2491_v20, %v2491_v20  ;;  %2973 = vmatpush1.bf16.msra.mxu1 %v4891_v25  ;;  %v4932_v25 = vld [vmem:[%s5560_s0 + $0xec] ss:$16 sps:$4 sm:$0xff]  }
 0xba1   : > { %v2489_v15 = vsel %vm2484_vm7, %v2481_v58, %v4843_v60  ;;  %v2490_v4 = vsel %vm2484_vm7, %v2482_v22, %v4844_v43 }
 0xba2   : > { %v2494_v19 = vpack.c.bf16 %v2490_v4, %v2489_v15 }
 0xba4   : > { %4676 = vmatprep.mubr.bf16.mxu0 %v2494_v19 }
 0xba5   : > { %4677 = vmatmul.mubr.bf16.gmra.mrb[44].mxu0 %v2495_v33 }
 0xba6   : > { %3073 = vmatprep.mubr.bf16.mxu0 %v5337_v11 }
 0xc6c   : > { %v4674_v17 = vpop.f32.mrb[40].mxu0 }
 0xc6d   : > { %v2594_v41 = vpop.f32.mrb[41].mxu0  ;;  %v2626_v14 = vadd.f32 %v5225_v32, %v4674_v17 }
 0xc6e   : > { %v2624_v31 = vadd.f32 %v5224_v62, %v2594_v41  ;;  %v4675_v52 = vpop.f32.mrb[42].mxu0 }
 0xc6f   : > { %v2597_v3 = vpop.f32.mrb[43].mxu0  ;;  %v6279_v36 = vadd.f32 %v4199_v48, %v2626_v14  ;;  %v2627_v38 = vadd.f32 %v5227_v1, %v4675_v52  ;;  %v4899_v14 = vld [vmem:[%s5560_s0 + $0x44] ss:$16 sps:$4 sm:$0xff]   ;;  %v4900_v1 = vld [vmem:[%s5560_s0 + $0x48] ss:$16 sps:$4 sm:$0xff]  }
 0xc70   : > { %v6274_v40 = vadd.f32 %v4199_v48, %v2624_v31  ;;  %v2625_v16 = vadd.f32 %v5226_v55, %v2597_v3  ;;  %v4902_v55 = vld [vmem:[%s5560_s0 + $0x4c] ss:$16 sps:$4 sm:$0xff]   ;;  %2974 = vmatprep.subr.bf16.mxu1 %v4899_v14 }
 0xc71   : > { %v6283_v27 = vadd.f32 %v4199_v48, %v2627_v38  ;;  %3045 = vmatprep.subr.bf16.mxu0 %v4902_v55 }
 0xc72   : > { %v6276_v63 = vadd.f32 %v4199_v48, %v2625_v16  ;;  %2647 = vadd.xlane.f32.xlu0 %v6274_v40  ;;  %v4897_v16 = vld [vmem:[%s5560_s0 + $0x40] ss:$16 sps:$4 sm:$0xff]   ;;  %3046 = vmatpush1.bf16.msra.mxu0 %v4900_v1 }
 0xc73   : > { %2975 = vmatpush1.bf16.msra.mxu1 %v4897_v16 }
 0xc74   : > { %2649 = vadd.xlane.f32.xlu1 %v6276_v63 }
 0xc76   : > { %2651 = vadd.xlane.f32.xlu0 %v6279_v36 }
 0xc78   : > { %v4678_v28 = vpop.f32.mrb[44].mxu0 }
 0xc79   : > { %v2630_v56 = vadd.f32 %v5228_v35, %v4678_v28  ;;  %v2610_v59 = vpop.f32.mrb[45].mxu0  ;;  %v4905_v28 = vld [vmem:[%s5560_s0 + $0x64] ss:$16 sps:$4 sm:$0xff]   ;;  %v4908_v35 = vld [vmem:[%s5560_s0 + $0x6c] ss:$16 sps:$4 sm:$0xff]  }
 0xc7a   : > { %v2628_v44 = vadd.f32 %v5229_v37, %v2610_v59  ;;  %2653 = vadd.xlane.f32.xlu0 %v6283_v27  ;;  %v4679_v42 = vpop.f32.mrb[46].mxu0  ;;  %v4906_v59 = vld [vmem:[%s5560_s0 + $0x68] ss:$16 sps:$4 sm:$0xff]   ;;  %2976 = vmatprep.subr.bf16.mxu1 %v4905_v28  ;;  %v4911_v37 = vld [vmem:[%s5560_s0 + $0x84] ss:$16 sps:$4 sm:$0xff]  }
 0xc7b   : > { %v2613_v26 = vpop.f32.mrb[47].mxu0  ;;  %v6288_v53 = vadd.f32 %v4199_v48, %v2630_v56  ;;  %v4903_v56 = vld [vmem:[%s5560_s0 + $0x60] ss:$16 sps:$4 sm:$0xff]   ;;  %3047 = vmatprep.subr.bf16.mxu0 %v4908_v35 }
 0xc7c   : > { %v6286_v24 = vadd.f32 %v4199_v48, %v2628_v44  ;;  %v2629_v5 = vadd.f32 %v5230_v13, %v2613_v26  ;;  %2977 = vmatpush1.bf16.msra.mxu1 %v4903_v56  ;;  %3048 = vmatpush1.bf16.msra.mxu0 %v4906_v59  ;;  %v4914_v44 = vld [vmem:[%s5560_s0 + $0x8c] ss:$16 sps:$4 sm:$0xff]   ;;  %v4909_v42 = vld [vmem:[%s5560_s0 + $0x80] ss:$16 sps:$4 sm:$0xff]   ;;  %v4912_v26 = vld [vmem:[%s5560_s0 + $0x88] ss:$16 sps:$4 sm:$0xff]  }
 0xc7d   : > { %6766 = vst [vmem:[#allocation19_spill] sm:$0xff] %v6288_v53  ;;  %v2659_v18 = vsel %vm810_vm1, %v6288_v53, 0.0  ;;  %2978 = vmatprep.subr.bf16.mxu1 %v4911_v37  ;;  %3049 = vmatprep.subr.bf16.mxu0 %v4914_v44  ;;  %v4917_v13 = vld [vmem:[%s5560_s0 + $0xa4] ss:$16 sps:$4 sm:$0xff]   ;;  %v4201_v56 = vld [vmem:[%s6768_s20] ss:$0 sm:$0xff] }
 0xc7e   : > { %v6290_v51 = vadd.f32 %v4199_v48, %v2629_v5  ;;  %2655 = vadd.xlane.f32.xlu0 %v6286_v24  ;;  %v4920_v5 = vld [vmem:[%s5560_s0 + $0xac] ss:$16 sps:$4 sm:$0xff]  }
 0xc80   : > { %2657 = vadd.xlane.f32.xlu1 %v6290_v51  ;;  %2979 = vmatpush1.bf16.msra.mxu1 %v4909_v42 }
 0xc81   : > { %3050 = vmatpush1.bf16.msra.mxu0 %v4912_v26  ;;  %2980 = vmatprep.subr.bf16.mxu1 %v4917_v13 }
 0xc82   : > { %2660 = vadd.xlane.f32.xlu0 %v2659_v18  ;;  %v4915_v18 = vld [vmem:[%s5560_s0 + $0xa0] ss:$16 sps:$4 sm:$0xff]   ;;  %3051 = vmatprep.subr.bf16.mxu0 %v4920_v5 }
 0xc84   : > { %2981 = vmatpush1.bf16.msra.mxu1 %v4915_v18 }
 0xc85   : > { %3052 = vmatpush1.bf16.msra.mxu0 %v4918_v8  ;;  %2982 = vmatprep.subr.bf16.mxu1 %v4923_v2 }
 0xc86   : > { %3053 = vmatprep.subr.bf16.mxu0 %v4926_v30 }
 0xc88   : > { %2983 = vmatpush1.bf16.msra.mxu1 %v4921_v49 }
 0xc89   : > { %3054 = vmatpush1.bf16.msra.mxu0 %v4924_v39  ;;  %2984 = vmatprep.subr.bf16.mxu1 %v4929_v47 }
 0xc8a   : > { %3055 = vmatprep.subr.bf16.mxu0 %v4932_v25 }
 0xc8c   : > { %2985 = vmatpush1.bf16.msra.mxu1 %v4927_v21 }
 0xcff   : > { %v2648_v0 = vpop.xlane.xlu0 %2647 }
 0xd00   : > { %v2662_v10 = vmul.f32 0.0078125, %v2648_v0  ;;  %v4930_v0 = vld [vmem:[%s5560_s0 + $0xe8] ss:$16 sps:$4 sm:$0xff]  }
 0xd01   : > { %v2650_v54 = vpop.xlane.xlu1 %2649  ;;  %3056 = vmatpush1.bf16.msra.mxu0 %v4930_v0 }
 0xd02   : > { %v6305_v29 = vsub.f32 %v6274_v40, %v2662_v10  ;;  %v2663_v61 = vmul.f32 0.0078125, %v2650_v54 }
 0xd03   : > { %v2652_v46 = vpop.xlane.xlu0 %2651 }
 0xd04   : > { %v6308_v45 = vsub.f32 %v6276_v63, %v2663_v61  ;;  %v2664_v57 = vmul.f32 0.0078125, %v2652_v46  ;;  %v2676_v50 = vmul.f32 %v6305_v29, %v6305_v29 }
 0xd06   : > { %v6313_v23 = vsub.f32 %v6279_v36, %v2664_v57  ;;  %2683 = vadd.xlane.f32.xlu1 %v2676_v50  ;;  %v2677_v34 = vmul.f32 %v6308_v45, %v6308_v45 }
 0xd07   : > { %v2654_v43 = vpop.xlane.xlu0 %2653 }
 0xd08   : > { %v2665_v60 = vmul.f32 0.0078125, %v2654_v43  ;;  %2685 = vadd.xlane.f32.xlu0 %v2677_v34  ;;  %v2678_v58 = vmul.f32 %v6313_v23, %v6313_v23 }
 0xd0a   : > { %v6320_v22 = vsub.f32 %v6283_v27, %v2665_v60  ;;  %2687 = vadd.xlane.f32.xlu1 %v2678_v58 }
 0xd0b   : > { %v2656_v20 = vpop.xlane.xlu0 %2655 }
 0xd0c   : > { %v2666_v15 = vmul.f32 0.0078125, %v2656_v20  ;;  %v2679_v4 = vmul.f32 %v6320_v22, %v6320_v22 }
 0xd0d   : > { %v2658_v19 = vpop.xlane.xlu1 %2657 }
 0xd0e   : > { %v6325_v33 = vsub.f32 %v6286_v24, %v2666_v15  ;;  %v2667_v17 = vmul.f32 0.0078125, %v2658_v19  ;;  %2689 = vadd.xlane.f32.xlu0 %v2679_v4 }
 0xd0f   : > { %v2661_v48 = vpop.xlane.xlu0 %2660 }
 0xd10   : > { %v6328_v41 = vsub.f32 %v6290_v51, %v2667_v17  ;;  %v2668_v62 = vmul.f32 0.0078125, %v2661_v48  ;;  %v2680_v31 = vmul.f32 %v6325_v33, %v6325_v33 }
 0xd12   : > { %v6333_v52 = vsub.f32 %v6288_v53, %v2668_v62  ;;  %2691 = vadd.xlane.f32.xlu1 %v2680_v31  ;;  %v2681_v3 = vmul.f32 %v6328_v41, %v6328_v41  ;;  %v4200_v62 = vld [vmem:[%s6767_s22] ss:$0 sm:$0xff] }
 0xd14   : > { %2693 = vadd.xlane.f32.xlu0 %v2681_v3  ;;  %v2682_v32 = vmul.f32 %v6333_v52, %v6333_v52 }
 0xd16   : > { %v2695_v38 = vsel %vm810_vm1, %v2682_v32, 0.0 }
 0xd17   : > { %2696 = vadd.xlane.f32.xlu1 %v2695_v38 }
 0xd93   : > { %v2684_v10 = vpop.xlane.xlu1 %2683 }
 0xd94   : > { %v2698_v54 = vmul.f32 0.0078125, %v2684_v10 }
 0xd95   : > { %v2686_v61 = vpop.xlane.xlu0 %2685 }
 0xd96   : > { %v2705_v46 = vadd.f32 1e-05, %v2698_v54  ;;  %v2699_v57 = vmul.f32 0.0078125, %v2686_v61 }
 0xd97   : > { %v2688_v50 = vpop.xlane.xlu1 %2687 }
 0xd98   : > { %5091 = vrsqrt.f32 %v2705_v46  ;;  %v2706_v34 = vadd.f32 1e-05, %v2699_v57  ;;  %v2700_v43 = vmul.f32 0.0078125, %v2688_v50  ;;  %v4933_v57 = vld [vmem:[%s5570_s3 + $0x40] sm:$0xff]  }
 0xd99   : > { %v4935_v50 = vld [vmem:[%s5570_s3] sm:$0xff]   ;;  %4415 = vmatprep.subr.bf16.mxu1 %v4933_v57 }
 0xd9a   : > { %5093 = vrsqrt.f32 %v2706_v34  ;;  %v2707_v60 = vadd.f32 1e-05, %v2700_v43  ;;  %v4936_v34 = vld [vmem:[%s5570_s3 + $0x80] sm:$0xff]   ;;  %v4937_v43 = vld [vmem:[%s5570_s3 + $0x48] sm:$0xff]  }
 0xd9b   : > { %v2690_v58 = vpop.xlane.xlu0 %2689 }
 0xd9c   : > { %5095 = vrsqrt.f32 %v2707_v60  ;;  %v2701_v20 = vmul.f32 0.0078125, %v2690_v58  ;;  %v4939_v60 = vld [vmem:[%s5570_s3 + $0x8] sm:$0xff]  }
 0xd9d   : > { %v4940_v58 = vld [vmem:[%s5570_s3 + $0x88] sm:$0xff]  }
 0xd9e   : > { %v2708_v15 = vadd.f32 1e-05, %v2701_v20  ;;  %v4941_v20 = vld [vmem:[%s5570_s3 + $0x50] sm:$0xff]  }
 0xd9f   : > { %v2692_v4 = vpop.xlane.xlu1 %2691 }
 0xda0   : > { %5097 = vrsqrt.f32 %v2708_v15  ;;  %v2702_v19 = vmul.f32 0.0078125, %v2692_v4  ;;  %v4942_v15 = vld [vmem:[%s5570_s3 + $0xd0] sm:$0xff]  }
 0xda1   : > { %v2694_v17 = vpop.xlane.xlu0 %2693  ;;  %v4943_v4 = vld [vmem:[%s5570_s3 + $0x10] sm:$0xff]  }
 0xda2   : > { %v5092_v48 = vpop.eup %5091  ;;  %v2709_v31 = vadd.f32 1e-05, %v2702_v19  ;;  %v2703_v3 = vmul.f32 0.0078125, %v2694_v17  ;;  %v4944_v19 = vld [vmem:[%s5570_s3 + $0x90] sm:$0xff]   ;;  %v4945_v17 = vld [vmem:[%s5570_s3 + $0x58] sm:$0xff]  }
 0xda3   : > { %v2719_v32 = vmul.f32 %v5092_v48, %v6305_v29  ;;  %v4946_v48 = vld [vmem:[%s5570_s3 + $0xd8] sm:$0xff]  }
 0xda4   : > { %v5094_v14 = vpop.eup %5093  ;;  %5099 = vrsqrt.f32 %v2709_v31  ;;  %v2710_v55 = vadd.f32 1e-05, %v2703_v3  ;;  %v2697_v16 = vpop.xlane.xlu1 %2696  ;;  %v4948_v31 = vld [vmem:[%s5570_s3 + $0x98] sm:$0xff]   ;;  %v4949_v3 = vld [vmem:[%s5570_s3 + $0x60] sm:$0xff]  }
 0xda5   : > { %v2732_v1 = vmul.f32 %v4200_v62, %v2719_v32  ;;  %v2720_v38 = vmul.f32 %v5094_v14, %v6308_v45  ;;  %v2704_v28 = vmul.f32 0.0078125, %v2697_v16  ;;  %v4950_v32 = vld [vmem:[%s5570_s3 + $0xe0] sm:$0xff]   ;;  %v4953_v16 = vld [vmem:[%s5570_s3 + $0x68] sm:$0xff]  }
 0xda6   : > { %v5096_v35 = vpop.eup %5095  ;;  %5101 = vrsqrt.f32 %v2710_v55  ;;  %v4951_v14 = vld [vmem:[%s5570_s3 + $0x20] sm:$0xff]  }
 0xda7   : > { %v2733_v59 = vmul.f32 %v4200_v62, %v2720_v38  ;;  %v2711_v37 = vadd.f32 1e-05, %v2704_v28  ;;  %v2745_v44 = vadd.f32 %v4201_v56, %v2732_v1  ;;  %v2721_v29 = vmul.f32 %v5096_v35, %v6313_v23  ;;  %v4952_v55 = vld [vmem:[%s5570_s3 + $0xa0] sm:$0xff]   ;;  %v4954_v1 = vld [vmem:[%s5570_s3 + $0xe8] sm:$0xff]   ;;  %v4957_v35 = vld [vmem:[%s5570_s3 + $0x70] sm:$0xff]  }
 0xda8   : > { %v4955_v38 = vld [vmem:[%s5570_s3 + $0x28] sm:$0xff]  }
 0xda9   : > { %v2746_v42 = vadd.f32 %v4201_v56, %v2733_v59  ;;  %5103 = vrsqrt.f32 %v2711_v37  ;;  %v2734_v45 = vmul.f32 %v4200_v62, %v2721_v29  ;;  %v4956_v28 = vld [vmem:[%s5570_s3 + $0xa8] sm:$0xff]   ;;  %v4959_v59 = vld [vmem:[%s5570_s3 + $0x30] sm:$0xff]   ;;  %v4963_v29 = vld [vmem:[%s5570_s3 + $0x38] sm:$0xff]  }
 0xdaa   : > { %v5098_v26 = vpop.eup %5097  ;;  %v4960_v37 = vld [vmem:[%s5570_s3 + $0xb0] sm:$0xff]  }
 0xdab   : > { %v2752_v13 = vpack.c.bf16 %v2746_v42, %v2745_v44  ;;  %v2722_v5 = vmul.f32 %v5098_v26, %v6320_v22  ;;  %v2747_v49 = vadd.f32 %v4201_v56, %v2734_v45  ;;  %v4961_v44 = vld [vmem:[%s5570_s3 + $0x78] sm:$0xff]  }
 0xdac   : > { %v4962_v42 = vld [vmem:[%s5570_s3 + $0xf8] sm:$0xff]  }
 0xdad   : > { %3003 = vmatmul.mubr.bf16.vlgmr.msra.gmra.mrb[48].mxu1 %v2752_v13  ;;  %3074 = vmatmul.mubr.bf16.vlgmr.msra.gmra.mrb[48].mxu0 %v2752_v13  ;;  %v2735_v18 = vmul.f32 %v4200_v62, %v2722_v5  ;;  %v4964_v26 = vld [vmem:[%s5570_s3 + $0xb8] sm:$0xff]   ;;  %v2788_v13 = vld [vmem:[%s5565_s30] sm:$0xf]  ;;  %v2804_v5 = vsub.s32 3, %v5653_v6 }
 0xdae   : > { %v5100_v8 = vpop.eup %5099  ;;  %3012 = vmatprep.mubr.bf16.mxu1 %v5337_v11  ;;  %3083 = vmatprep.mubr.bf16.mxu0 %v5337_v11  ;;  %v6423_v45 = vrot.slane %v2788_v13, %v945_v7 }
 0xdaf   : > { %v2748_v2 = vadd.f32 %v4201_v56, %v2735_v18  ;;  %v2723_v39 = vmul.f32 %v5100_v8, %v6325_v33  ;;  %4416 = vmatpush3.bf16.msra.mxu1 %v4935_v50  ;;  %v6427_v18 = vrot.slane %v2788_v13, %v953_v12  ;;  %v6431_v8 = vrot.slane %v2788_v13, %v949_v9 }
 0xdb0   : > { %v5102_v30 = vpop.eup %5101  ;;  %4417 = vmatprep.subr.bf16.mxu1 %v4937_v43 }
 0xdb1   : > { %v2724_v23 = vmul.f32 %v5102_v30, %v6328_v41  ;;  %v2753_v47 = vpack.c.bf16 %v2748_v2, %v2747_v49  ;;  %v2736_v22 = vmul.f32 %v4200_v62, %v2723_v39  ;;  %v6433_v2 = vrot.slane %v2788_v13, %v2804_v5 }
 0xdb3   : > { %v2737_v25 = vmul.f32 %v4200_v62, %v2724_v23  ;;  %v5104_v21 = vpop.eup %5103  ;;  %v2749_v33 = vadd.f32 %v4201_v56, %v2736_v22  ;;  %4418 = vmatpush3.bf16.msra.mxu1 %v4939_v60 }
 0xdb4   : > { %v2725_v10 = vmul.f32 %v5104_v21, %v6333_v52  ;;  %v4934_v52 = vld [vmem:[%s5570_s3 + $0xc0] sm:$0xff]   ;;  %4419 = vmatprep.subr.bf16.mxu1 %v4941_v20 }
 0xdb5   : > { %3013 = vmatmul.mubr.bf16.gmra.mrb[52].mxu1 %v2753_v47  ;;  %3084 = vmatmul.mubr.bf16.gmra.mrb[52].mxu0 %v2753_v47  ;;  %v2750_v0 = vadd.f32 %v4201_v56, %v2737_v25 }
 0xdb6   : > { %3022 = vmatprep.mubr.bf16.mxu1 %v5337_v11  ;;  %3093 = vmatprep.mubr.bf16.mxu0 %v5337_v11  ;;  %v2738_v41 = vmul.f32 %v4200_v62, %v2725_v10  ;;  %v4947_v62 = vld [vmem:[%s5570_s3 + $0x18] sm:$0xff]  }
 0xdb7   : > { %v2754_v54 = vpack.c.bf16 %v2750_v0, %v2749_v33  ;;  %4455 = vmatprep.subr.bf16.mxu0 %v4934_v52  ;;  %4420 = vmatpush3.bf16.msra.mxu1 %v4943_v4 }
 0xdb8   : > { %v2751_v61 = vadd.f32 %v4201_v56, %v2738_v41  ;;  %4456 = vmatpush3.bf16.msra.mxu0 %v4936_v34  ;;  %4421 = vmatprep.subr.bf16.mxu1 %v4945_v17  ;;  %v4958_v56 = vld [vmem:[%s5570_s3 + $0xf0] sm:$0xff]  }
 0xdba   : > { %v2755_v46 = vpack.c.bf16 %v2751_v61, %v2751_v61 }
 0xdbb   : > { %4422 = vmatpush3.bf16.msra.mxu1 %v4947_v62 }
 0xdbc   : > { %4423 = vmatprep.subr.bf16.mxu1 %v4949_v3 }
 0xdbd   : > { %3023 = vmatmul.mubr.bf16.gmra.mrb[56].mxu1 %v2754_v54  ;;  %3094 = vmatmul.mubr.bf16.gmra.mrb[56].mxu0 %v2754_v54 }
 0xdbe   : > { %3032 = vmatprep.mubr.bf16.mxu1 %v5337_v11  ;;  %3103 = vmatprep.mubr.bf16.mxu0 %v5337_v11  ;;  %v4938_v11 = vld [vmem:[%s5570_s3 + $0xc8] sm:$0xff]  }
 0xdbf   : > { %4457 = vmatprep.subr.bf16.mxu0 %v4938_v11  ;;  %4424 = vmatpush3.bf16.msra.mxu1 %v4951_v14 }
 0xdc0   : > { %4458 = vmatpush3.bf16.msra.mxu0 %v4940_v58  ;;  %4425 = vmatprep.subr.bf16.mxu1 %v4953_v16 }
 0xdc1   : > { %4459 = vmatprep.subr.bf16.mxu0 %v4942_v15 }
 0xdc3   : > { %4426 = vmatpush3.bf16.msra.mxu1 %v4955_v38 }
 0xdc4   : > { %4460 = vmatpush3.bf16.msra.mxu0 %v4944_v19  ;;  %4427 = vmatprep.subr.bf16.mxu1 %v4957_v35 }
 0xdc5   : > { %3033 = vmatmul.mubr.bf16.gmra.mrb[60].mxu1 %v2755_v46  ;;  %3104 = vmatmul.mubr.bf16.gmra.mrb[60].mxu0 %v2755_v46 }
 0xdc6   : > { %4461 = vmatprep.subr.bf16.mxu0 %v4946_v48 }
 0xdc7   : > { %4428 = vmatpush3.bf16.msra.mxu1 %v4959_v59 }
 0xdc8   : > { %4462 = vmatpush3.bf16.msra.mxu0 %v4948_v31  ;;  %4429 = vmatprep.subr.bf16.mxu1 %v4961_v44 }
 0xdc9   : > { %4463 = vmatprep.subr.bf16.mxu0 %v4950_v32 }
 0xdcb   : > { %4430 = vmatpush3.bf16.msra.mxu1 %v4963_v29 }
 0xdcc   : > { %4464 = vmatpush3.bf16.msra.mxu0 %v4952_v55 }
 0xdcd   : > { %4465 = vmatprep.subr.bf16.mxu0 %v4954_v1 }
 0xdd0   : > { %4466 = vmatpush3.bf16.msra.mxu0 %v4956_v28 }
 0xdd1   : > { %4467 = vmatprep.subr.bf16.mxu0 %v4958_v56 }
 0xdd4   : > { %4468 = vmatpush3.bf16.msra.mxu0 %v4960_v37 }
 0xdd5   : > { %4469 = vmatprep.subr.bf16.mxu0 %v4962_v42 }
 0xdd8   : > { %4470 = vmatpush3.bf16.msra.mxu0 %v4964_v26 }
 0xe80   : > { %v3004_v30 = vpop.f32.mrb[48].mxu1  ;;  %v3075_v49 = vpop.f32.mrb[48].mxu0 }
 0xe81   : > { %v6436_v39 = vadd.f32 %v3004_v30, %v6423_v45  ;;  %v6439_v23 = vadd.f32 %v3075_v49, %v6427_v18  ;;  %v3006_v7 = vpop.f32.mrb[49].mxu1  ;;  %v3077_v47 = vpop.f32.mrb[49].mxu0 }
 0xe82   : > { %v6442_v25 = vadd.f32 %v3006_v7, %v6431_v8  ;;  %v6445_v12 = vadd.f32 %v3077_v47, %v6433_v2  ;;  %v3008_v6 = vpop.f32.mrb[50].mxu1  ;;  %v3079_v9 = vpop.f32.mrb[50].mxu0 }
 0xe83   : > { %v4234_v21 = vmul.f32 -1.702, %v6436_v39  ;;  %v4236_v22 = vmul.f32 -1.702, %v6439_v23  ;;  %v6450_v0 = vadd.f32 %v3008_v6, %v6423_v45  ;;  %v6453_v10 = vadd.f32 %v3079_v9, %v6427_v18  ;;  %v3010_v33 = vpop.f32.mrb[51].mxu1  ;;  %v3081_v54 = vpop.f32.mrb[51].mxu0 }
 0xe84   : > { %v4235_v41 = vmul.f32 -1.702, %v6442_v25  ;;  %v4237_v61 = vmul.f32 -1.702, %v6445_v12  ;;  %v6458_v46 = vadd.f32 %v3010_v33, %v6431_v8  ;;  %v6461_v57 = vadd.f32 %v3081_v54, %v6433_v2 }
 0xe85   : > { %v3168_v52 = vmul.f32 1.442695, %v4234_v21  ;;  %v3172_v50 = vmul.f32 1.442695, %v4236_v22  ;;  %v4238_v34 = vmul.f32 -1.702, %v6450_v0 }
 0xe86   : > { %v3170_v43 = vmul.f32 1.442695, %v4235_v41  ;;  %v3174_v11 = vmul.f32 1.442695, %v4237_v61  ;;  %v4240_v60 = vmul.f32 -1.702, %v6453_v10 }
 0xe87   : > { %5105 = vpow2.f32 %v3168_v52  ;;  %v3176_v58 = vmul.f32 1.442695, %v4238_v34  ;;  %v4239_v20 = vmul.f32 -1.702, %v6458_v46  ;;  %v4241_v15 = vmul.f32 -1.702, %v6461_v57 }
 0xe88   : > { %5107 = vpow2.f32 %v3172_v50  ;;  %v3180_v4 = vmul.f32 1.442695, %v4240_v60  ;;  %v3014_v19 = vpop.f32.mrb[52].mxu1  ;;  %v3085_v17 = vpop.f32.mrb[52].mxu0 }
 0xe89   : > { %5109 = vpow2.f32 %v3170_v43  ;;  %v3178_v48 = vmul.f32 1.442695, %v4239_v20  ;;  %v3182_v62 = vmul.f32 1.442695, %v4241_v15  ;;  %v6468_v31 = vadd.f32 %v3014_v19, %v6423_v45  ;;  %v3016_v3 = vpop.f32.mrb[53].mxu1  ;;  %v3087_v32 = vpop.f32.mrb[53].mxu0 }
 0xe8a   : > { %5111 = vpow2.f32 %v3174_v11  ;;  %v6471_v14 = vadd.f32 %v3085_v17, %v6427_v18  ;;  %v6474_v55 = vadd.f32 %v3016_v3, %v6431_v8  ;;  %v6477_v16 = vadd.f32 %v3087_v32, %v6433_v2  ;;  %v3018_v1 = vpop.f32.mrb[54].mxu1  ;;  %v3089_v38 = vpop.f32.mrb[54].mxu0 }
 0xe8b   : > { %5113 = vpow2.f32 %v3176_v58  ;;  %v4242_v28 = vmul.f32 -1.702, %v6468_v31  ;;  %v6481_v35 = vadd.f32 %v3018_v1, %v6423_v45  ;;  %v3020_v56 = vpop.f32.mrb[55].mxu1  ;;  %v3091_v59 = vpop.f32.mrb[55].mxu0  ;;  %v6488_v13 = vadd.f32 %v3089_v38, %v6427_v18 }
 0xe8c   : > { %5115 = vpow2.f32 %v3180_v4  ;;  %v4244_v37 = vmul.f32 -1.702, %v6471_v14  ;;  %v4243_v44 = vmul.f32 -1.702, %v6474_v55  ;;  %v4245_v42 = vmul.f32 -1.702, %v6477_v16 }
 0xe8d   : > { %5117 = vpow2.f32 %v3178_v48  ;;  %v3184_v29 = vmul.f32 1.442695, %v4242_v28  ;;  %v4246_v26 = vmul.f32 -1.702, %v6481_v35  ;;  %v6491_v47 = vadd.f32 %v3020_v56, %v6431_v8 }
 0xe8e   : > { %5119 = vpow2.f32 %v3182_v62  ;;  %v3188_v5 = vmul.f32 1.442695, %v4244_v37  ;;  %v3186_v30 = vmul.f32 1.442695, %v4243_v44  ;;  %v3190_v49 = vmul.f32 1.442695, %v4245_v42 }
 0xe8f   : > { %5121 = vpow2.f32 %v3184_v29  ;;  %v3192_v7 = vmul.f32 1.442695, %v4246_v26  ;;  %v4248_v22 = vmul.f32 -1.702, %v6488_v13  ;;  %v6495_v11 = vadd.f32 %v3091_v59, %v6433_v2 }
 0xe90   : > { %5123 = vpow2.f32 %v3188_v5  ;;  %v3024_v6 = vpop.f32.mrb[56].mxu1  ;;  %v3095_v9 = vpop.f32.mrb[56].mxu0  ;;  %v4247_v15 = vmul.f32 -1.702, %v6491_v47 }
 0xe91   : > { %v5106_v21 = vpop.eup %5105  ;;  %5125 = vpow2.f32 %v3186_v30  ;;  %v3026_v33 = vpop.f32.mrb[57].mxu1  ;;  %v3196_v48 = vmul.f32 1.442695, %v4248_v22  ;;  %v6499_v32 = vadd.f32 %v3024_v6, %v6423_v45  ;;  %v6502_v1 = vadd.f32 %v3095_v9, %v6427_v18 }
 0xe92   : > { %v3097_v54 = vpop.f32.mrb[57].mxu0  ;;  %v5108_v41 = vpop.eup %5107  ;;  %v3224_v61 = vadd.f32 1.0, %v5106_v21  ;;  %5127 = vpow2.f32 %v3190_v49  ;;  %v4249_v56 = vmul.f32 -1.702, %v6495_v11  ;;  %v6506_v59 = vadd.f32 %v3026_v33, %v6431_v8 }
 0xe93   : > { %v3028_v52 = vpop.f32.mrb[58].mxu1  ;;  %v3099_v50 = vpop.f32.mrb[58].mxu0  ;;  %v3226_v43 = vadd.f32 1.0, %v5108_v41  ;;  %5129 = vpow2.f32 %v3192_v7  ;;  %v3194_v42 = vmul.f32 1.442695, %v4247_v15  ;;  %v6509_v29 = vadd.f32 %v3097_v54, %v6433_v2 }
 0xe94   : > { %v5110_v34 = vpop.eup %5109  ;;  %v3030_v60 = vpop.f32.mrb[59].mxu1  ;;  %5131 = vrcp.f32 %v3224_v61  ;;  %v6512_v7 = vadd.f32 %v3028_v52, %v6423_v45  ;;  %v6515_v6 = vadd.f32 %v3099_v50, %v6427_v18  ;;  %v4250_v54 = vmul.f32 -1.702, %v6499_v32 }
 0xe95   : > { %v5112_v58 = vpop.eup %5111  ;;  %v3225_v20 = vadd.f32 1.0, %v5110_v34  ;;  %v3101_v4 = vpop.f32.mrb[59].mxu0  ;;  %5133 = vrcp.f32 %v3226_v43  ;;  %v6523_v41 = vadd.f32 %v3030_v60, %v6431_v8  ;;  %v4252_v43 = vmul.f32 -1.702, %v6502_v1 }
 0xe96   : > { %v5114_v19 = vpop.eup %5113  ;;  %v3227_v17 = vadd.f32 1.0, %v5112_v58  ;;  %v4251_v50 = vmul.f32 -1.702, %v6506_v59 }
 0xe97   : > { %v5116_v62 = vpop.eup %5115  ;;  %5135 = vrcp.f32 %v3225_v20  ;;  %v3228_v3 = vadd.f32 1.0, %v5114_v19  ;;  %v4253_v19 = vmul.f32 -1.702, %v6509_v29 }
 0xe98   : > { %v5118_v38 = vpop.eup %5117  ;;  %5137 = vrcp.f32 %v3227_v17  ;;  %v3230_v28 = vadd.f32 1.0, %v5116_v62  ;;  %v3034_v26 = vpop.f32.mrb[60].mxu1 }
 0xe99   : > { %v5120_v37 = vpop.eup %5119  ;;  %5139 = vrcp.f32 %v3228_v3  ;;  %v3229_v44 = vadd.f32 1.0, %v5118_v38  ;;  %v3105_v5 = vpop.f32.mrb[60].mxu0  ;;  %v4254_v38 = vmul.f32 -1.702, %v6512_v7 }
 0xe9a   : > { %v5122_v30 = vpop.eup %5121  ;;  %5141 = vrcp.f32 %v3230_v28  ;;  %v3231_v49 = vadd.f32 1.0, %v5120_v37  ;;  %v6517_v9 = vpop.f32.mrb[61].mxu1  ;;  %v4256_v28 = vmul.f32 -1.702, %v6515_v6 }
 0xe9b   : > { %v6519_v21 = vpop.f32.mrb[61].mxu0  ;;  %v5124_v22 = vpop.eup %5123  ;;  %5143 = vrcp.f32 %v3229_v44  ;;  %v3232_v33 = vadd.f32 1.0, %v5122_v30  ;;  %v4255_v30 = vmul.f32 -1.702, %v6523_v41 }
 0xe9c   : > { %v3038_v61 = vpop.f32.mrb[62].mxu1  ;;  %v5126_v34 = vpop.eup %5125  ;;  %5145 = vrcp.f32 %v3231_v49  ;;  %v3234_v52 = vadd.f32 1.0, %v5124_v22  ;;  %v6532_v49 = vadd.f32 %v3101_v4, %v6433_v2  ;;  %v3212_v53 = vmul.f32 1.442695, %v4256_v28 }
 0xe9d   : > { %v3109_v58 = vpop.f32.mrb[62].mxu0  ;;  %v5128_v20 = vpop.eup %5127  ;;  %5147 = vrcp.f32 %v3232_v33  ;;  %v3233_v15 = vadd.f32 1.0, %v5126_v34  ;;  %v3198_v33 = vmul.f32 1.442695, %v4249_v56  ;;  %v6535_v61 = vadd.f32 %v3034_v26, %v6423_v45 }
 0xe9e   : > { %v3039_v17 = vpop.f32.mrb[63].mxu1  ;;  %v3110_v62 = vpop.f32.mrb[63].mxu0  ;;  %5149 = vrcp.f32 %v3234_v52  ;;  %v3235_v60 = vadd.f32 1.0, %v5128_v20  ;;  %v3200_v52 = vmul.f32 1.442695, %v4250_v54  ;;  %v6538_v20 = vadd.f32 %v3105_v5, %v6427_v18 }
 0xe9f   : > { %v5130_v3 = vpop.eup %5129  ;;  %5151 = vrcp.f32 %v3233_v15  ;;  %v3204_v58 = vmul.f32 1.442695, %v4252_v43  ;;  %v3202_v17 = vmul.f32 1.442695, %v4251_v50  ;;  %v3206_v62 = vmul.f32 1.442695, %v4253_v19 }
 0xea0   : > { %v5132_v37 = vpop.eup %5131  ;;  %v3236_v44 = vadd.f32 1.0, %v5130_v3  ;;  %5153 = vrcp.f32 %v3235_v60  ;;  %v3208_v3 = vmul.f32 1.442695, %v4254_v38  ;;  %v3210_v60 = vmul.f32 1.442695, %v4255_v30 }
 0xea1   : > { %v5134_v22 = vpop.eup %5133  ;;  %v4257_v56 = vmul.f32 -1.702, %v6532_v49  ;;  %v3308_v26 = vmul.f32 %v5132_v37, %v6436_v39  ;;  %v4258_v18 = vmul.f32 -1.702, %v6535_v61 }
 0xea2   : > { %v5136_v34 = vpop.eup %5135  ;;  %5155 = vrcp.f32 %v3236_v44 }
 0xea3   : > { %v5138_v15 = vpop.eup %5137  ;;  %5157 = vpow2.f32 %v3196_v48  ;;  %v3310_v48 = vmul.f32 %v5134_v22, %v6439_v23  ;;  %v3309_v19 = vmul.f32 %v5136_v34, %v6442_v25  ;;  %v3216_v25 = vmul.f32 1.442695, %v4258_v18 }
 0xea4   : > { %v5140_v4 = vpop.eup %5139  ;;  %5159 = vpow2.f32 %v3194_v42  ;;  %v4260_v42 = vmul.f32 -1.702, %v6538_v20 }
 0xea5   : > { %v5142_v45 = vpop.eup %5141  ;;  %v3312_v54 = vmul.f32 %v5140_v4, %v6450_v0  ;;  %5161 = vpow2.f32 %v3198_v33  ;;  %v3311_v0 = vmul.f32 %v5138_v15, %v6445_v12 }
 0xea6   : > { %v5144_v5 = vpop.eup %5143  ;;  %v3314_v43 = vmul.f32 %v5142_v45, %v6453_v10  ;;  %5163 = vpow2.f32 %v3200_v52  ;;  %v3214_v10 = vmul.f32 1.442695, %v4257_v56 }
 0xea7   : > { %v5146_v50 = vpop.eup %5145  ;;  %v3336_v38 = vpack.c.bf16 %v3312_v54, %v3308_v26  ;;  %v3313_v28 = vmul.f32 %v5144_v5, %v6458_v46  ;;  %5165 = vpow2.f32 %v3204_v58  ;;  %v3220_v46 = vmul.f32 1.442695, %v4260_v42 }
 0xea8   : > { %v5148_v39 = vpop.eup %5147  ;;  %v3338_v37 = vpack.c.bf16 %v3314_v43, %v3310_v48  ;;  %v3315_v44 = vmul.f32 %v5146_v50, %v6461_v57  ;;  %5167 = vpow2.f32 %v3202_v17  ;;  %v6571_v54 = vadd.f32 %v6519_v21, %v6433_v2 }
 0xea9   : > { %v6551_v23 = vpop.eup %5149  ;;  %5169 = vpow2.f32 %v3206_v62  ;;  %v3337_v30 = vpack.c.bf16 %v3313_v28, %v3309_v19  ;;  %v6558_v52 = vmul.f32 %v5148_v39, %v6468_v31 }
 0xeaa   : > { %v6553_v22 = vpop.eup %5151  ;;  %5171 = vpow2.f32 %v3208_v3  ;;  %v3339_v33 = vpack.c.bf16 %v3315_v44, %v3311_v0 }
 0xeab   : > { %v6555_v34 = vpop.eup %5153  ;;  %5173 = vpow2.f32 %v3212_v53  ;;  %3640 = vmatprep.mubr.bf16.mxu1 %v3337_v30 }
 0xeac   : > { %v5156_v12 = vpop.eup %5155  ;;  %5175 = vpow2.f32 %v3210_v60  ;;  %3704 = vmatprep.mubr.bf16.mxu0 %v3339_v33  ;;  %3641 = vmatmul.mubr.bf16.vlgmr.msra.gmra.mrb[64].mxu1 %v3336_v38  ;;  %v4261_v38 = vmul.f32 -1.702, %v6571_v54 }
 0xead   : > { %v5158_v57 = vpop.eup %5157  ;;  %v6561_v58 = vmul.f32 %v5156_v12, %v6481_v35  ;;  %5177 = vpow2.f32 %v3214_v10  ;;  %3705 = vmatmul.mubr.bf16.vlgmr.msra.gmra.mrb[64].mxu0 %v3338_v37  ;;  %v6567_v35 = vadd.f32 %v6517_v9, %v6431_v8  ;;  %v3317_v12 = vmul.f32 %v6553_v22, %v6474_v55 }
 0xeae   : > { %v5160_v15 = vpop.eup %5159  ;;  %v3238_v17 = vadd.f32 1.0, %v5158_v57  ;;  %5179 = vpow2.f32 %v3216_v25  ;;  %v3222_v10 = vmul.f32 1.442695, %v4261_v38  ;;  %v3318_v25 = vmul.f32 %v6551_v23, %v6471_v14 }
 0xeaf   : > { %v5162_v62 = vpop.eup %5161  ;;  %v3237_v53 = vadd.f32 1.0, %v5160_v15  ;;  %5181 = vpow2.f32 %v3220_v46  ;;  %v3340_v3 = vpack.c.bf16 %v6561_v58, %v6558_v52  ;;  %v4259_v19 = vmul.f32 -1.702, %v6567_v35 }
 0xeb0   : > { %v5164_v4 = vpop.eup %5163  ;;  %5183 = vrcp.f32 %v3238_v17  ;;  %v3239_v60 = vadd.f32 1.0, %v5162_v62  ;;  %v3319_v58 = vmul.f32 %v6555_v34, %v6477_v16 }
 0xeb1   : > { %v5166_v56 = vpop.eup %5165  ;;  %5185 = vrcp.f32 %v3237_v53  ;;  %v3240_v31 = vadd.f32 1.0, %v5164_v4  ;;  %v3218_v37 = vmul.f32 1.442695, %v4259_v19 }
 0xeb2   : > { %v5168_v45 = vpop.eup %5167  ;;  %5187 = vrcp.f32 %v3239_v60  ;;  %v3242_v26 = vadd.f32 1.0, %v5166_v56 }
 0xeb3   : > { %v5170_v18 = vpop.eup %5169  ;;  %5189 = vrcp.f32 %v3240_v31  ;;  %v3241_v5 = vadd.f32 1.0, %v5168_v45 }
 0xeb4   : > { %v5172_v48 = vpop.eup %5171  ;;  %5191 = vrcp.f32 %v3242_v26  ;;  %v3243_v43 = vadd.f32 1.0, %v5170_v18 }
 0xeb5   : > { %v5174_v42 = vpop.eup %5173  ;;  %5193 = vrcp.f32 %v3241_v5  ;;  %v3244_v50 = vadd.f32 1.0, %v5172_v48 }
 0xeb6   : > { %v5176_v8 = vpop.eup %5175  ;;  %5195 = vrcp.f32 %v3243_v43  ;;  %v3246_v9 = vadd.f32 1.0, %v5174_v42 }
 0xeb7   : > { %v5178_v28 = vpop.eup %5177  ;;  %5197 = vrcp.f32 %v3244_v50  ;;  %v3245_v2 = vadd.f32 1.0, %v5176_v8 }
 0xeb8   : > { %v5180_v21 = vpop.eup %5179  ;;  %5199 = vrcp.f32 %v3246_v9  ;;  %v3247_v39 = vadd.f32 1.0, %v5178_v28 }
 0xeb9   : > { %v5182_v0 = vpop.eup %5181  ;;  %5201 = vrcp.f32 %v3245_v2  ;;  %v3248_v60 = vadd.f32 1.0, %v5180_v21 }
 0xeba   : > { %v5184_v44 = vpop.eup %5183  ;;  %5203 = vrcp.f32 %v3247_v39  ;;  %v3250_v26 = vadd.f32 1.0, %v5182_v0 }
 0xebb   : > { %v5186_v30 = vpop.eup %5185  ;;  %v3322_v33 = vmul.f32 %v5184_v44, %v6488_v13  ;;  %5205 = vpow2.f32 %v3218_v37 }
 0xebc   : > { %v5188_v46 = vpop.eup %5187  ;;  %v3321_v57 = vmul.f32 %v5186_v30, %v6491_v47  ;;  %5207 = vpow2.f32 %v3222_v10 }
 0xebd   : > { %v5190_v52 = vpop.eup %5189  ;;  %v3323_v15 = vmul.f32 %v5188_v46, %v6495_v11  ;;  %v3342_v17 = vpack.c.bf16 %v3322_v33, %v3318_v25  ;;  %5209 = vrcp.f32 %v3248_v60 }
 0xebe   : > { %v5192_v62 = vpop.eup %5191  ;;  %v3341_v53 = vpack.c.bf16 %v3321_v57, %v3317_v12  ;;  %v3324_v47 = vmul.f32 %v5190_v52, %v6499_v32  ;;  %5211 = vrcp.f32 %v3250_v26  ;;  %v4294_v12 = vld [vmem:[%s756_s28] ss:$0 sm:$0xff]  ;;  %s6772_s28 = sld [smem:[#allocation25_spill]] (!%p4295_p1) }
 0xebf   : > { %v5194_v14 = vpop.eup %5193  ;;  %v3343_v23 = vpack.c.bf16 %v3323_v15, %v3319_v58  ;;  %v3326_v11 = vmul.f32 %v5192_v62, %v6502_v1 }
 0xec0   : > { %v5196_v13 = vpop.eup %5195  ;;  %3648 = vmatprep.mubr.bf16.mxu1 %v3341_v53  ;;  %v3325_v31 = vmul.f32 %v5194_v14, %v6506_v59 }
 0xec1   : > { %v5198_v4 = vpop.eup %5197  ;;  %3712 = vmatprep.mubr.bf16.mxu0 %v3343_v23  ;;  %3649 = vmatmul.mubr.bf16.gmra.mrb[68].mxu1 %v3340_v3  ;;  %v3327_v3 = vmul.f32 %v5196_v13, %v6509_v29 }
 0xec2   : > { %v5200_v55 = vpop.eup %5199  ;;  %v3328_v22 = vmul.f32 %v5198_v4, %v6512_v7  ;;  %3713 = vmatmul.mubr.bf16.gmra.mrb[68].mxu0 %v3342_v17 }
 0xec3   : > { %v5202_v16 = vpop.eup %5201  ;;  %v3330_v34 = vmul.f32 %v5200_v55, %v6515_v6 }
 0xec4   : > { %v5204_v56 = vpop.eup %5203  ;;  %v3329_v45 = vmul.f32 %v5202_v16, %v6523_v41  ;;  %v3344_v18 = vpack.c.bf16 %v3328_v22, %v3324_v47 }
 0xec5   : > { %v3331_v32 = vmul.f32 %v5204_v56, %v6532_v49  ;;  %v3346_v5 = vpack.c.bf16 %v3330_v34, %v3326_v11  ;;  %v5206_v48 = vpop.eup %5205 }
 0xec6   : > { %v3345_v7 = vpack.c.bf16 %v3329_v45, %v3325_v31  ;;  %v5208_v1 = vpop.eup %5207  ;;  %v3249_v6 = vadd.f32 1.0, %v5206_v48 }
 0xec7   : > { %v3347_v43 = vpack.c.bf16 %v3331_v32, %v3327_v3  ;;  %v3251_v42 = vadd.f32 1.0, %v5208_v1  ;;  %v5210_v59 = vpop.eup %5209 }
 0xec8   : > { %3656 = vmatprep.mubr.bf16.mxu1 %v3345_v7  ;;  %5213 = vrcp.f32 %v3249_v6  ;;  %v5212_v41 = vpop.eup %5211  ;;  %v3332_v49 = vmul.f32 %v5210_v59, %v6535_v61 }
 0xec9   : > { %3720 = vmatprep.mubr.bf16.mxu0 %v3347_v43  ;;  %3657 = vmatmul.mubr.bf16.gmra.mrb[72].mxu1 %v3344_v18  ;;  %5215 = vrcp.f32 %v3251_v42  ;;  %v3334_v19 = vmul.f32 %v5212_v41, %v6538_v20 }
 0xeca   : > { %3721 = vmatmul.mubr.bf16.gmra.mrb[72].mxu0 %v3346_v5  ;;  %v3348_v28 = vpack.c.bf16 %v3332_v49, %v3332_v49 }
 0xecb   : > { %v3350_v21 = vpack.c.bf16 %v3334_v19, %v3334_v19 }
 0xed2   : > { %v5214_v29 = vpop.eup %5213 }
 0xed3   : > { %v5216_v50 = vpop.eup %5215  ;;  %v3333_v8 = vmul.f32 %v5214_v29, %v6567_v35 }
 0xed4   : > { %v3335_v9 = vmul.f32 %v5216_v50, %v6571_v54 }
 0xed5   : > { %v3349_v38 = vpack.c.bf16 %v3333_v8, %v3333_v8 }
 0xed6   : > { %v3351_v2 = vpack.c.bf16 %v3335_v9, %v3335_v9 }
 0xed7   : > { %3664 = vmatprep.mubr.bf16.mxu1 %v3349_v38 }
 0xed8   : > { %3728 = vmatprep.mubr.bf16.mxu0 %v3351_v2  ;;  %3665 = vmatmul.mubr.bf16.gmra.mrb[76].mxu1 %v3348_v28 }
 0xed9   : > { %3729 = vmatmul.mubr.bf16.gmra.mrb[76].mxu0 %v3350_v21 }
 0xf7f   : > { %v4431_v39 = vpop.f32.mrb[64].mxu1 }
 0xf80   : > { %v4471_v0 = vpop.f32.mrb[64].mxu0  ;;  %v4432_v37 = vpop.f32.mrb[65].mxu1 }
 0xf81   : > { %v4433_v61 = vadd.f32 %v4432_v37, %v4431_v39  ;;  %v4472_v44 = vpop.f32.mrb[65].mxu0  ;;  %v4434_v10 = vpop.f32.mrb[66].mxu1 }
 0xf82   : > { %v4473_v20 = vadd.f32 %v4472_v44, %v4471_v0  ;;  %v4474_v30 = vpop.f32.mrb[66].mxu0  ;;  %v4435_v35 = vpop.f32.mrb[67].mxu1  ;;  %v6769_v44 = vld [vmem:[#allocation19_spill] sm:$0xff] }
 0xf83   : > { %v4436_v25 = vadd.f32 %v4435_v35, %v4434_v10  ;;  %v4475_v54 = vpop.f32.mrb[67].mxu0  ;;  %v5232_v35 = vld [vmem:[%s6771_s17 + $0x8] sm:$0xff] (!%p4295_p1)  }
 0xf84   : > { %v3707_v33 = vadd.f32 %v4473_v20, %v4433_v61  ;;  %v4476_v46 = vadd.f32 %v4475_v54, %v4474_v30  ;;  %v5231_v20 = vld [vmem:[%s6771_s17] sm:$0xff] (!%p4295_p1)   ;;  %v5341_v30 = vmov (!%p4295_p1), 0.0  }
 0xf85   : > { %4680 = vmatprep.subr.bf16.mxu0 (!%p4295_p1), %v5341_v30  ;;  %4696 = vmatprep.mubr.msk.bf16.mxu0 (!%p4295_p1), %vm5342_vm9, %v5341_v30 }
 0xf86   : > { %v3736_v57 = vadd.f32 %v3707_v33, %v6274_v40  ;;  %v3710_v52 = vadd.f32 %v4476_v46, %v4436_v25  ;;  %4681 = vmatpush3.bf16.msra.mxu0 (!%p4295_p1), %v5231_v20 }
 0xf87   : > { %4682 = vmatprep.subr.bf16.mxu0 (!%p4295_p1), %v5341_v30 }
 0xf88   : > { %v3750_v58 = vadd.f32 %v4294_v12, %v3736_v57  ;;  %v3737_v15 = vadd.f32 %v3710_v52, %v6276_v63  ;;  %v5233_v57 = vld [vmem:[%s6771_s17 + $0x10] sm:$0xff] (!%p4295_p1)   ;;  %v5234_v52 = vld [vmem:[%s6771_s17 + $0x18] sm:$0xff] (!%p4295_p1)  }
 0xf8a   : > { %3757 = vst [vmem:[#allocation2] sm:$0xff] %v3750_v58  ;;  %v3751_v17 = vadd.f32 %v4294_v12, %v3737_v15  ;;  %4683 = vmatpush3.bf16.msra.mxu0 (!%p4295_p1), %v5232_v35  ;;  %v5235_v58 = vld [vmem:[%s6771_s17 + $0x20] sm:$0xff] (!%p4295_p1)   ;;  %v5236_v15 = vld [vmem:[%s6771_s17 + $0x28] sm:$0xff] (!%p4295_p1)  }
 0xf8b   : > { %4684 = vmatprep.subr.bf16.mxu0 (!%p4295_p1), %v5341_v30 }
 0xf8c   : > { %3758 = vst [vmem:[#allocation2 + $0x8] sm:$0xff] %v3751_v17  ;;  %v5237_v17 = vld [vmem:[%s6771_s17 + $0x30] sm:$0xff] (!%p4295_p1)  }
 0xf8e   : > { %4685 = vmatpush3.bf16.msra.mxu0 (!%p4295_p1), %v5233_v57 }
 0xf8f   : > { %4686 = vmatprep.subr.bf16.mxu0 (!%p4295_p1), %v5341_v30 }
 0xf92   : > { %4687 = vmatpush3.bf16.msra.mxu0 (!%p4295_p1), %v5234_v52 }
 0xf93   : > { %4688 = vmatprep.subr.bf16.mxu0 (!%p4295_p1), %v5341_v30 }
 0xf94   : > { %v4437_v62 = vpop.f32.mrb[68].mxu1 }
 0xf95   : > { %v4477_v53 = vpop.f32.mrb[68].mxu0  ;;  %v4438_v14 = vpop.f32.mrb[69].mxu1 }
 0xf96   : > { %v4439_v23 = vadd.f32 %v4438_v14, %v4437_v62  ;;  %v4478_v13 = vpop.f32.mrb[69].mxu0  ;;  %v4440_v4 = vpop.f32.mrb[70].mxu1  ;;  %4689 = vmatpush3.bf16.msra.mxu0 (!%p4295_p1), %v5235_v58  ;;  %v5238_v62 = vld [vmem:[%s6771_s17 + $0x38] sm:$0xff] (!%p4295_p1)  }
 0xf97   : > { %v4479_v55 = vadd.f32 %v4478_v13, %v4477_v53  ;;  %v4480_v47 = vpop.f32.mrb[70].mxu0  ;;  %v4441_v22 = vpop.f32.mrb[71].mxu1  ;;  %4690 = vmatprep.subr.bf16.mxu0 (!%p4295_p1), %v5341_v30 }
 0xf98   : > { %v4442_v16 = vadd.f32 %v4441_v22, %v4440_v4  ;;  %v4481_v11 = vpop.f32.mrb[71].mxu0  ;;  %v4296_v4 = vld [vmem:[%s6772_s28] ss:$0 sm:$0xff] (!%p4295_p1) }
 0xf99   : > { %v3715_v34 = vadd.f32 %v4479_v55, %v4439_v23  ;;  %v4482_v40 = vadd.f32 %v4481_v11, %v4480_v47  ;;  %v4297_v47 = vld [vmem:[%s6773_s27] ss:$0 sm:$0xff] (!%p4295_p1) }
 0xf9a   : > { %4691 = vmatpush3.bf16.msra.mxu0 (!%p4295_p1), %v5236_v15 }
 0xf9b   : > { %v3738_v60 = vadd.f32 %v3715_v34, %v6279_v36  ;;  %v3718_v56 = vadd.f32 %v4482_v40, %v4442_v16  ;;  %4692 = vmatprep.subr.bf16.mxu0 (!%p4295_p1), %v5341_v30 }
 0xf9c   : > { %v4443_v63 = vpop.f32.mrb[72].mxu1 }
 0xf9d   : > { %v3752_v31 = vadd.f32 %v4294_v12, %v3738_v60  ;;  %v3739_v45 = vadd.f32 %v3718_v56, %v6283_v27  ;;  %v4483_v26 = vpop.f32.mrb[72].mxu0  ;;  %v4444_v18 = vpop.f32.mrb[73].mxu1 }
 0xf9e   : > { %v4445_v3 = vadd.f32 %v4444_v18, %v4443_v63  ;;  %v4484_v32 = vpop.f32.mrb[73].mxu0  ;;  %v4446_v5 = vpop.f32.mrb[74].mxu1  ;;  %4693 = vmatpush3.bf16.msra.mxu0 (!%p4295_p1), %v5237_v17 }
 0xf9f   : > { %3759 = vst [vmem:[#allocation2 + $0x10] sm:$0xff] %v3752_v31  ;;  %v3753_v7 = vadd.f32 %v4294_v12, %v3739_v45  ;;  %v4485_v48 = vadd.f32 %v4484_v32, %v4483_v26  ;;  %v4486_v43 = vpop.f32.mrb[74].mxu0  ;;  %v4447_v1 = vpop.f32.mrb[75].mxu1  ;;  %4694 = vmatprep.subr.bf16.mxu0 (!%p4295_p1), %v5341_v30 }
 0xfa0   : > { %v4448_v6 = vadd.f32 %v4447_v1, %v4446_v5  ;;  %v4487_v42 = vpop.f32.mrb[75].mxu0 }
 0xfa1   : > { %3760 = vst [vmem:[#allocation2 + $0x18] sm:$0xff] %v3753_v7  ;;  %v3723_v59 = vadd.f32 %v4485_v48, %v4445_v3  ;;  %v4488_v36 = vadd.f32 %v4487_v42, %v4486_v43 }
 0xfa2   : > { %4695 = vmatpush3.bf16.msra.mxu0 (!%p4295_p1), %v5238_v62 }
 0xfa3   : > { %v3740_v41 = vadd.f32 %v3723_v59, %v6286_v24  ;;  %v3726_v29 = vadd.f32 %v4488_v36, %v4448_v6 }
 0xfa5   : > { %v3754_v49 = vadd.f32 %v4294_v12, %v3740_v41  ;;  %v3741_v27 = vadd.f32 %v3726_v29, %v6290_v51 }
 0xfa7   : > { %3761 = vst [vmem:[#allocation2 + $0x20] sm:$0xff] %v3754_v49  ;;  %v3755_v50 = vadd.f32 %v4294_v12, %v3741_v27 }
 0xfa9   : > { %3762 = vst [vmem:[#allocation2 + $0x28] sm:$0xff] %v3755_v50 }
 0xfab   : > { %v4449_v19 = vpop.f32.mrb[76].mxu1 }
 0xfac   : > { %v4489_v8 = vpop.f32.mrb[76].mxu0  ;;  %v4450_v9 = vpop.f32.mrb[77].mxu1 }
 0xfad   : > { %v4451_v38 = vadd.f32 %v4450_v9, %v4449_v19  ;;  %v4490_v28 = vpop.f32.mrb[77].mxu0  ;;  %v4452_v2 = vpop.f32.mrb[78].mxu1 }
 0xfae   : > { %v4491_v21 = vadd.f32 %v4490_v28, %v4489_v8  ;;  %v4492_v39 = vpop.f32.mrb[78].mxu0  ;;  %v4453_v0 = vpop.f32.mrb[79].mxu1 }
 0xfaf   : > { %v4493_v37 = vpop.f32.mrb[79].mxu0 }
 0xfb0   : > { %v3731_v61 = vadd.f32 %v4491_v21, %v4451_v38  ;;  %3767 = sbr.rel (%p4295_p1) target bundleno = 4554 (0x11ca), region = 96 }
 0xfb2   : > { %v3742_v24 = vadd.f32 %v3731_v61, %v6769_v44 }
 0xfb4   : > { %v3756_v10 = vadd.f32 %v4294_v12, %v3742_v24 }
 0xfb6   : > { %3763 = vst [vmem:[#allocation2 + $0x30] sm:$0x3f] %v3756_v10  ;;  %v3771_v51 = vsel (!%p4295_p1), %vm3770_vm8, %v3756_v10, 0.0 }
 0xfb7   : > { %3772 = vadd.xlane.f32.xlu0 %v3771_v51 }
0x1044   : > { %v3773_v25 = vpop.xlane.xlu0 %3772 }
0x1045   : > { %v3774_v54 = vmul.f32 0.0078125, %v3773_v25 }
0x1047   : > { %v3775_v33 = vsub.f32 %v3756_v10, %v3774_v54 }
0x1049   : > { %v3776_v46 = vmul.f32 %v3775_v33, %v3775_v33 }
0x104b   : > { %v3777_v12 = vsel %vm3770_vm8, %v3776_v46, 0.0 }
0x104c   : > { %3778 = vadd.xlane.f32.xlu0 %v3777_v12 }
0x10d9   : > { %v3779_v53 = vpop.xlane.xlu0 %3778 }
0x10da   : > { %v3780_v14 = vmul.f32 0.0078125, %v3779_v53 }
0x10dc   : > { %v3781_v23 = vadd.f32 1e-05, %v3780_v14 }
0x10de   : > { %5239 = vrsqrt.f32 %v3781_v23 }
0x10e8   : > { %v5240_v13 = vpop.eup %5239 }
0x10e9   : > { %v3783_v55 = vmul.f32 %v5240_v13, %v3775_v33 }
0x10eb   : > { %v3790_v22 = vmul.f32 %v4296_v4, %v3783_v55 }
0x10ed   : > { %v3797_v16 = vadd.f32 %v4297_v47, %v3790_v22 }
0x10ef   : > { %v3798_v11 = vpack.c.bf16 %v3797_v16, %v3797_v16 }
0x10f1   : > { %v3816_v34 = vrot.slane %v3798_v11, 1 }
0x10f3   : > { %4697 = vmatmul.mubr.bf16.vlgmr.msra.gmra.mrb[0].mxu0 %v3816_v34 }
0x11c6   : > { %v3900_v40 = vpop.f32.mrb[0].mxu0 }
0x11c7   : > { %3906 = vst [vmem:[%s705_s4] sm:$0xf] %v3900_v40  ;;  %v4698_v60 = vpop.f32.mrb[1].mxu0 }
0x11c8   : > { %v3903_v56 = vpop.f32.mrb[2].mxu0 }
0x11c9   : > { %v4699_v63 = vpop.f32.mrb[3].mxu0 }
0x11ca PF: > { %s6774_s6 = sld [smem:[#allocation10_spill]]  ;;  %s6775_s25 = sld [smem:[#allocation7_spill]] }
0x11cb   : > { %s6777_s21 = sld [smem:[#allocation28_spill]]  ;;  %s3921_s23 = sshll.u32 %s705_s4, 4  ;;  %s3922_s23 = int_to_ptr.vmem [resolvable:$true] %s3921_s23 }
0x11cc   : > { %s5241_s30 = scalar_lea.vmem %s3922_s23, 64  ;;  %s5343_s3 = smov [#allocation3]  }
0x11cd   : > { %p5242_p2 = scmp.ne.s32.totalorder %s3922_s23, %s5241_s30  ;;  %s5245_s24 = sshll.u32 %s5343_s3, 4  ;;  %s5246_s24 = int_to_ptr.vmem [resolvable:$false] %s5245_s24 }
0x11ce   : > { %s5247_s28 = scalar_lea.vmem %s5246_s24, 128  ;;  %p5248_p6 = scmp.lt.s32.totalorder %s3922_s23, %s5246_s24 }
0x11cf   : > { %p5243_p4 = pnand %p5242_p2, %p5483_p3  ;;  %p5249_p7 = scmp.lt.s32.totalorder %s5247_s28, %s5241_s30 }
0x11d0   : > { %s4307_s18 = sshll.u32 %s6774_s6, 6  ;;  %s6778_s16 = sand.u32 1, %s6775_s25  }
0x11d1   : > { %s6645_s22 = scalar_lea.hbm %s6777_s21, %s4307_s18  ;;  %s3908_s20 = scalar_lea.sflag [#allocation4], %s6778_s16 }
0x11d2   : > { %p5244_p5 = pneg %p5243_p4  ;;  %p5250_p8 = por %p5249_p7, %p5248_p6 }
0x11d4   : > { %p5251_p10 = pnand %p5250_p8, %p5244_p5 }
0x11d6   : > { %5254 = shalt.err (!%p5251_p10)
}
0x11d7   : > { %s5255_s4 = scalar_lea.hbm %s6645_s22, 64  ;;  %s5259_s26 = scalar_lea.hbm %s6777_s21, 128 }
0x11d8   : > { %p5256_p11 = scmp.ne.s32.totalorder %s6645_s22, %s5255_s4  ;;  %p5260_p0 = scmp.lt.u32.totalorder %s6645_s22, %s6777_s21 }
0x11d9   : > { %p5261_p1 = scmp.lt.u32.totalorder %s5259_s26, %s5255_s4  ;;  %p5263_p4 = scmp.lt.u32.totalorder %s5255_s4, %s6645_s22 }
0x11da   : > { %p5257_p12 = pnand %p5256_p11, %p5483_p3 }
0x11db   : > { %p5262_p2 = por %p5261_p1, %p5260_p0 }
0x11dc   : > { %p5258_p13 = pneg %p5257_p12 }
0x11dd   : > { %p5264_p5 = por %p5263_p4, %p5262_p2 }
0x11df   : > { %p5265_p6 = pnand %p5264_p5, %p5258_p13 }
0x11e1   : > { %5268 = shalt.err (!%p5265_p6)
}
0x11e2   : > { %4723 = dma.vmem_to_hbm [thread:$0]  (%p5483_p3), %s3922_s23, 64, %s6645_s22, %s3908_s20  }
0x11e3 PF: > { %s6779_s25 = sld [smem:[#allocation13_spill]]  ;;  %s6780_s18 = sld [smem:[#allocation6_spill]] }
0x11e9   : > { %p4729_p7 = scmp.ge.s32.totalorder %s6779_s25, 2  ;;  %s3933_s0 = sand.u32 1, %s6780_s18  }
0x11ea   : > { %s3934_s16 = scalar_lea.sflag [#allocation4], %s3933_s0 }
0x11eb   : > { %p4726_p8 = pnand %p4729_p7, %p5493_p9 }
0x11ed   : > { %5302 = dma.done.wait (!%p4726_p8), %s3934_s16, 64  }
0x11ee   : > { %5304 = vsyncadd (!%p4726_p8), %s3934_s16, 4294967232  ;;  %s30_s30 = sadd.s32 1, %s6779_s25   ;;  %s6782_s24 = sld [smem:[#allocation7_spill]] }
0x11ef   : > { %p27_p10 = scmp.ge.s32.totalorder %s30_s30, 8   ;;  %s6783_s25 = sld [smem:[#allocation8_spill]] }
0x11f0   : > { %s6784_s26 = sld [smem:[#allocation18_spill]]  ;;  %s6785_s27 = sld [smem:[#allocation11_spill]] }
0x11f1   : > { %s6786_s28 = sld [smem:[#allocation12_spill]]  ;;  %s6787_s29 = sld [smem:[#allocation14_spill]] }
0x11f2   : > { %s6788_s0 = sld [smem:[#allocation16_spill]]  ;;  %29 = sbr.rel (!%p27_p10) target bundleno = 15 (0xf), region = 167 }
0x11f9   :  { %3939 = vsyncpa [#allocation4], 1 }
0x11fa   :  { %3941 = vsyncpa [#allocation4 + $0x1], 1 }

</bundles_post_ra>
